<compile_context>
chip_gen: v7x
topology: tpu7x:2x2x1
jax: 0.10.0
libtpu: 0.0.40
codegen_flags: <defaults>
</compile_context>

<pallas_src>
import functools

import jax
import jax.numpy as jnp
from jax.experimental import pallas as pl
from jax.experimental.pallas import tpu as pltpu


# ----------------------------- Pallas kernel -------------------------------
def _segmenter_kernel(x_ref, wa_ref, ba_ref, w3_ref, code_ref):
    """Fused clusterer over a token tile.

       x_ref : (T, C)          f32 tokens (cast to bf16 in-kernel)
       wa_ref: (C, C + Dp)     bf16, [W2 | W1_padded]
       ba_ref: (1, C + Dp)     f32,  [b2 | (b1 + b3)_padded]
       w3_ref: (C, Dp)         bf16
       code_ref: (T, Dp)       f32 output (lane-dense, Dp multiple of 128)

       code = (x@W1 + b1+b3) + relu(x@W2 + b2) @ W3
    """
    C = w3_ref.shape[0]                          # static split point (channels)
    x = x_ref[...].astype(jnp.bfloat16)          # VPU cast, free next to MXU

    # One MXU pass for both matmuls that share x.
    y = jnp.dot(x, wa_ref[...], preferred_element_type=jnp.float32)
    y = y + ba_ref[...]                          # f32 accum + f32 bias

    h = jnp.maximum(y[:, :C], 0.0).astype(jnp.bfloat16)   # ReLU branch
    c1 = y[:, C:]                                          # linear branch (+b1+b3)

    c2 = jnp.dot(h, w3_ref[...], preferred_element_type=jnp.float32)
    code_ref[...] = (c1 + c2).astype(code_ref.dtype)


# ------------------------------ tile selection -------------------------------
def _pick_tile(n_tokens, target):
    """Pick a token tile.

    Preference order: (1) divides N exactly (no pad copy), (2) even grid step
    count (balanced across v7x's 2 TensorCores), (3) as large as possible
    (amortize the ~0.35us/step pipeline overhead) up to `target`.
    Returns (tile, n_pad)."""
    target = max(8, (target // 8) * 8)
    if n_tokens % 8 == 0:
        cands = [t for t in range(8, min(target, n_tokens) + 1, 8)
                 if n_tokens % t == 0 and (n_tokens // t >= 2 or t == n_tokens)]
        if cands:
            floor = min(target, n_tokens)
            even = [t for t in cands
                    if (n_tokens // t) % 2 == 0 and t * 4 >= floor]
            return (max(even) if even else max(cands)), n_tokens
    # Degenerate N: pad rows up (multiple of 16 keeps unmasked layouts even
    # if the input were ever narrowed to bf16).
    tile = min(target, max(16, (n_tokens + 1) // 2))
    tile = ((tile + 15) // 16) * 16
    return tile, pl.cdiv(n_tokens, tile) * tile


# ------------------------------ wrapper (hot path) ---------------------------
def segmenter_forward_pallas(x_tokens, packed, *, token_tile=1024):
    """x_tokens: (N, C) f32 tokens.
       Returns lane-padded code: (N, dim_pad) f32 (caller slices channels,
       folded into its own transpose/copy)."""
    N, C = x_tokens.shape
    dim_pad = packed["w3"].shape[1]
    Cp = packed["wa"].shape[1]                   # C + dim_pad

    tile, n_pad = _pick_tile(N, token_tile)
    x_in = x_tokens
    if n_pad != N:                               # only for degenerate N
        x_in = jnp.pad(x_tokens, ((0, n_pad - N), (0, 0)))

    grid = (n_pad // tile,)

    def const_spec(shape):
        # Weights/biases: constant index_map -> no re-DMA across grid steps.
        return pl.BlockSpec(shape, lambda i: (0, 0))

    code_flat = pl.pallas_call(
        _segmenter_kernel,
        out_shape=jax.ShapeDtypeStruct((n_pad, dim_pad), jnp.float32),
        grid_spec=pltpu.PrefetchScalarGridSpec(
            num_scalar_prefetch=0,
            grid=grid,
            in_specs=[
                pl.BlockSpec((tile, C), lambda i: (i, 0)),   # x tile
                const_spec((C, Cp)),                          # [W2 | W1p]
                const_spec((1, Cp)),                          # [b2 | (b1+b3)p]
                const_spec((C, dim_pad)),                     # W3p
            ],
            out_specs=pl.BlockSpec((tile, dim_pad), lambda i: (i, 0)),
        ),
        compiler_params=pltpu.CompilerParams(
            dimension_semantics=("parallel",),
            vmem_limit_bytes=48 * 1024 * 1024,
        ),
    )(x_in, packed["wa"], packed["ba"], packed["w3"])

    if n_pad != N:
        code_flat = code_flat[:N]
    return code_flat                              # (N, dim_pad), lane-padded


# ----------------------- DinoFeaturizer-level forward ------------------------
def dino_featurizer_forward(tokens, packed, *, feat_h, feat_w, dim,
                            token_tile=1024):
    """tokens: (B, 1 + h*w, C) synthetic ViT output (feat[0] of
       get_intermediate_feat).  Returns (image_feat NCHW, code NCHW), matching
       DinoFeaturizer.forward with cfg.dropout=False / eval-mode dropout.
       The hot path consumes the flat token matrix directly; the channel slice
       of the lane-padded code is folded into the single NCHW transpose."""
    B, _, C = tokens.shape
    patch_tokens = tokens[:, 1:, :]                               # (B, h*w, C)
    x_tokens = patch_tokens.reshape(B * feat_h * feat_w, C)       # free reshape

    code_padded = segmenter_forward_pallas(x_tokens, packed,
                                           token_tile=token_tile)  # (N, dim_pad)
    dim_pad = code_padded.shape[1]

    image_feat = jnp.transpose(
        patch_tokens.reshape(B, feat_h, feat_w, C), (0, 3, 1, 2))  # NCHW
    # Channel slice + NCHW transpose fuse into one copy under jit.
    code = jnp.transpose(
        code_padded.reshape(B, feat_h, feat_w, dim_pad)[..., :dim],
        (0, 3, 1, 2))                                              # NCHW
    return image_feat, code


# ------------------------------ parameter init ------------------------------
def init_params(key, n_feats, dim):
    """Conv2d-1x1 == dense; weights stored as (in, out) for x @ W, biases 1-D."""
    k1, k2, k3, k4, k5, k6 = jax.random.split(key, 6)

    def uniform(k, shape, fan_in):
        bound = 1.0 / jnp.sqrt(fan_in)
        return jax.random.uniform(k, shape, jnp.float32, -bound, bound)

    return {
        "w1": uniform(k1, (n_feats, dim), n_feats),
        "b1": uniform(k2, (dim,), n_feats),
        "w2": uniform(k3, (n_feats, n_feats), n_feats),
        "b2": uniform(k4, (n_feats,), n_feats),
        "w3": uniform(k5, (n_feats, dim), n_feats),
        "b3": uniform(k6, (dim,), n_feats),
    }


def pack_params(params):
    """Pack for the fused kernel:
       wa = [W2 | W1_pad] (bf16), ba = [b2 | (b1+b3)_pad] (f32), w3 = W3_pad (bf16).
       dim is zero-padded up to a multiple of 128 (not beyond) for lane-dense
       unmasked stores."""
    C, dim = params["w1"].shape
    dim_pad = max(128, ((dim + 127) // 128) * 128)

    w1p = jnp.zeros((C, dim_pad), jnp.float32).at[:, :dim].set(params["w1"])
    w3p = jnp.zeros((C, dim_pad), jnp.float32).at[:, :dim].set(params["w3"])
    b13 = jnp.zeros((dim_pad,), jnp.float32).at[:dim].set(
        params["b1"] + params["b3"])

    wa = jnp.concatenate([params["w2"], w1p], axis=1).astype(jnp.bfloat16)
    ba = jnp.concatenate([params["b2"], b13])[None, :].astype(jnp.float32)
    return {"wa": wa, "ba": ba, "w3": w3p.astype(jnp.bfloat16)}


# ------------------------------ pure-JAX reference ---------------------------
def segmenter_reference(x_tokens, params):
    """Mirrors the kernel's bf16 quantization (f32 accumulation)."""
    f32 = jnp.float32
    xb = x_tokens.astype(jnp.bfloat16).astype(f32)
    w1 = params["w1"].astype(jnp.bfloat16).astype(f32)
    w2 = params["w2"].astype(jnp.bfloat16).astype(f32)
    w3 = params["w3"].astype(jnp.bfloat16).astype(f32)
    c1 = xb @ w1 + params["b1"]
    h = jnp.maximum(xb @ w2 + params["b2"], 0.0)
    h = h.astype(jnp.bfloat16).astype(f32)
    c2 = h @ w3 + params["b3"]
    return c1 + c2


# ----------------------------------- main ------------------------------------
if __name__ == "__main__":
    key = jax.random.PRNGKey(0)
    k_tok, k_par = jax.random.split(key, 2)

    # vit_small / patch 8 stand-in at a small spatial size.
    B = 2
    n_feats = 384           # DINO vit_small feature dim (multiple of 128)
    dim = 70                # clusterer output dim (padded to 128 in-kernel)
    patch_size = 8
    H_img, W_img = 128, 256
    assert H_img % patch_size == 0 and W_img % patch_size == 0
    feat_h, feat_w = H_img // patch_size, W_img // patch_size   # 16 x 32
    # N = B * feat_h * feat_w = 1024 tokens -> tile 512, 2 even grid steps.

    # Synthetic ViT token features (cls token + patch tokens).
    tokens = jax.random.normal(
        k_tok, (B, 1 + feat_h * feat_w, n_feats), jnp.float32)

    params = init_params(k_par, n_feats, dim)
    packed = pack_params(params)

    fwd = jax.jit(functools.partial(
        dino_featurizer_forward, feat_h=feat_h, feat_w=feat_w, dim=dim,
        token_tile=1024))
    image_feat, code = fwd(tokens, packed)
    image_feat = jax.block_until_ready(image_feat)
    code = jax.block_until_ready(code)

    # Validate against the bf16-matched pure-JAX reference.
    x_tokens = tokens[:, 1:, :].reshape(B * feat_h * feat_w, n_feats)
    code_ref = segmenter_reference(x_tokens, params)
    code_ref = jnp.transpose(
        code_ref.reshape(B, feat_h, feat_w, dim), (0, 3, 1, 2))

    assert image_feat.shape == (B, n_feats, feat_h, feat_w)
    assert code.shape == (B, dim, feat_h, feat_w)
    err = float(jnp.max(jnp.abs(code - code_ref)))
    assert jnp.allclose(code, code_ref, atol=1e-2, rtol=1e-2), err

    print("KERNEL_OK")
</pallas_src>

<mosaic_0001>
module attributes {stable_mosaic.version = 11 : i64} {
  func.func @_segmenter_kernel(%arg0: i32, %arg1: memref<512x384xf32, #tpu.memory_space<vmem>>, %arg2: memref<384x512xbf16, #tpu.memory_space<vmem>>, %arg3: memref<1x512xf32, #tpu.memory_space<vmem>>, %arg4: memref<384x128xbf16, #tpu.memory_space<vmem>>, %arg5: memref<512x128xf32, #tpu.memory_space<vmem>>) attributes {dimension_semantics = [#tpu.dimension_semantics<parallel>], iteration_bounds = array<i64: 2>, scalar_prefetch = 0 : i64, scratch_operands = 0 : i64, tpu.core_type = #tpu.core_type<tc>, window_params = [{transform_indices = @transform_0, window_bounds = array<i64: 512, 384>}, {pipeline_mode = #tpu.pipeline_mode<synchronous>, transform_indices = @transform_1, window_bounds = array<i64: 384, 512>}, {pipeline_mode = #tpu.pipeline_mode<synchronous>, transform_indices = @transform_2, window_bounds = array<i64: 1, 512>}, {pipeline_mode = #tpu.pipeline_mode<synchronous>, transform_indices = @transform_3, window_bounds = array<i64: 384, 128>}, {transform_indices = @transform_4, window_bounds = array<i64: 512, 128>}]} {
    %c0 = arith.constant 0 : index
    %c0_0 = arith.constant 0 : index
    %0 = vector.load %arg1[%c0, %c0_0] : memref<512x384xf32, #tpu.memory_space<vmem>>, vector<512x384xf32>
    %1 = arith.truncf %0 : vector<512x384xf32> to vector<512x384xbf16>
    %c0_1 = arith.constant 0 : index
    %c0_2 = arith.constant 0 : index
    %2 = vector.load %arg2[%c0_1, %c0_2] : memref<384x512xbf16, #tpu.memory_space<vmem>>, vector<384x512xbf16>
    %cst = arith.constant dense<0.000000e+00> : vector<512x512xf32>
    %3 = tpu.matmul %1, %2, %cst {dimension_numbers = #tpu.dot_dimension_numbers<[1], [0], [0], [1], [0, 0, 1, 1], [], []>} : vector<512x384xbf16>, vector<384x512xbf16>, vector<512x512xf32> -> vector<512x512xf32>
    %c0_3 = arith.constant 0 : index
    %c0_4 = arith.constant 0 : index
    %4 = vector.load %arg3[%c0_3, %c0_4] : memref<1x512xf32, #tpu.memory_space<vmem>>, vector<1x512xf32>
    %5 = vector.broadcast %4 : vector<1x512xf32> to vector<512x512xf32>
    %6 = arith.addf %3, %5 : vector<512x512xf32>
    %7 = vector.extract_strided_slice %6 {offsets = [0, 0], sizes = [512, 384], strides = [1, 1]} : vector<512x512xf32> to vector<512x384xf32>
    %cst_5 = arith.constant 0.000000e+00 : f32
    %8 = vector.broadcast %cst_5 : f32 to vector<512x384xf32>
    %9 = arith.maximumf %7, %8 : vector<512x384xf32>
    %10 = arith.truncf %9 : vector<512x384xf32> to vector<512x384xbf16>
    %11 = vector.extract_strided_slice %6 {offsets = [0, 384], sizes = [512, 128], strides = [1, 1]} : vector<512x512xf32> to vector<512x128xf32>
    %c0_6 = arith.constant 0 : index
    %c0_7 = arith.constant 0 : index
    %12 = vector.load %arg4[%c0_6, %c0_7] : memref<384x128xbf16, #tpu.memory_space<vmem>>, vector<384x128xbf16>
    %cst_8 = arith.constant dense<0.000000e+00> : vector<512x128xf32>
    %13 = tpu.matmul %10, %12, %cst_8 {dimension_numbers = #tpu.dot_dimension_numbers<[1], [0], [0], [1], [0, 0, 1, 1], [], []>} : vector<512x384xbf16>, vector<384x128xbf16>, vector<512x128xf32> -> vector<512x128xf32>
    %14 = arith.addf %11, %13 : vector<512x128xf32>
    %c0_9 = arith.constant 0 : index
    %c0_10 = arith.constant 0 : index
    %15 = vector.load %arg5[%c0_9, %c0_10] : memref<512x128xf32, #tpu.memory_space<vmem>>, vector<512x128xf32>
    tpu.vector_store %arg5[%c0_9, %c0_10], %14 {strides = array<i32>} : memref<512x128xf32, #tpu.memory_space<vmem>>, vector<512x128xf32>,
    return
  }
  func.func @transform_0(%arg0: i32) -> (i32, i32) {
    %c0_i32 = arith.constant 0 : i32
    %c0_i32_0 = arith.constant 0 : i32
    return %arg0, %c0_i32 : i32, i32
  }
  func.func @transform_1(%arg0: i32) -> (i32, i32) {
    %c0_i32 = arith.constant 0 : i32
    %c0_i32_0 = arith.constant 0 : i32
    %c0_i32_1 = arith.constant 0 : i32
    return %c0_i32, %c0_i32_0 : i32, i32
  }
  func.func @transform_2(%arg0: i32) -> (i32, i32) {
    %c0_i32 = arith.constant 0 : i32
    %c0_i32_0 = arith.constant 0 : i32
    %c0_i32_1 = arith.constant 0 : i32
    return %c0_i32, %c0_i32_0 : i32, i32
  }
  func.func @transform_3(%arg0: i32) -> (i32, i32) {
    %c0_i32 = arith.constant 0 : i32
    %c0_i32_0 = arith.constant 0 : i32
    %c0_i32_1 = arith.constant 0 : i32
    return %c0_i32, %c0_i32_0 : i32, i32
  }
  func.func @transform_4(%arg0: i32) -> (i32, i32) {
    %c0_i32 = arith.constant 0 : i32
    %c0_i32_0 = arith.constant 0 : i32
    return %arg0, %c0_i32 : i32, i32
  }
}

</mosaic_0001>

<bundles_post_ra>
// kernel: dino_featurizer_forward.1
= control target key start
LH: loop header
LB: loop body
LE: loop exit
PB: predicated region body
PF: predicated region fallthrough
CT: control target
= control target key end

     0   :  { %s4737_s15 = smov 0   ;;  %s6759_s0 = inlined_call_operand.vmem [shape: f32[1024,384], index: 0, kind: input, shape index: {}]   ;;  %s6760_s1 = inlined_call_operand.vmem [shape: bf16[384,512], index: 1, kind: input, shape index: {}]   ;;  %s6761_s2 = inlined_call_operand.vmem [shape: f32[1,512], index: 2, kind: input, shape index: {}]   ;;  %s6762_s3 = inlined_call_operand.vmem [shape: bf16[384,128], index: 3, kind: input, shape index: {}]   ;;  %s6763_s4 = inlined_call_operand.vmem [shape: f32[1024,128], index: 4, kind: output, shape index: {}]  }
   0x1 LB: > { %s3745_s16 = sadd.s32 4294967295, %s4709_s15   ;;  %p3749_p0 = scmp.ge.s32.totalorder %s4709_s15, 1  ;;  %s4709_s15 = sphi %s4737_s15, %s14_s15  }
   0x2   : > { %p164_p1 = scmp.lt.s32.totalorder %s4709_s15, 3 }
   0x4   : > { %p165_p2 = pnand %p3749_p0, %p164_p1 }
   0x6   : > { %168 = sbr.rel (%p165_p2) target bundleno = 1071 (0x42f), region = 36 }
   0xd   : > { %v4534_v0 = vld [vmem:[%s6760_s1 + $0x4] ss:$16 sps:$4 sm:$0xff]   ;;  %v6773_v2 = vmov 0   ;;  %v4538_v3 = vld [vmem:[%s6760_s1] ss:$16 sps:$4 sm:$0xff]   ;;  %s3750_s21 = sshll.u32 %s3745_s16, 6 }
   0xe   : > { %v4751_v1 = vld [vmem:[%s6760_s1 + $0x204] ss:$16 sps:$4 sm:$0xff]   ;;  %1696 = vmatprep.mubr.bf16.mxu1 %v6773_v2  ;;  %1091 = vmatprep.subr.bf16.mxu0 %v4534_v0  ;;  %v4760_v4 = vld [vmem:[%s6760_s1 + $0x200] ss:$16 sps:$4 sm:$0xff]   ;;  %p192_p3 = scmp.lt.s32.totalorder %s3750_s21, 127 }
   0xf   : > { %3996 = vmatprep.subr.bf16.mxu1 %v4751_v1  ;;  %v4540_v5 = vld [vmem:[%s6760_s1 + $0x24] ss:$16 sps:$4 sm:$0xff]   ;;  %1092 = vmatpush1.bf16.msra.mxu0 %v4538_v3  ;;  %v4544_v7 = vld [vmem:[%s6760_s1 + $0x20] ss:$16 sps:$4 sm:$0xff]   ;;  %v4586_v36 = vld [vmem:[%s6760_s1 + $0xc] ss:$16 sps:$4 sm:$0xff]  }
  0x10   : > { %4004 = vmatpush1.bf16.msra.mxu1 %v4760_v4  ;;  %v4770_v6 = vld [vmem:[%s6760_s1 + $0x224] ss:$16 sps:$4 sm:$0xff]   ;;  %1093 = vmatprep.subr.bf16.mxu0 %v4540_v5  ;;  %v4778_v8 = vld [vmem:[%s6760_s1 + $0x220] ss:$16 sps:$4 sm:$0xff]   ;;  %s6872_s21 = smov (!%p192_p3, %s3750_s21), 127 }
  0x11   : > { %3997 = vmatprep.subr.bf16.mxu1 %v4770_v6  ;;  %v4546_v9 = vld [vmem:[%s6760_s1 + $0x44] ss:$16 sps:$4 sm:$0xff]   ;;  %v4550_v11 = vld [vmem:[%s6760_s1 + $0x40] ss:$16 sps:$4 sm:$0xff]   ;;  %s4524_s22 = smul.u32 24, %s6872_s21  ;;  %s3753_s5 = sshll.u32 %s6872_s21, 3 }
  0x12   : > { %v4787_v10 = vld [vmem:[%s6760_s1 + $0x244] ss:$16 sps:$4 sm:$0xff]   ;;  %v4795_v12 = vld [vmem:[%s6760_s1 + $0x240] ss:$16 sps:$4 sm:$0xff]   ;;  %v4584_v38 = vld [vmem:[%s6760_s1 + $0x8] ss:$16 sps:$4 sm:$0xff]   ;;  %s6425_s9 = scalar_lea.vmem %s6763_s4, %s3753_s5 }
  0x13   : > { %1094 = vmatpush1.bf16.msra.mxu0 %v4544_v7  ;;  %v4552_v13 = vld [vmem:[%s6760_s1 + $0x64] ss:$16 sps:$4 sm:$0xff]   ;;  %v4556_v15 = vld [vmem:[%s6760_s1 + $0x60] ss:$16 sps:$4 sm:$0xff]   ;;  %s4887_s6 = scalar_lea.vmem %s6759_s0, %s4524_s22  ;;  %v4593_v41 = vld [vmem:[%s6760_s1 + $0x2c] ss:$16 sps:$4 sm:$0xff]  }
  0x14   : > { %4005 = vmatpush1.bf16.msra.mxu1 %v4778_v8  ;;  %1095 = vmatprep.subr.bf16.mxu0 %v4546_v9  ;;  %v4805_v14 = vld [vmem:[%s6760_s1 + $0x264] ss:$16 sps:$4 sm:$0xff]   ;;  %v4816_v16 = vld [vmem:[%s6760_s1 + $0x260] ss:$16 sps:$4 sm:$0xff]   ;;  %v342_v35 = vld [vmem:[%s4887_s6 + $0x448] sm:$0xff] }
  0x15   : > { %3998 = vmatprep.subr.bf16.mxu1 %v4787_v10  ;;  %v4558_v17 = vld [vmem:[%s6760_s1 + $0x84] ss:$16 sps:$4 sm:$0xff]   ;;  %v4562_v19 = vld [vmem:[%s6760_s1 + $0x80] ss:$16 sps:$4 sm:$0xff]   ;;  %v4591_v43 = vld [vmem:[%s6760_s1 + $0x28] ss:$16 sps:$4 sm:$0xff]  }
  0x16   : > { %v4825_v18 = vld [vmem:[%s6760_s1 + $0x284] ss:$16 sps:$4 sm:$0xff]   ;;  %v4833_v20 = vld [vmem:[%s6760_s1 + $0x280] ss:$16 sps:$4 sm:$0xff]   ;;  %v348_v45 = vld [vmem:[%s4887_s6 + $0x478] sm:$0xff] }
  0x17   : > { %1096 = vmatpush1.bf16.msra.mxu0 %v4550_v11  ;;  %v4564_v21 = vld [vmem:[%s6760_s1 + $0xa4] ss:$16 sps:$4 sm:$0xff]   ;;  %v4568_v23 = vld [vmem:[%s6760_s1 + $0xa0] ss:$16 sps:$4 sm:$0xff]   ;;  %v4599_v47 = vld [vmem:[%s6760_s1 + $0x4c] ss:$16 sps:$4 sm:$0xff]  }
  0x18   : > { %4006 = vmatpush1.bf16.msra.mxu1 %v4795_v12  ;;  %1097 = vmatprep.subr.bf16.mxu0 %v4552_v13  ;;  %v4843_v22 = vld [vmem:[%s6760_s1 + $0x2a4] ss:$16 sps:$4 sm:$0xff]   ;;  %v4854_v24 = vld [vmem:[%s6760_s1 + $0x2a0] ss:$16 sps:$4 sm:$0xff]   ;;  %v4597_v50 = vld [vmem:[%s6760_s1 + $0x48] ss:$16 sps:$4 sm:$0xff]  }
  0x19   : > { %3999 = vmatprep.subr.bf16.mxu1 %v4805_v14  ;;  %v4570_v25 = vld [vmem:[%s6760_s1 + $0xc4] ss:$16 sps:$4 sm:$0xff]   ;;  %v4574_v27 = vld [vmem:[%s6760_s1 + $0xc0] ss:$16 sps:$4 sm:$0xff]   ;;  %v4605_v53 = vld [vmem:[%s6760_s1 + $0x6c] ss:$16 sps:$4 sm:$0xff]  }
  0x1a   : > { %v4863_v26 = vld [vmem:[%s6760_s1 + $0x2c4] ss:$16 sps:$4 sm:$0xff]   ;;  %v4873_v28 = vld [vmem:[%s6760_s1 + $0x2c0] ss:$16 sps:$4 sm:$0xff]   ;;  %v4603_v54 = vld [vmem:[%s6760_s1 + $0x68] ss:$16 sps:$4 sm:$0xff]  }
  0x1b   : > { %1098 = vmatpush1.bf16.msra.mxu0 %v4556_v15  ;;  %v4576_v29 = vld [vmem:[%s6760_s1 + $0xe4] ss:$16 sps:$4 sm:$0xff]   ;;  %v4580_v31 = vld [vmem:[%s6760_s1 + $0xe0] ss:$16 sps:$4 sm:$0xff]   ;;  %v354_v56 = vld [vmem:[%s4887_s6 + $0x4a8] sm:$0xff] }
  0x1c   : > { %4007 = vmatpush1.bf16.msra.mxu1 %v4816_v16  ;;  %1099 = vmatprep.subr.bf16.mxu0 %v4558_v17  ;;  %v4882_v30 = vld [vmem:[%s6760_s1 + $0x2e4] ss:$16 sps:$4 sm:$0xff]   ;;  %v4895_v32 = vld [vmem:[%s6760_s1 + $0x2e0] ss:$16 sps:$4 sm:$0xff]   ;;  %v206_v57 = vld [vmem:[%s4887_s6 + $0x8] sm:$0xff] }
  0x1d   : > { %4000 = vmatprep.subr.bf16.mxu1 %v4825_v18  ;;  %v4582_v33 = vld [vmem:[%s6760_s1 + $0x104] ss:$16 sps:$4 sm:$0xff]   ;;  %v4587_v39 = vld [vmem:[%s6760_s1 + $0x100] ss:$16 sps:$4 sm:$0xff]   ;;  %v4613_v60 = vld [vmem:[%s6760_s1 + $0x8c] ss:$16 sps:$4 sm:$0xff]  }
  0x1e   : > { %v339_v34 = vld [vmem:[%s4887_s6 + $0x430] sm:$0xff]  ;;  %v345_v44 = vld [vmem:[%s4887_s6 + $0x460] sm:$0xff]  ;;  %v4611_v0 = vld [vmem:[%s6760_s1 + $0x88] ss:$16 sps:$4 sm:$0xff]  }
  0x1f   : > { %1100 = vmatpush1.bf16.msra.mxu0 %v4562_v19  ;;  %v4907_v37 = vpack.c.bf16 %v342_v35, %v339_v34  ;;  %v4588_v40 = vld [vmem:[%s6760_s1 + $0x124] ss:$16 sps:$4 sm:$0xff]   ;;  %v4590_v42 = vld [vmem:[%s6760_s1 + $0x120] ss:$16 sps:$4 sm:$0xff]   ;;  %v4938_v48 = vpack.c.bf16 %v348_v45, %v345_v44  ;;  %v4620_v5 = vld [vmem:[%s6760_s1 + $0xac] ss:$16 sps:$4 sm:$0xff]  }
  0x20   : > { %4008 = vmatpush1.bf16.msra.mxu1 %v4833_v20  ;;  %1101 = vmatprep.subr.bf16.mxu0 %v4564_v21  ;;  %v4594_v46 = vld [vmem:[%s6760_s1 + $0x144] ss:$16 sps:$4 sm:$0xff]   ;;  %v4596_v49 = vld [vmem:[%s6760_s1 + $0x140] ss:$16 sps:$4 sm:$0xff]   ;;  %v360_v11 = vld [vmem:[%s4887_s6 + $0x4d8] sm:$0xff] }
  0x21   : > { %4001 = vmatprep.subr.bf16.mxu1 %v4843_v22  ;;  %6778 = vst [vmem:[#allocation2_spill] sm:$0xff] %v4938_v48  ;;  %v4600_v51 = vld [vmem:[%s6760_s1 + $0x164] ss:$16 sps:$4 sm:$0xff]   ;;  %v4602_v52 = vld [vmem:[%s6760_s1 + $0x160] ss:$16 sps:$4 sm:$0xff]   ;;  %v366_v35 = vld [vmem:[%s4887_s6 + $0x508] sm:$0xff] }
  0x22   : > { %v351_v55 = vld [vmem:[%s4887_s6 + $0x490] sm:$0xff]  ;;  %v209_v58 = vld [vmem:[%s4887_s6 + $0x20] sm:$0xff]  ;;  %v4618_v13 = vld [vmem:[%s6760_s1 + $0xa8] ss:$16 sps:$4 sm:$0xff]  }
  0x23   : > { %1102 = vmatpush1.bf16.msra.mxu0 %v4568_v23  ;;  %v4606_v59 = vld [vmem:[%s6760_s1 + $0x184] ss:$16 sps:$4 sm:$0xff]   ;;  %v4970_v61 = vpack.c.bf16 %v209_v58, %v206_v57  ;;  %v4972_v62 = vpack.c.bf16 %v354_v56, %v351_v55  ;;  %v4608_v63 = vld [vmem:[%s6760_s1 + $0x180] ss:$16 sps:$4 sm:$0xff]   ;;  %v4626_v17 = vld [vmem:[%s6760_s1 + $0xcc] ss:$16 sps:$4 sm:$0xff]  }
  0x24   : > { %4009 = vmatpush1.bf16.msra.mxu1 %v4854_v24  ;;  %1103 = vmatprep.subr.bf16.mxu0 %v4570_v25  ;;  %v4609_v3 = vld [vmem:[%s6760_s1 + $0x1a4] ss:$16 sps:$4 sm:$0xff]   ;;  %v4614_v7 = vld [vmem:[%s6760_s1 + $0x1a0] ss:$16 sps:$4 sm:$0xff]   ;;  %v4624_v25 = vld [vmem:[%s6760_s1 + $0xc8] ss:$16 sps:$4 sm:$0xff]  }
  0x25   : > { %4002 = vmatprep.subr.bf16.mxu1 %v4863_v26  ;;  %6779 = vst [vmem:[#allocation3_spill] sm:$0xff] %v4972_v62  ;;  %1123 = vmatprep.mubr.bf16.mxu0 %v4970_v61  ;;  %v357_v9 = vld [vmem:[%s4887_s6 + $0x4c0] sm:$0xff]  ;;  %v363_v34 = vld [vmem:[%s4887_s6 + $0x4f0] sm:$0xff]  ;;  %v4630_v44 = vld [vmem:[%s6760_s1 + $0x108] ss:$16 sps:$4 sm:$0xff]  }
  0x26   : > { %v4615_v15 = vld [vmem:[%s6760_s1 + $0x1c4] ss:$16 sps:$4 sm:$0xff]   ;;  %v5003_v19 = vpack.c.bf16 %v360_v11, %v357_v9  ;;  %v4617_v21 = vld [vmem:[%s6760_s1 + $0x1c0] ss:$16 sps:$4 sm:$0xff]   ;;  %v220_v58 = vld [vmem:[%s4887_s6 + $0x78] sm:$0xff] }
  0x27   : > { %1104 = vmatpush1.bf16.msra.mxu0 %v4574_v27  ;;  %v4621_v23 = vld [vmem:[%s6760_s1 + $0x1e4] ss:$16 sps:$4 sm:$0xff]   ;;  %v4629_v27 = vld [vmem:[%s6760_s1 + $0xec] ss:$16 sps:$4 sm:$0xff]  }
  0x28   : > { %4010 = vmatpush1.bf16.msra.mxu1 %v4873_v28  ;;  %1105 = vmatprep.subr.bf16.mxu0 %v4576_v29  ;;  %6780 = vst [vmem:[#allocation4_spill] sm:$0xff] %v5003_v19  ;;  %v4623_v29 = vld [vmem:[%s6760_s1 + $0x1e0] ss:$16 sps:$4 sm:$0xff]   ;;  %v226_v11 = vld [vmem:[%s4887_s6 + $0xa8] sm:$0xff] }
  0x29   : > { %4003 = vmatprep.subr.bf16.mxu1 %v4882_v30  ;;  %v211_v45 = vld [vmem:[%s4887_s6 + $0x30] sm:$0xff]  ;;  %v217_v57 = vld [vmem:[%s4887_s6 + $0x60] sm:$0xff] }
  0x2a   : > { %v223_v9 = vld [vmem:[%s4887_s6 + $0x90] sm:$0xff] }
  0x2b   : > { %1106 = vmatpush1.bf16.msra.mxu0 %v4580_v31  ;;  %v205_v31 = vld [vmem:[%s4887_s6] sm:$0xff] }
  0x2c   : > { %4011 = vmatpush1.bf16.msra.mxu1 %v4895_v32  ;;  %1107 = vmatprep.subr.bf16.mxu0 %v4582_v33  ;;  %v208_v33 = vld [vmem:[%s4887_s6 + $0x18] sm:$0xff] }
  0x2d   : > { %1797 = vmatprep.subr.bf16.mxu1 %v4586_v36  ;;  %v4627_v36 = vld [vmem:[%s6760_s1 + $0xe8] ss:$16 sps:$4 sm:$0xff]  }
  0x2f   : > { %1697 = vmatmul.mubr.bf16.vlgmr.msra.gmra.mrb[0].mxu1 %v4907_v37  ;;  %1108 = vmatpush1.bf16.msra.mxu0 %v4587_v39  ;;  %v215_v39 = vld [vmem:[%s4887_s6 + $0x50] sm:$0xff] }
  0x30   : > { %1798 = vmatpush1.bf16.msra.mxu1 %v4584_v38  ;;  %1109 = vmatprep.subr.bf16.mxu0 %v4588_v40  ;;  %v212_v38 = vld [vmem:[%s4887_s6 + $0x38] sm:$0xff] }
  0x31   : > { %1799 = vmatprep.subr.bf16.mxu1 %v4593_v41  ;;  %1706 = vmatprep.mubr.bf16.mxu1 %v6773_v2  ;;  %v4632_v40 = vld [vmem:[%s6760_s1 + $0x10c] ss:$16 sps:$4 sm:$0xff]   ;;  %v5034_v41 = vpack.c.bf16 %v208_v33, %v205_v31  ;;  %v387_v33 = vld [vmem:[%s4887_s6 + $0x5b0] sm:$0xff] }
  0x32   : > { %v232_v31 = vld [vmem:[%s4887_s6 + $0xd8] sm:$0xff] }
  0x33   : > { %1110 = vmatpush1.bf16.msra.mxu0 %v4590_v42  ;;  %v5036_v42 = vpack.c.bf16 %v366_v35, %v363_v34  ;;  %v390_v34 = vld [vmem:[%s4887_s6 + $0x5c8] sm:$0xff]  ;;  %v239_v35 = vld [vmem:[%s4887_s6 + $0x110] sm:$0xff] }
  0x34   : > { %1800 = vmatpush1.bf16.msra.mxu1 %v4591_v43  ;;  %1111 = vmatprep.subr.bf16.mxu0 %v4594_v46  ;;  %v5038_v43 = vpack.c.bf16 %v215_v39, %v212_v38  ;;  %v4635_v46 = vld [vmem:[%s6760_s1 + $0x12c] ss:$16 sps:$4 sm:$0xff]   ;;  %v5163_v39 = vpack.c.bf16 %v390_v34, %v387_v33  ;;  %v275_v34 = vld [vmem:[%s4887_s6 + $0x230] sm:$0xff] }
  0x35   : > { %1801 = vmatprep.subr.bf16.mxu1 %v4599_v47  ;;  %6781 = vst [vmem:[#allocation5_spill] sm:$0xff] %v5036_v42  ;;  %v214_v47 = vld [vmem:[%s4887_s6 + $0x48] sm:$0xff]  ;;  %v272_v33 = vld [vmem:[%s4887_s6 + $0x218] sm:$0xff] }
  0x36   : > { %6785 = vst [vmem:[#allocation9_spill] sm:$0xff] %v5163_v39 }
  0x37   : > { %1707 = vmatmul.mubr.bf16.gmra.mrb[4].mxu1 %v4938_v48  ;;  %1112 = vmatpush1.bf16.msra.mxu0 %v4596_v49  ;;  %v369_v49 = vld [vmem:[%s4887_s6 + $0x520] sm:$0xff] }
  0x38   : > { %1802 = vmatpush1.bf16.msra.mxu1 %v4597_v50  ;;  %1113 = vmatprep.subr.bf16.mxu0 %v4600_v51  ;;  %v372_v50 = vld [vmem:[%s4887_s6 + $0x538] sm:$0xff]  ;;  %v218_v51 = vld [vmem:[%s4887_s6 + $0x68] sm:$0xff] }
  0x39   : > { %1716 = vmatprep.mubr.bf16.mxu1 %v6773_v2  ;;  %1803 = vmatprep.subr.bf16.mxu1 %v4605_v53  ;;  %v4638_v53 = vld [vmem:[%s6760_s1 + $0x14c] ss:$16 sps:$4 sm:$0xff]   ;;  %v5067_v55 = vpack.c.bf16 %v372_v50, %v369_v49 }
  0x3b   : > { %1114 = vmatpush1.bf16.msra.mxu0 %v4602_v52  ;;  %v221_v52 = vld [vmem:[%s4887_s6 + $0x80] sm:$0xff]  ;;  %6782 = vst [vmem:[#allocation6_spill] sm:$0xff] %v5067_v55 }
  0x3c   : > { %1804 = vmatpush1.bf16.msra.mxu1 %v4603_v54  ;;  %1115 = vmatprep.subr.bf16.mxu0 %v4606_v59  ;;  %v5065_v54 = vpack.c.bf16 %v214_v47, %v211_v45  ;;  %v5069_v56 = vpack.c.bf16 %v221_v52, %v218_v51  ;;  %v375_v59 = vld [vmem:[%s4887_s6 + $0x550] sm:$0xff]  ;;  %v238_v45 = vld [vmem:[%s4887_s6 + $0x108] sm:$0xff]  ;;  %v244_v51 = vld [vmem:[%s4887_s6 + $0x138] sm:$0xff] }
  0x3d   : > { %1805 = vmatprep.subr.bf16.mxu1 %v4613_v60  ;;  %v378_v60 = vld [vmem:[%s4887_s6 + $0x568] sm:$0xff]  ;;  %v248_v52 = vld [vmem:[%s4887_s6 + $0x158] sm:$0xff] }
  0x3f   : > { %1717 = vmatmul.mubr.bf16.gmra.mrb[8].mxu1 %v4972_v62  ;;  %1116 = vmatpush1.bf16.msra.mxu0 %v4608_v63  ;;  %v227_v63 = vld [vmem:[%s4887_s6 + $0xb0] sm:$0xff] }
  0x40   : > { %1806 = vmatpush1.bf16.msra.mxu1 %v4611_v0  ;;  %1117 = vmatprep.subr.bf16.mxu0 %v4609_v3  ;;  %v4639_v0 = vld [vmem:[%s6760_s1 + $0x168] ss:$16 sps:$4 sm:$0xff]   ;;  %v5097_v3 = vpack.c.bf16 %v220_v58, %v217_v57  ;;  %v4659_v57 = vld [vmem:[%s6760_s1 + $0x22c] ss:$16 sps:$4 sm:$0xff]  }
  0x41   : > { %1726 = vmatprep.mubr.bf16.mxu1 %v6773_v2  ;;  %1807 = vmatprep.subr.bf16.mxu1 %v4620_v5  ;;  %v5099_v5 = vpack.c.bf16 %v378_v60, %v375_v59  ;;  %v250_v59 = vld [vmem:[%s4887_s6 + $0x168] sm:$0xff] }
  0x42   : > { %v4657_v60 = vld [vmem:[%s6760_s1 + $0x228] ss:$16 sps:$4 sm:$0xff]  }
  0x43   : > { %1118 = vmatpush1.bf16.msra.mxu0 %v4614_v7  ;;  %6783 = vst [vmem:[#allocation7_spill] sm:$0xff] %v5099_v5 }
  0x44   : > { %1808 = vmatpush1.bf16.msra.mxu1 %v4618_v13  ;;  %1119 = vmatprep.subr.bf16.mxu0 %v4615_v15  ;;  %v381_v13 = vld [vmem:[%s4887_s6 + $0x580] sm:$0xff]  ;;  %v230_v15 = vld [vmem:[%s4887_s6 + $0xc8] sm:$0xff] }
  0x45   : > { %1809 = vmatprep.subr.bf16.mxu1 %v4626_v17  ;;  %v233_v17 = vld [vmem:[%s4887_s6 + $0xe0] sm:$0xff] }
  0x47   : > { %1727 = vmatmul.mubr.bf16.gmra.mrb[12].mxu1 %v5003_v19  ;;  %1120 = vmatpush1.bf16.msra.mxu0 %v4617_v21  ;;  %v4650_v21 = vld [vmem:[%s6760_s1 + $0x1cc] ss:$16 sps:$4 sm:$0xff]  }
  0x48   : > { %1736 = vmatprep.mubr.bf16.mxu1 %v6773_v2  ;;  %1121 = vmatprep.subr.bf16.mxu0 %v4621_v23  ;;  %v5129_v23 = vpack.c.bf16 %v226_v11, %v223_v9  ;;  %v256_v9 = vld [vmem:[%s4887_s6 + $0x198] sm:$0xff] }
  0x49   : > { %1810 = vmatpush1.bf16.msra.mxu1 %v4624_v25  ;;  %v260_v11 = vld [vmem:[%s4887_s6 + $0x1b8] sm:$0xff] }
  0x4a   : > { %1811 = vmatprep.subr.bf16.mxu1 %v4629_v27  ;;  %v5133_v27 = vpack.c.bf16 %v233_v17, %v230_v15  ;;  %v4666_v17 = vld [vmem:[%s6760_s1 + $0x288] ss:$16 sps:$4 sm:$0xff]  }
  0x4b   : > { %1122 = vmatpush1.bf16.msra.mxu0 %v4623_v29  ;;  %v229_v29 = vld [vmem:[%s4887_s6 + $0xc0] sm:$0xff] }
  0x4c   : > { %1444 = vmatprep.subr.bf16.mxu0 %v4751_v1  ;;  %v4633_v1 = vld [vmem:[%s6760_s1 + $0x128] ss:$16 sps:$4 sm:$0xff]   ;;  %v5161_v38 = vpack.c.bf16 %v232_v31, %v229_v29  ;;  %v269_v29 = vld [vmem:[%s4887_s6 + $0x200] sm:$0xff] }
  0x4d   : > { %1812 = vmatpush1.bf16.msra.mxu1 %v4627_v36  ;;  %v4651_v36 = vld [vmem:[%s6760_s1 + $0x1e8] ss:$16 sps:$4 sm:$0xff]  }
  0x4e   : > { %1813 = vmatprep.subr.bf16.mxu1 %v4632_v40  ;;  %1124 = vmatmul.mubr.bf16.vlgmr.msra.gmra.mrb[0].mxu0 %v5034_v41 }
  0x4f   : > { %1737 = vmatmul.mubr.bf16.gmra.mrb[16].mxu1 %v5036_v42  ;;  %1133 = vmatprep.mubr.bf16.mxu0 %v5038_v43 }
  0x50   : > { %1746 = vmatprep.mubr.bf16.mxu1 %v6773_v2  ;;  %1445 = vmatpush1.bf16.msra.mxu0 %v4760_v4  ;;  %v4636_v4 = vld [vmem:[%s6760_s1 + $0x148] ss:$16 sps:$4 sm:$0xff]  }
  0x51   : > { %1814 = vmatpush1.bf16.msra.mxu1 %v4630_v44  ;;  %1446 = vmatprep.subr.bf16.mxu0 %v4770_v6  ;;  %v4641_v6 = vld [vmem:[%s6760_s1 + $0x16c] ss:$16 sps:$4 sm:$0xff]   ;;  %v235_v44 = vld [vmem:[%s4887_s6 + $0xf0] sm:$0xff] }
  0x52   : > { %1815 = vmatprep.subr.bf16.mxu1 %v4635_v46  ;;  %v245_v46 = vld [vmem:[%s4887_s6 + $0x140] sm:$0xff]  ;;  %v5179_v47 = vpack.c.bf16 %v238_v45, %v235_v44  ;;  %v278_v44 = vld [vmem:[%s4887_s6 + $0x248] sm:$0xff] }
  0x54   : > { %1447 = vmatpush1.bf16.msra.mxu0 %v4778_v8  ;;  %v224_v8 = vld [vmem:[%s4887_s6 + $0x98] sm:$0xff] }
  0x55   : > { %1816 = vmatpush1.bf16.msra.mxu1 %v4633_v1  ;;  %1448 = vmatprep.subr.bf16.mxu0 %v4787_v10  ;;  %v4644_v10 = vld [vmem:[%s6760_s1 + $0x18c] ss:$16 sps:$4 sm:$0xff]   ;;  %v5101_v7 = vpack.c.bf16 %v227_v63, %v224_v8  ;;  %v241_v1 = vld [vmem:[%s4887_s6 + $0x120] sm:$0xff] }
  0x56   : > { %1817 = vmatprep.subr.bf16.mxu1 %v4638_v53  ;;  %1134 = vmatmul.mubr.bf16.gmra.mrb[4].mxu0 %v5065_v54  ;;  %v251_v53 = vld [vmem:[%s4887_s6 + $0x170] sm:$0xff]  ;;  %v254_v8 = vld [vmem:[%s4887_s6 + $0x188] sm:$0xff]  ;;  %v257_v63 = vld [vmem:[%s4887_s6 + $0x1a0] sm:$0xff] }
  0x57   : > { %1747 = vmatmul.mubr.bf16.gmra.mrb[20].mxu1 %v5067_v55  ;;  %1143 = vmatprep.mubr.bf16.mxu0 %v5069_v56  ;;  %v5201_v58 = vpack.c.bf16 %v251_v53, %v248_v52  ;;  %v290_v52 = vld [vmem:[%s4887_s6 + $0x2a8] sm:$0xff]  ;;  %v293_v53 = vld [vmem:[%s4887_s6 + $0x2c0] sm:$0xff] }
  0x58   : > { %1756 = vmatprep.mubr.bf16.mxu1 %v6773_v2  ;;  %1449 = vmatpush1.bf16.msra.mxu0 %v4795_v12  ;;  %v4642_v12 = vld [vmem:[%s6760_s1 + $0x188] ss:$16 sps:$4 sm:$0xff]  }
  0x59   : > { %1818 = vmatpush1.bf16.msra.mxu1 %v4636_v4  ;;  %1450 = vmatprep.subr.bf16.mxu0 %v4805_v14  ;;  %v4647_v14 = vld [vmem:[%s6760_s1 + $0x1ac] ss:$16 sps:$4 sm:$0xff]   ;;  %v4654_v4 = vld [vmem:[%s6760_s1 + $0x208] ss:$16 sps:$4 sm:$0xff]  }
  0x5a   : > { %1819 = vmatprep.subr.bf16.mxu1 %v4641_v6  ;;  %v5196_v6 = vpack.c.bf16 %v244_v51, %v241_v1 }
  0x5c   : > { %1451 = vmatpush1.bf16.msra.mxu0 %v4816_v16  ;;  %v384_v16 = vld [vmem:[%s4887_s6 + $0x598] sm:$0xff] }
  0x5d   : > { %1820 = vmatpush1.bf16.msra.mxu1 %v4639_v0  ;;  %1452 = vmatprep.subr.bf16.mxu0 %v4825_v18  ;;  %v4645_v18 = vld [vmem:[%s6760_s1 + $0x1a8] ss:$16 sps:$4 sm:$0xff]   ;;  %v5131_v25 = vpack.c.bf16 %v384_v16, %v381_v13  ;;  %v263_v13 = vld [vmem:[%s4887_s6 + $0x1d0] sm:$0xff] }
  0x5e   : > { %1821 = vmatprep.subr.bf16.mxu1 %v4644_v10  ;;  %1144 = vmatmul.mubr.bf16.gmra.mrb[8].mxu0 %v5097_v3  ;;  %v5219_v10 = vpack.c.bf16 %v257_v63, %v254_v8  ;;  %v4663_v16 = vld [vmem:[%s6760_s1 + $0x268] ss:$16 sps:$4 sm:$0xff]  }
  0x5f   : > { %1757 = vmatmul.mubr.bf16.gmra.mrb[24].mxu1 %v5099_v5  ;;  %1153 = vmatprep.mubr.bf16.mxu0 %v5101_v7  ;;  %6784 = vst [vmem:[#allocation8_spill] sm:$0xff] %v5131_v25  ;;  %v4672_v63 = vld [vmem:[%s6760_s1 + $0x2c8] ss:$16 sps:$4 sm:$0xff]  }
  0x60   : > { %1766 = vmatprep.mubr.bf16.mxu1 %v6773_v2  ;;  %1453 = vmatpush1.bf16.msra.mxu0 %v4833_v20  ;;  %v4648_v20 = vld [vmem:[%s6760_s1 + $0x1c8] ss:$16 sps:$4 sm:$0xff]  }
  0x61   : > { %1822 = vmatpush1.bf16.msra.mxu1 %v4642_v12  ;;  %1454 = vmatprep.subr.bf16.mxu0 %v4843_v22  ;;  %v4653_v22 = vld [vmem:[%s6760_s1 + $0x1ec] ss:$16 sps:$4 sm:$0xff]   ;;  %v4660_v12 = vld [vmem:[%s6760_s1 + $0x248] ss:$16 sps:$4 sm:$0xff]  }
  0x62   : > { %1823 = vmatprep.subr.bf16.mxu1 %v4647_v14  ;;  %v253_v14 = vld [vmem:[%s4887_s6 + $0x180] sm:$0xff] }
  0x63   : > { %v5241_v15 = vpack.c.bf16 %v256_v9, %v253_v14 }
  0x64   : > { %1455 = vmatpush1.bf16.msra.mxu0 %v4854_v24  ;;  %v236_v24 = vld [vmem:[%s4887_s6 + $0xf8] sm:$0xff] }
  0x65   : > { %1824 = vmatpush1.bf16.msra.mxu1 %v4645_v18  ;;  %1456 = vmatprep.subr.bf16.mxu0 %v4863_v26  ;;  %v4656_v26 = vld [vmem:[%s6760_s1 + $0x20c] ss:$16 sps:$4 sm:$0xff]   ;;  %v5165_v40 = vpack.c.bf16 %v239_v35, %v236_v24  ;;  %v259_v18 = vld [vmem:[%s4887_s6 + $0x1b0] sm:$0xff]  ;;  %v5270_v35 = vpack.c.bf16 %v275_v34, %v272_v33 }
  0x66   : > { %1825 = vmatprep.subr.bf16.mxu1 %v4650_v21  ;;  %1154 = vmatmul.mubr.bf16.gmra.mrb[12].mxu0 %v5129_v23  ;;  %v262_v21 = vld [vmem:[%s4887_s6 + $0x1c8] sm:$0xff]  ;;  %v323_v33 = vld [vmem:[%s4887_s6 + $0x3b0] sm:$0xff] }
  0x67   : > { %1767 = vmatmul.mubr.bf16.gmra.mrb[28].mxu1 %v5131_v25  ;;  %1163 = vmatprep.mubr.bf16.mxu0 %v5133_v27 }
  0x68   : > { %1776 = vmatprep.mubr.bf16.mxu1 %v6773_v2  ;;  %1457 = vmatpush1.bf16.msra.mxu0 %v4873_v28  ;;  %v393_v28 = vld [vmem:[%s4887_s6 + $0x5e0] sm:$0xff] }
  0x69   : > { %1826 = vmatpush1.bf16.msra.mxu1 %v4648_v20  ;;  %1458 = vmatprep.subr.bf16.mxu0 %v4882_v30  ;;  %v396_v30 = vld [vmem:[%s4887_s6 + $0x5f8] sm:$0xff]  ;;  %v266_v20 = vld [vmem:[%s4887_s6 + $0x1e8] sm:$0xff] }
  0x6a   : > { %1827 = vmatprep.subr.bf16.mxu1 %v4653_v22  ;;  %v5181_v49 = vpack.c.bf16 %v396_v30, %v393_v28  ;;  %v5256_v22 = vpack.c.bf16 %v262_v21, %v259_v18  ;;  %v5258_v31 = vpack.c.bf16 %v269_v29, %v266_v20  ;;  %v280_v30 = vld [vmem:[%s4887_s6 + $0x258] sm:$0xff]  ;;  %v310_v18 = vld [vmem:[%s4887_s6 + $0x348] sm:$0xff]  ;;  %v317_v20 = vld [vmem:[%s4887_s6 + $0x380] sm:$0xff] }
  0x6b   : > { %v314_v21 = vld [vmem:[%s4887_s6 + $0x368] sm:$0xff] }
  0x6c   : > { %1459 = vmatpush1.bf16.msra.mxu0 %v4895_v32  ;;  %v242_v32 = vld [vmem:[%s4887_s6 + $0x128] sm:$0xff]  ;;  %6786 = vst [vmem:[#allocation10_spill] sm:$0xff] %v5181_v49 }
  0x6d   : > { %1828 = vmatpush1.bf16.msra.mxu1 %v4651_v36  ;;  %2983 = vmatprep.subr.bf16.mxu0 %v6773_v2  ;;  %v5183_v50 = vpack.c.bf16 %v245_v46, %v242_v32  ;;  %v271_v36 = vld [vmem:[%s4887_s6 + $0x210] sm:$0xff]  ;;  %v284_v32 = vld [vmem:[%s4887_s6 + $0x278] sm:$0xff] }
  0x6e   : > { %2150 = vmatprep.subr.bf16.mxu1 %v4656_v26  ;;  %1164 = vmatmul.mubr.bf16.gmra.mrb[16].mxu0 %v5161_v38  ;;  %v274_v26 = vld [vmem:[%s4887_s6 + $0x228] sm:$0xff]  ;;  %v287_v46 = vld [vmem:[%s4887_s6 + $0x290] sm:$0xff] }
  0x6f   : > { %1777 = vmatmul.mubr.bf16.gmra.mrb[32].mxu1 %v5163_v39  ;;  %1173 = vmatprep.mubr.bf16.mxu0 %v5165_v40  ;;  %v5286_v45 = vpack.c.bf16 %v274_v26, %v271_v36  ;;  %v5300_v51 = vpack.c.bf16 %v287_v46, %v284_v32  ;;  %v322_v36 = vld [vmem:[%s4887_s6 + $0x3a8] sm:$0xff]  ;;  %v335_v32 = vld [vmem:[%s4887_s6 + $0x410] sm:$0xff] }
  0x70   : > { %1786 = vmatprep.mubr.bf16.mxu1 %v6773_v2  ;;  %v326_v26 = vld [vmem:[%s4887_s6 + $0x3c8] sm:$0xff] }
  0x76   : > { %1174 = vmatmul.mubr.bf16.gmra.mrb[20].mxu0 %v5179_v47 }
  0x77   : > { %1787 = vmatmul.mubr.bf16.gmra.mrb[36].mxu1 %v5181_v49  ;;  %1183 = vmatprep.mubr.bf16.mxu0 %v5183_v50 }
  0x78   : > { %1829 = vmatprep.mubr.bf16.mxu1 %v4970_v61  ;;  %v247_v61 = vld [vmem:[%s4887_s6 + $0x150] sm:$0xff] }
  0x79   : > { %v5217_v0 = vpack.c.bf16 %v250_v59, %v247_v61  ;;  %v296_v61 = vld [vmem:[%s4887_s6 + $0x2d8] sm:$0xff]  ;;  %v299_v59 = vld [vmem:[%s4887_s6 + $0x2f0] sm:$0xff] }
  0x7a   : > { %v5324_v8 = vpack.c.bf16 %v299_v59, %v296_v61  ;;  %v347_v61 = vld [vmem:[%s4887_s6 + $0x470] sm:$0xff] }
  0x7e   : > { %1184 = vmatmul.mubr.bf16.gmra.mrb[24].mxu0 %v5196_v6 }
  0x7f   : > { %1830 = vmatmul.mubr.bf16.vlgmr.msra.gmra.mrb[40].mxu1 %v5034_v41  ;;  %1193 = vmatprep.mubr.bf16.mxu0 %v5201_v58  ;;  %v4662_v41 = vld [vmem:[%s6760_s1 + $0x24c] ss:$16 sps:$4 sm:$0xff]  }
  0x80   : > { %2151 = vmatpush1.bf16.msra.mxu1 %v4654_v4  ;;  %1839 = vmatprep.mubr.bf16.mxu1 %v5038_v43  ;;  %v4665_v43 = vld [vmem:[%s6760_s1 + $0x26c] ss:$16 sps:$4 sm:$0xff]  }
  0x81   : > { %2152 = vmatprep.subr.bf16.mxu1 %v4659_v57  ;;  %v5312_v57 = vpack.c.bf16 %v293_v53, %v290_v52  ;;  %v341_v52 = vld [vmem:[%s4887_s6 + $0x440] sm:$0xff] }
  0x84   : > { %2153 = vmatpush1.bf16.msra.mxu1 %v4657_v60 }
  0x85   : > { %2154 = vmatprep.subr.bf16.mxu1 %v4662_v41  ;;  %v4674_v41 = vld [vmem:[%s6760_s1 + $0x2cc] ss:$16 sps:$4 sm:$0xff]  }
  0x86   : > { %1194 = vmatmul.mubr.bf16.gmra.mrb[28].mxu0 %v5217_v0 }
  0x87   : > { %1840 = vmatmul.mubr.bf16.gmra.mrb[44].mxu1 %v5065_v54  ;;  %1203 = vmatprep.mubr.bf16.mxu0 %v5219_v10  ;;  %v4668_v54 = vld [vmem:[%s6760_s1 + $0x28c] ss:$16 sps:$4 sm:$0xff]  }
  0x88   : > { %1849 = vmatprep.mubr.bf16.mxu1 %v5069_v56  ;;  %2155 = vmatpush1.bf16.msra.mxu1 %v4660_v12  ;;  %v5243_v56 = vpack.c.bf16 %v263_v13, %v260_v11  ;;  %v302_v12 = vld [vmem:[%s4887_s6 + $0x308] sm:$0xff]  ;;  %v301_v11 = vld [vmem:[%s4887_s6 + $0x300] sm:$0xff]  ;;  %v304_v13 = vld [vmem:[%s4887_s6 + $0x318] sm:$0xff] }
  0x89   : > { %2156 = vmatprep.subr.bf16.mxu1 %v4665_v43  ;;  %v305_v43 = vld [vmem:[%s4887_s6 + $0x320] sm:$0xff] }
  0x8a   : > { %v5342_v9 = vpack.c.bf16 %v305_v43, %v302_v12 }
  0x8c   : > { %2157 = vmatpush1.bf16.msra.mxu1 %v4663_v16  ;;  %v308_v16 = vld [vmem:[%s4887_s6 + $0x338] sm:$0xff] }
  0x8d   : > { %2158 = vmatprep.subr.bf16.mxu1 %v4668_v54  ;;  %v311_v54 = vld [vmem:[%s4887_s6 + $0x350] sm:$0xff] }
  0x8e   : > { %1204 = vmatmul.mubr.bf16.gmra.mrb[32].mxu0 %v5241_v15 }
  0x8f   : > { %1850 = vmatmul.mubr.bf16.gmra.mrb[48].mxu1 %v5097_v3  ;;  %1213 = vmatprep.mubr.bf16.mxu0 %v5243_v56  ;;  %v265_v3 = vld [vmem:[%s4887_s6 + $0x1e0] sm:$0xff] }
  0x90   : > { %1859 = vmatprep.mubr.bf16.mxu1 %v5101_v7  ;;  %2159 = vmatpush1.bf16.msra.mxu1 %v4666_v17  ;;  %v268_v7 = vld [vmem:[%s4887_s6 + $0x1f8] sm:$0xff]  ;;  %v307_v17 = vld [vmem:[%s4887_s6 + $0x330] sm:$0xff] }
  0x91   : > { %v5268_v24 = vpack.c.bf16 %v268_v7, %v265_v3  ;;  %v5364_v29 = vpack.c.bf16 %v310_v18, %v307_v17  ;;  %v316_v3 = vld [vmem:[%s4887_s6 + $0x378] sm:$0xff] }
  0x92   : > { %v320_v7 = vld [vmem:[%s4887_s6 + $0x398] sm:$0xff] }
  0x96   : > { %1214 = vmatmul.mubr.bf16.gmra.mrb[36].mxu0 %v5256_v22 }
  0x97   : > { %1860 = vmatmul.mubr.bf16.gmra.mrb[52].mxu1 %v5129_v23  ;;  %1223 = vmatprep.mubr.bf16.mxu0 %v5258_v31  ;;  %v4669_v23 = vld [vmem:[%s6760_s1 + $0x2a8] ss:$16 sps:$4 sm:$0xff]  }
  0x98   : > { %1869 = vmatprep.mubr.bf16.mxu1 %v5133_v27  ;;  %v4671_v27 = vld [vmem:[%s6760_s1 + $0x2ac] ss:$16 sps:$4 sm:$0xff]  }
  0x99   : > { %2160 = vmatprep.subr.bf16.mxu1 %v4671_v27  ;;  %v319_v27 = vld [vmem:[%s4887_s6 + $0x390] sm:$0xff] }
  0x9a   : > { %2161 = vmatpush1.bf16.msra.mxu1 %v4669_v23  ;;  %v4677_v23 = vld [vmem:[%s6760_s1 + $0x2ec] ss:$16 sps:$4 sm:$0xff]  }
  0x9b   : > { %2162 = vmatprep.subr.bf16.mxu1 %v4674_v41  ;;  %v350_v41 = vld [vmem:[%s4887_s6 + $0x488] sm:$0xff] }
  0x9e   : > { %1224 = vmatmul.mubr.bf16.gmra.mrb[40].mxu0 %v5268_v24  ;;  %2163 = vmatpush1.bf16.msra.mxu1 %v4672_v63  ;;  %v346_v63 = vld [vmem:[%s4887_s6 + $0x468] sm:$0xff] }
  0x9f   : > { %1870 = vmatmul.mubr.bf16.gmra.mrb[56].mxu1 %v5161_v38  ;;  %1233 = vmatprep.mubr.bf16.mxu0 %v5270_v35  ;;  %v281_v38 = vld [vmem:[%s4887_s6 + $0x260] sm:$0xff] }
  0xa0   : > { %1879 = vmatprep.mubr.bf16.mxu1 %v5165_v40  ;;  %v5288_v28 = vpack.c.bf16 %v281_v38, %v278_v44  ;;  %v277_v40 = vld [vmem:[%s4887_s6 + $0x240] sm:$0xff]  ;;  %2164 = vmatprep.subr.bf16.mxu1 %v4677_v23  ;;  %v5394_v38 = vpack.c.bf16 %v322_v36, %v319_v27 }
  0xa1   : > { %v5298_v1 = vpack.c.bf16 %v280_v30, %v277_v40  ;;  %v329_v44 = vld [vmem:[%s4887_s6 + $0x3e0] sm:$0xff]  ;;  %v328_v40 = vld [vmem:[%s4887_s6 + $0x3d8] sm:$0xff] }
  0xa2   : > { %v332_v30 = vld [vmem:[%s4887_s6 + $0x3f8] sm:$0xff] }
  0xa6   : > { %1234 = vmatmul.mubr.bf16.gmra.mrb[44].mxu0 %v5286_v45 }
  0xa7   : > { %1880 = vmatmul.mubr.bf16.gmra.mrb[60].mxu1 %v5179_v47  ;;  %1243 = vmatprep.mubr.bf16.mxu0 %v5288_v28  ;;  %v283_v47 = vld [vmem:[%s4887_s6 + $0x270] sm:$0xff] }
  0xa8   : > { %1889 = vmatprep.mubr.bf16.mxu1 %v5183_v50  ;;  %v286_v50 = vld [vmem:[%s4887_s6 + $0x288] sm:$0xff] }
  0xa9   : > { %v5310_v4 = vpack.c.bf16 %v286_v50, %v283_v47  ;;  %v334_v47 = vld [vmem:[%s4887_s6 + $0x408] sm:$0xff] }
  0xaa   : > { %v338_v50 = vld [vmem:[%s4887_s6 + $0x428] sm:$0xff] }
  0xae   : > { %1244 = vmatmul.mubr.bf16.gmra.mrb[48].mxu0 %v5298_v1 }
  0xaf   : > { %1890 = vmatmul.mubr.bf16.gmra.mrb[64].mxu1 %v5196_v6  ;;  %1253 = vmatprep.mubr.bf16.mxu0 %v5300_v51  ;;  %v289_v6 = vld [vmem:[%s4887_s6 + $0x2a0] sm:$0xff] }
  0xb0   : > { %1899 = vmatprep.mubr.bf16.mxu1 %v5201_v58  ;;  %v292_v58 = vld [vmem:[%s4887_s6 + $0x2b8] sm:$0xff] }
  0xb1   : > { %v5322_v60 = vpack.c.bf16 %v292_v58, %v289_v6  ;;  %v340_v6 = vld [vmem:[%s4887_s6 + $0x438] sm:$0xff] }
  0xb2   : > { %v344_v58 = vld [vmem:[%s4887_s6 + $0x458] sm:$0xff] }
  0xb6   : > { %1254 = vmatmul.mubr.bf16.gmra.mrb[52].mxu0 %v5310_v4 }
  0xb7   : > { %1900 = vmatmul.mubr.bf16.gmra.mrb[68].mxu1 %v5217_v0  ;;  %1263 = vmatprep.mubr.bf16.mxu0 %v5312_v57  ;;  %v295_v0 = vld [vmem:[%s4887_s6 + $0x2d0] sm:$0xff] }
  0xb8   : > { %1909 = vmatprep.mubr.bf16.mxu1 %v5219_v10  ;;  %v298_v10 = vld [vmem:[%s4887_s6 + $0x2e8] sm:$0xff] }
  0xb9   : > { %v5340_v14 = vpack.c.bf16 %v298_v10, %v295_v0  ;;  %v353_v0 = vld [vmem:[%s4887_s6 + $0x4a0] sm:$0xff] }
  0xbe   : > { %1264 = vmatmul.mubr.bf16.gmra.mrb[56].mxu0 %v5322_v60 }
  0xbf   : > { %1910 = vmatmul.mubr.bf16.gmra.mrb[72].mxu1 %v5241_v15  ;;  %1273 = vmatprep.mubr.bf16.mxu0 %v5324_v8  ;;  %v5352_v15 = vpack.c.bf16 %v304_v13, %v301_v11  ;;  %v349_v13 = vld [vmem:[%s4887_s6 + $0x480] sm:$0xff] }
  0xc0   : > { %1919 = vmatprep.mubr.bf16.mxu1 %v5243_v56  ;;  %v5354_v56 = vpack.c.bf16 %v311_v54, %v308_v16  ;;  %v352_v16 = vld [vmem:[%s4887_s6 + $0x498] sm:$0xff] }
  0xc1   : > { %v356_v54 = vld [vmem:[%s4887_s6 + $0x4b8] sm:$0xff]  ;;  %v5466_v18 = vpack.c.bf16 %v352_v16, %v349_v13  ;;  %v383_v13 = vld [vmem:[%s4887_s6 + $0x590] sm:$0xff] }
  0xc6   : > { %1274 = vmatmul.mubr.bf16.gmra.mrb[60].mxu0 %v5340_v14 }
  0xc7   : > { %1920 = vmatmul.mubr.bf16.gmra.mrb[76].mxu1 %v5256_v22  ;;  %1283 = vmatprep.mubr.bf16.mxu0 %v5342_v9  ;;  %v5366_v22 = vpack.c.bf16 %v317_v20, %v314_v21 }
  0xc8   : > { %1929 = vmatprep.mubr.bf16.mxu1 %v5258_v31  ;;  %v313_v31 = vld [vmem:[%s4887_s6 + $0x360] sm:$0xff] }
  0xc9   : > { %v5376_v34 = vpack.c.bf16 %v316_v3, %v313_v31  ;;  %v358_v31 = vld [vmem:[%s4887_s6 + $0x4c8] sm:$0xff] }
  0xca   : > { %v362_v3 = vld [vmem:[%s4887_s6 + $0x4e8] sm:$0xff] }
  0xce   : > { %1284 = vmatmul.mubr.bf16.gmra.mrb[64].mxu0 %v5352_v15 }
  0xcf   : > { %1930 = vmatmul.mubr.bf16.gmra.mrb[80].mxu1 %v5268_v24  ;;  %1293 = vmatprep.mubr.bf16.mxu0 %v5354_v56  ;;  %v5378_v24 = vpack.c.bf16 %v323_v33, %v320_v7  ;;  %v365_v7 = vld [vmem:[%s4887_s6 + $0x500] sm:$0xff] }
  0xd0   : > { %1939 = vmatprep.mubr.bf16.mxu1 %v5270_v35  ;;  %v4675_v35 = vld [vmem:[%s6760_s1 + $0x2e8] ss:$16 sps:$4 sm:$0xff]  }
  0xd1   : > { %2165 = vmatpush1.bf16.msra.mxu1 %v4675_v35 }
  0xd6   : > { %1294 = vmatmul.mubr.bf16.gmra.mrb[68].mxu0 %v5364_v29 }
  0xd7   : > { %1940 = vmatmul.mubr.bf16.gmra.mrb[84].mxu1 %v5286_v45  ;;  %1303 = vmatprep.mubr.bf16.mxu0 %v5366_v22  ;;  %v5396_v45 = vpack.c.bf16 %v329_v44, %v326_v26  ;;  %v364_v26 = vld [vmem:[%s4887_s6 + $0x4f8] sm:$0xff] }
  0xd8   : > { %1949 = vmatprep.mubr.bf16.mxu1 %v5288_v28  ;;  %v325_v28 = vld [vmem:[%s4887_s6 + $0x3c0] sm:$0xff]  ;;  %v368_v44 = vld [vmem:[%s4887_s6 + $0x518] sm:$0xff] }
  0xd9   : > { %v5406_v46 = vpack.c.bf16 %v328_v40, %v325_v28  ;;  %v371_v28 = vld [vmem:[%s4887_s6 + $0x530] sm:$0xff] }
  0xde   : > { %1304 = vmatmul.mubr.bf16.gmra.mrb[72].mxu0 %v5376_v34 }
  0xdf   : > { %1950 = vmatmul.mubr.bf16.gmra.mrb[88].mxu1 %v5298_v1  ;;  %1313 = vmatprep.mubr.bf16.mxu0 %v5378_v24  ;;  %v5408_v1 = vpack.c.bf16 %v335_v32, %v332_v30 }
  0xe0   : > { %1959 = vmatprep.mubr.bf16.mxu1 %v5300_v51  ;;  %v331_v51 = vld [vmem:[%s4887_s6 + $0x3f0] sm:$0xff] }
  0xe1   : > { %v5418_v53 = vpack.c.bf16 %v334_v47, %v331_v51 }
  0xe6   : > { %1314 = vmatmul.mubr.bf16.gmra.mrb[76].mxu0 %v5394_v38 }
  0xe7   : > { %1960 = vmatmul.mubr.bf16.gmra.mrb[92].mxu1 %v5310_v4  ;;  %1323 = vmatprep.mubr.bf16.mxu0 %v5396_v45  ;;  %v5420_v4 = vpack.c.bf16 %v341_v52, %v338_v50  ;;  %v370_v50 = vld [vmem:[%s4887_s6 + $0x528] sm:$0xff] }
  0xe8   : > { %1969 = vmatprep.mubr.bf16.mxu1 %v5312_v57  ;;  %v337_v57 = vld [vmem:[%s4887_s6 + $0x420] sm:$0xff]  ;;  %v374_v52 = vld [vmem:[%s4887_s6 + $0x548] sm:$0xff] }
  0xe9   : > { %v5430_v59 = vpack.c.bf16 %v340_v6, %v337_v57  ;;  %v377_v57 = vld [vmem:[%s4887_s6 + $0x560] sm:$0xff] }
  0xee   : > { %1324 = vmatmul.mubr.bf16.gmra.mrb[80].mxu0 %v5406_v46 }
  0xef   : > { %1970 = vmatmul.mubr.bf16.gmra.mrb[96].mxu1 %v5322_v60  ;;  %1333 = vmatprep.mubr.bf16.mxu0 %v5408_v1  ;;  %v5432_v60 = vpack.c.bf16 %v347_v61, %v344_v58 }
  0xf0   : > { %1979 = vmatprep.mubr.bf16.mxu1 %v5324_v8  ;;  %v343_v8 = vld [vmem:[%s4887_s6 + $0x450] sm:$0xff] }
  0xf1   : > { %v5446_v43 = vpack.c.bf16 %v346_v63, %v343_v8 }
  0xf6   : > { %1334 = vmatmul.mubr.bf16.gmra.mrb[84].mxu0 %v5418_v53 }
  0xf7   : > { %1980 = vmatmul.mubr.bf16.gmra.mrb[100].mxu1 %v5340_v14  ;;  %1343 = vmatprep.mubr.bf16.mxu0 %v5420_v4 }
  0xf8   : > { %1989 = vmatprep.mubr.bf16.mxu1 %v5342_v9  ;;  %v5450_v9 = vpack.c.bf16 %v353_v0, %v350_v41  ;;  %v376_v41 = vld [vmem:[%s4887_s6 + $0x558] sm:$0xff] }
  0xf9   : > { %v380_v0 = vld [vmem:[%s4887_s6 + $0x578] sm:$0xff] }
  0xfe   : > { %1344 = vmatmul.mubr.bf16.gmra.mrb[88].mxu0 %v5430_v59 }
  0xff   : > { %1990 = vmatmul.mubr.bf16.gmra.mrb[104].mxu1 %v5352_v15  ;;  %1353 = vmatprep.mubr.bf16.mxu0 %v5432_v60  ;;  %v359_v15 = vld [vmem:[%s4887_s6 + $0x4d0] sm:$0xff] }
 0x100   : > { %1999 = vmatprep.mubr.bf16.mxu1 %v5354_v56  ;;  %v5470_v20 = vpack.c.bf16 %v359_v15, %v356_v54 }
 0x102   : > { %v5442_v10 = vpop.f32.mrb[0].mxu1 }
 0x103   : > { %v5444_v12 = vpop.f32.mrb[1].mxu1 }
 0x104   : > { %v5448_v14 = vpop.f32.mrb[2].mxu1 }
 0x105   : > { %v5452_v11 = vpop.f32.mrb[3].mxu1 }
 0x106   : > { %1354 = vmatmul.mubr.bf16.gmra.mrb[92].mxu0 %v5446_v43 }
 0x107   : > { %2000 = vmatmul.mubr.bf16.gmra.mrb[108].mxu1 %v5364_v29  ;;  %1363 = vmatprep.mubr.bf16.mxu0 %v5450_v9 }
 0x108   : > { %2009 = vmatprep.mubr.bf16.mxu1 %v5366_v22  ;;  %v355_v22 = vld [vmem:[%s4887_s6 + $0x4b0] sm:$0xff] }
 0x109   : > { %v5486_v23 = vpack.c.bf16 %v358_v31, %v355_v22 }
 0x10a   : > { %v5462_v56 = vpop.f32.mrb[4].mxu1 }
 0x10b   : > { %v5464_v17 = vpop.f32.mrb[5].mxu1 }
 0x10c   : > { %v5468_v21 = vpop.f32.mrb[6].mxu1 }
 0x10d   : > { %v5472_v29 = vpop.f32.mrb[7].mxu1 }
 0x10e   : > { %1364 = vmatmul.mubr.bf16.gmra.mrb[96].mxu0 %v5466_v18 }
 0x10f   : > { %2010 = vmatmul.mubr.bf16.gmra.mrb[112].mxu1 %v5376_v34  ;;  %1373 = vmatprep.mubr.bf16.mxu0 %v5470_v20  ;;  %v5490_v34 = vpack.c.bf16 %v365_v7, %v362_v3  ;;  %v382_v3 = vld [vmem:[%s4887_s6 + $0x588] sm:$0xff] }
 0x110   : > { %2019 = vmatprep.mubr.bf16.mxu1 %v5378_v24  ;;  %v361_v24 = vld [vmem:[%s4887_s6 + $0x4e0] sm:$0xff]  ;;  %v386_v7 = vld [vmem:[%s4887_s6 + $0x5a8] sm:$0xff] }
 0x111   : > { %v5506_v32 = vpack.c.bf16 %v364_v26, %v361_v24  ;;  %v389_v24 = vld [vmem:[%s4887_s6 + $0x5c0] sm:$0xff] }
 0x112   : > { %v5482_v33 = vpop.f32.mrb[8].mxu1 }
 0x113   : > { %v5484_v35 = vpop.f32.mrb[9].mxu1 }
 0x114   : > { %v5488_v27 = vpop.f32.mrb[10].mxu1 }
 0x115   : > { %v5492_v36 = vpop.f32.mrb[11].mxu1 }
 0x116   : > { %1374 = vmatmul.mubr.bf16.gmra.mrb[100].mxu0 %v5486_v23 }
 0x117   : > { %2020 = vmatmul.mubr.bf16.gmra.mrb[116].mxu1 %v5394_v38  ;;  %1383 = vmatprep.mubr.bf16.mxu0 %v5490_v34  ;;  %v5510_v38 = vpack.c.bf16 %v371_v28, %v368_v44 }
 0x118   : > { %2029 = vmatprep.mubr.bf16.mxu1 %v5396_v45  ;;  %v367_v45 = vld [vmem:[%s4887_s6 + $0x510] sm:$0xff] }
 0x119   : > { %v5526_v61 = vpack.c.bf16 %v370_v50, %v367_v45 }
 0x11a   : > { %v5502_v40 = vpop.f32.mrb[12].mxu1 }
 0x11b   : > { %v5504_v30 = vpop.f32.mrb[13].mxu1 }
 0x11c   : > { %v5508_v51 = vpop.f32.mrb[14].mxu1 }
 0x11d   : > { %v5512_v47 = vpop.f32.mrb[15].mxu1 }
 0x11e   : > { %1384 = vmatmul.mubr.bf16.gmra.mrb[104].mxu0 %v5506_v32 }
 0x11f   : > { %2030 = vmatmul.mubr.bf16.gmra.mrb[120].mxu1 %v5406_v46  ;;  %1393 = vmatprep.mubr.bf16.mxu0 %v5510_v38  ;;  %v5530_v46 = vpack.c.bf16 %v377_v57, %v374_v52  ;;  %v388_v52 = vld [vmem:[%s4887_s6 + $0x5b8] sm:$0xff] }
 0x120   : > { %2039 = vmatprep.mubr.bf16.mxu1 %v5408_v1  ;;  %v373_v1 = vld [vmem:[%s4887_s6 + $0x540] sm:$0xff]  ;;  %v392_v57 = vld [vmem:[%s4887_s6 + $0x5d8] sm:$0xff] }
 0x121   : > { %v5546_v15 = vpack.c.bf16 %v376_v41, %v373_v1  ;;  %v395_v1 = vld [vmem:[%s4887_s6 + $0x5f0] sm:$0xff] }
 0x122   : > { %v5522_v6 = vpop.f32.mrb[16].mxu1 }
 0x123   : > { %v5524_v58 = vpop.f32.mrb[17].mxu1 }
 0x124   : > { %v5528_v8 = vpop.f32.mrb[18].mxu1 }
 0x125   : > { %v5532_v63 = vpop.f32.mrb[19].mxu1 }
 0x126   : > { %1394 = vmatmul.mubr.bf16.gmra.mrb[108].mxu0 %v5526_v61 }
 0x127   : > { %2040 = vmatmul.mubr.bf16.gmra.mrb[124].mxu1 %v5418_v53  ;;  %1403 = vmatprep.mubr.bf16.mxu0 %v5530_v46  ;;  %v5550_v53 = vpack.c.bf16 %v383_v13, %v380_v0 }
 0x128   : > { %2049 = vmatprep.mubr.bf16.mxu1 %v5420_v4  ;;  %v379_v4 = vld [vmem:[%s4887_s6 + $0x570] sm:$0xff] }
 0x129   : > { %v5566_v28 = vpack.c.bf16 %v382_v3, %v379_v4  ;;  %v5590_v3 = vpack.c.bf16 %v395_v1, %v392_v57 }
 0x12a   : > { %v5542_v16 = vpop.f32.mrb[20].mxu1 }
 0x12b   : > { %v5544_v54 = vpop.f32.mrb[21].mxu1 }
 0x12c   : > { %v5548_v22 = vpop.f32.mrb[22].mxu1 }
 0x12d   : > { %v5552_v31 = vpop.f32.mrb[23].mxu1 }
 0x12e   : > { %1404 = vmatmul.mubr.bf16.gmra.mrb[112].mxu0 %v5546_v15 }
 0x12f   : > { %2050 = vmatmul.mubr.bf16.gmra.mrb[128].mxu1 %v5430_v59  ;;  %1413 = vmatprep.mubr.bf16.mxu0 %v5550_v53  ;;  %v5570_v59 = vpack.c.bf16 %v389_v24, %v386_v7  ;;  %v394_v7 = vld [vmem:[%s4887_s6 + $0x5e8] sm:$0xff] }
 0x130   : > { %2059 = vmatprep.mubr.bf16.mxu1 %v5432_v60  ;;  %v385_v60 = vld [vmem:[%s4887_s6 + $0x5a0] sm:$0xff] }
 0x131   : > { %v5586_v13 = vpack.c.bf16 %v388_v52, %v385_v60 }
 0x132   : > { %v5562_v26 = vpop.f32.mrb[24].mxu1 }
 0x133   : > { %v5564_v44 = vpop.f32.mrb[25].mxu1 }
 0x134   : > { %v5568_v45 = vpop.f32.mrb[26].mxu1 }
 0x135   : > { %v5572_v50 = vpop.f32.mrb[27].mxu1 }
 0x136   : > { %1414 = vmatmul.mubr.bf16.gmra.mrb[116].mxu0 %v5566_v28 }
 0x137   : > { %2060 = vmatmul.mubr.bf16.gmra.mrb[132].mxu1 %v5446_v43  ;;  %1423 = vmatprep.mubr.bf16.mxu0 %v5570_v59 }
 0x138   : > { %2069 = vmatprep.mubr.bf16.mxu1 %v5450_v9  ;;  %v391_v9 = vld [vmem:[%s4887_s6 + $0x5d0] sm:$0xff] }
 0x139   : > { %v5604_v52 = vpack.c.bf16 %v394_v7, %v391_v9 }
 0x13a   : > { %v5582_v41 = vpop.f32.mrb[28].mxu1 }
 0x13b   : > { %v5584_v0 = vpop.f32.mrb[29].mxu1 }
 0x13c   : > { %v5588_v4 = vpop.f32.mrb[30].mxu1 }
 0x13d   : > { %v5592_v43 = vpop.f32.mrb[31].mxu1 }
 0x13e   : > { %1424 = vmatmul.mubr.bf16.gmra.mrb[120].mxu0 %v5586_v13 }
 0x13f   : > { %2070 = vmatmul.mubr.bf16.gmra.mrb[136].mxu1 %v5466_v18  ;;  %1433 = vmatprep.mubr.bf16.mxu0 %v5590_v3  ;;  %v207_v18 = vld [vmem:[%s4887_s6 + $0x10] sm:$0xff] }
 0x140   : > { %2079 = vmatprep.mubr.bf16.mxu1 %v5470_v20  ;;  %v210_v20 = vld [vmem:[%s4887_s6 + $0x28] sm:$0xff] }
 0x141   : > { %v5620_v7 = vpack.c.bf16 %v210_v20, %v207_v18  ;;  %v216_v18 = vld [vmem:[%s4887_s6 + $0x58] sm:$0xff]  ;;  %v4679_v20 = vld [vmem:[%s6762_s3 + $0x8] sm:$0xff]  }
 0x142   : > { %v5600_v24 = vpop.f32.mrb[32].mxu1 }
 0x143   : > { %v5602_v60 = vpop.f32.mrb[33].mxu1 }
 0x144   : > { %v5606_v57 = vpop.f32.mrb[34].mxu1 }
 0x145   : > { %v5608_v1 = vpop.f32.mrb[35].mxu1 }
 0x146   : > { %1434 = vmatmul.mubr.bf16.gmra.mrb[124].mxu0 %v5604_v52 }
 0x147   : > { %2080 = vmatmul.mubr.bf16.gmra.mrb[140].mxu1 %v5486_v23  ;;  %1476 = vmatprep.mubr.bf16.mxu0 %v6773_v2  ;;  %v4678_v23 = vld [vmem:[%s6762_s3] sm:$0xff]  }
 0x148   : > { %2089 = vmatprep.mubr.bf16.mxu1 %v5490_v34  ;;  %v213_v34 = vld [vmem:[%s4887_s6 + $0x40] sm:$0xff] }
 0x149   : > { %v5639_v5 = vpack.c.bf16 %v216_v18, %v213_v34  ;;  %v4681_v34 = vld [vmem:[%s6762_s3 + $0x18] sm:$0xff]  }
 0x14a   : > { %v5616_v49 = vpop.f32.mrb[36].mxu1 }
 0x14b   : > { %v5618_v9 = vpop.f32.mrb[37].mxu1 }
 0x14c   : > { %v5622_v39 = vpop.f32.mrb[38].mxu1 }
 0x14d   : > { %v5624_v25 = vpop.f32.mrb[39].mxu1 }
 0x14e   : > { %1477 = vmatmul.mubr.bf16.vlgmr.msra.gmra.mrb[0].mxu0 %v5620_v7 }
 0x14f   : > { %2090 = vmatmul.mubr.bf16.gmra.mrb[144].mxu1 %v5506_v32  ;;  %1486 = vmatprep.mubr.bf16.mxu0 %v6773_v2  ;;  %v4680_v32 = vld [vmem:[%s6762_s3 + $0x10] sm:$0xff]  }
 0x150   : > { %2099 = vmatprep.mubr.bf16.mxu1 %v5510_v38  ;;  %2984 = vmatpush1.bf16.msra.mxu0 %v4678_v23  ;;  %v219_v38 = vld [vmem:[%s4887_s6 + $0x70] sm:$0xff]  ;;  %v222_v23 = vld [vmem:[%s4887_s6 + $0x88] sm:$0xff] }
 0x151   : > { %2985 = vmatprep.subr.bf16.mxu0 %v6773_v2  ;;  %v5655_v18 = vpack.c.bf16 %v222_v23, %v219_v38  ;;  %v4684_v23 = vld [vmem:[%s6762_s3 + $0x28] sm:$0xff]  }
 0x154   : > { %2986 = vmatpush1.bf16.msra.mxu0 %v4679_v20  ;;  %v228_v20 = vld [vmem:[%s4887_s6 + $0xb8] sm:$0xff] }
 0x155   : > { %2987 = vmatprep.subr.bf16.mxu0 %v6773_v2 }
 0x156   : > { %1487 = vmatmul.mubr.bf16.gmra.mrb[4].mxu0 %v5639_v5 }
 0x157   : > { %2100 = vmatmul.mubr.bf16.gmra.mrb[148].mxu1 %v5526_v61  ;;  %1496 = vmatprep.mubr.bf16.mxu0 %v6773_v2  ;;  %v4682_v61 = vld [vmem:[%s6762_s3 + $0x20] sm:$0xff]  }
 0x158   : > { %2109 = vmatprep.mubr.bf16.mxu1 %v5530_v46  ;;  %2988 = vmatpush1.bf16.msra.mxu0 %v4680_v32  ;;  %v225_v46 = vld [vmem:[%s4887_s6 + $0xa0] sm:$0xff] }
 0x159   : > { %2989 = vmatprep.subr.bf16.mxu0 %v6773_v2  ;;  %v4683_v32 = vld [vmem:[%s6762_s3 + $0x80] sm:$0xff]   ;;  %v5671_v38 = vpack.c.bf16 %v228_v20, %v225_v46 }
 0x15a   : > { %3916 = vmatprep.subr.bf16.mxu1 %v4683_v32 }
 0x15c   : > { %2990 = vmatpush1.bf16.msra.mxu0 %v4681_v34 }
 0x15d   : > { %2991 = vmatprep.subr.bf16.mxu0 %v6773_v2 }
 0x15e   : > { %1497 = vmatmul.mubr.bf16.gmra.mrb[8].mxu0 %v5655_v18 }
 0x15f   : > { %2110 = vmatmul.mubr.bf16.gmra.mrb[152].mxu1 %v5546_v15  ;;  %1506 = vmatprep.mubr.bf16.mxu0 %v6773_v2  ;;  %v231_v15 = vld [vmem:[%s4887_s6 + $0xd0] sm:$0xff] }
 0x160   : > { %2119 = vmatprep.mubr.bf16.mxu1 %v5550_v53  ;;  %2992 = vmatpush1.bf16.msra.mxu0 %v4682_v61  ;;  %v234_v53 = vld [vmem:[%s4887_s6 + $0xe8] sm:$0xff]  ;;  %v4685_v61 = vld [vmem:[%s6762_s3 + $0x30] sm:$0xff]  }
 0x161   : > { %2993 = vmatprep.subr.bf16.mxu0 %v6773_v2  ;;  %v5682_v34 = vpack.c.bf16 %v234_v53, %v231_v15  ;;  %v4686_v15 = vld [vmem:[%s6762_s3 + $0x38] sm:$0xff]  }
 0x162   : > { %v252_v53 = vld [vmem:[%s4887_s6 + $0x178] sm:$0xff] }
 0x164   : > { %2994 = vmatpush1.bf16.msra.mxu0 %v4684_v23  ;;  %v4687_v23 = vld [vmem:[%s6762_s3 + $0x88] sm:$0xff]  }
 0x165   : > { %2995 = vmatprep.subr.bf16.mxu0 %v6773_v2 }
 0x166   : > { %1507 = vmatmul.mubr.bf16.gmra.mrb[12].mxu0 %v5671_v38 }
 0x167   : > { %2120 = vmatmul.mubr.bf16.gmra.mrb[156].mxu1 %v5566_v28  ;;  %1516 = vmatprep.mubr.bf16.mxu0 %v6773_v2  ;;  %v237_v28 = vld [vmem:[%s4887_s6 + $0x100] sm:$0xff] }
 0x168   : > { %2129 = vmatprep.mubr.bf16.mxu1 %v5570_v59  ;;  %v240_v59 = vld [vmem:[%s4887_s6 + $0x118] sm:$0xff]  ;;  %2996 = vmatpush1.bf16.msra.mxu0 %v4685_v61 }
 0x169   : > { %v5694_v46 = vpack.c.bf16 %v240_v59, %v237_v28  ;;  %2997 = vmatprep.subr.bf16.mxu0 %v6773_v2  ;;  %v255_v28 = vld [vmem:[%s4887_s6 + $0x190] sm:$0xff]  ;;  %v258_v59 = vld [vmem:[%s4887_s6 + $0x1a8] sm:$0xff] }
 0x16a   : > { %v5729_v61 = vpack.c.bf16 %v258_v59, %v255_v28  ;;  %v273_v59 = vld [vmem:[%s4887_s6 + $0x220] sm:$0xff] }
 0x16c   : > { %2998 = vmatpush1.bf16.msra.mxu0 %v4686_v15 }
 0x16d   : > { %2999 = vmatprep.subr.bf16.mxu0 %v6773_v2 }
 0x16e   : > { %1517 = vmatmul.mubr.bf16.gmra.mrb[16].mxu0 %v5682_v34 }
 0x16f   : > { %2130 = vmatmul.mubr.bf16.gmra.mrb[160].mxu1 %v5586_v13  ;;  %1526 = vmatprep.mubr.bf16.mxu0 %v6773_v2  ;;  %v243_v13 = vld [vmem:[%s4887_s6 + $0x130] sm:$0xff] }
 0x170   : > { %2139 = vmatprep.mubr.bf16.mxu1 %v5590_v3  ;;  %v246_v3 = vld [vmem:[%s4887_s6 + $0x148] sm:$0xff] }
 0x171   : > { %v5703_v20 = vpack.c.bf16 %v246_v3, %v243_v13  ;;  %v264_v13 = vld [vmem:[%s4887_s6 + $0x1d8] sm:$0xff]  ;;  %v4689_v3 = vld [vmem:[%s6762_s3 + $0x48] sm:$0xff]  }
 0x176   : > { %1527 = vmatmul.mubr.bf16.gmra.mrb[20].mxu0 %v5694_v46 }
 0x177   : > { %2140 = vmatmul.mubr.bf16.gmra.mrb[164].mxu1 %v5604_v52  ;;  %1536 = vmatprep.mubr.bf16.mxu0 %v6773_v2  ;;  %v249_v52 = vld [vmem:[%s4887_s6 + $0x160] sm:$0xff] }
 0x178   : > { %2182 = vmatprep.mubr.bf16.mxu1 %v6773_v2 }
 0x17e   : > { %1537 = vmatmul.mubr.bf16.gmra.mrb[24].mxu0 %v5703_v20 }
 0x17f   : > { %2183 = vmatmul.mubr.bf16.vlgmr.msra.gmra.mrb[40].mxu1 %v5620_v7  ;;  %1546 = vmatprep.mubr.bf16.mxu0 %v6773_v2  ;;  %v5718_v7 = vpack.c.bf16 %v252_v53, %v249_v52  ;;  %v267_v52 = vld [vmem:[%s4887_s6 + $0x1f0] sm:$0xff]  ;;  %v270_v53 = vld [vmem:[%s4887_s6 + $0x208] sm:$0xff] }
 0x180   : > { %2192 = vmatprep.mubr.bf16.mxu1 %v6773_v2  ;;  %3917 = vmatpush3.bf16.msra.mxu1 %v4683_v32  ;;  %v4688_v32 = vld [vmem:[%s6762_s3 + $0x40] sm:$0xff]   ;;  %v5757_v28 = vpack.c.bf16 %v270_v53, %v267_v52  ;;  %v282_v52 = vld [vmem:[%s4887_s6 + $0x268] sm:$0xff]  ;;  %v4696_v53 = vld [vmem:[%s6762_s3 + $0x78] sm:$0xff]  }
 0x181   : > { %3918 = vmatprep.subr.bf16.mxu1 %v4687_v23  ;;  %3000 = vmatpush1.bf16.msra.mxu0 %v4688_v32  ;;  %v276_v32 = vld [vmem:[%s4887_s6 + $0x238] sm:$0xff] }
 0x182   : > { %3001 = vmatprep.subr.bf16.mxu0 %v6773_v2 }
 0x184   : > { %3919 = vmatpush3.bf16.msra.mxu1 %v4687_v23  ;;  %v4691_v23 = vld [vmem:[%s6762_s3 + $0x58] sm:$0xff]  }
 0x185   : > { %3002 = vmatpush1.bf16.msra.mxu0 %v4689_v3  ;;  %v4695_v3 = vld [vmem:[%s6762_s3 + $0x70] sm:$0xff]  }
 0x186   : > { %1547 = vmatmul.mubr.bf16.gmra.mrb[28].mxu0 %v5718_v7  ;;  %3003 = vmatprep.subr.bf16.mxu0 %v6773_v2 }
 0x187   : > { %2193 = vmatmul.mubr.bf16.gmra.mrb[44].mxu1 %v5639_v5  ;;  %1556 = vmatprep.mubr.bf16.mxu0 %v6773_v2  ;;  %v261_v5 = vld [vmem:[%s4887_s6 + $0x1c0] sm:$0xff] }
 0x188   : > { %2202 = vmatprep.mubr.bf16.mxu1 %v6773_v2  ;;  %v5741_v15 = vpack.c.bf16 %v264_v13, %v261_v5  ;;  %v4692_v5 = vld [vmem:[%s6762_s3 + $0x90] sm:$0xff]   ;;  %v4694_v13 = vld [vmem:[%s6762_s3 + $0x68] sm:$0xff]  }
 0x189   : > { %3920 = vmatprep.subr.bf16.mxu1 %v4692_v5 }
 0x18a   : > { %3921 = vmatpush3.bf16.msra.mxu1 %v4692_v5 }
 0x18e   : > { %1557 = vmatmul.mubr.bf16.gmra.mrb[32].mxu0 %v5729_v61 }
 0x18f   : > { %2203 = vmatmul.mubr.bf16.gmra.mrb[48].mxu1 %v5655_v18  ;;  %1566 = vmatprep.mubr.bf16.mxu0 %v6773_v2  ;;  %v4690_v18 = vld [vmem:[%s6762_s3 + $0x50] sm:$0xff]  }
 0x190   : > { %2212 = vmatprep.mubr.bf16.mxu1 %v6773_v2  ;;  %3004 = vmatpush1.bf16.msra.mxu0 %v4690_v18  ;;  %v279_v18 = vld [vmem:[%s4887_s6 + $0x250] sm:$0xff] }
 0x191   : > { %3005 = vmatprep.subr.bf16.mxu0 %v6773_v2 }
 0x194   : > { %3006 = vmatpush1.bf16.msra.mxu0 %v4691_v23  ;;  %v5792_v23 = vpack.c.bf16 %v282_v52, %v279_v18  ;;  %v591_v52 = vlaneseq }
 0x195   : > { %3007 = vmatprep.subr.bf16.mxu0 %v6773_v2 }
 0x196   : > { %1567 = vmatmul.mubr.bf16.gmra.mrb[36].mxu0 %v5741_v15 }
 0x197   : > { %2213 = vmatmul.mubr.bf16.gmra.mrb[52].mxu1 %v5671_v38  ;;  %1576 = vmatprep.mubr.bf16.mxu0 %v6773_v2  ;;  %v4693_v38 = vld [vmem:[%s6762_s3 + $0x60] sm:$0xff]  }
 0x198   : > { %2222 = vmatprep.mubr.bf16.mxu1 %v6773_v2  ;;  %3008 = vmatpush1.bf16.msra.mxu0 %v4693_v38  ;;  %v288_v38 = vld [vmem:[%s4887_s6 + $0x298] sm:$0xff] }
 0x199   : > { %3009 = vmatprep.subr.bf16.mxu0 %v6773_v2 }
 0x19c   : > { %3010 = vmatpush1.bf16.msra.mxu0 %v4694_v13  ;;  %v4697_v13 = vld [vmem:[%s6762_s3 + $0x98] sm:$0xff]  }
 0x19d   : > { %3011 = vmatprep.subr.bf16.mxu0 %v6773_v2  ;;  %3922 = vmatprep.subr.bf16.mxu1 %v4697_v13 }
 0x19e   : > { %1577 = vmatmul.mubr.bf16.gmra.mrb[40].mxu0 %v5757_v28  ;;  %3923 = vmatpush3.bf16.msra.mxu1 %v4697_v13 }
 0x19f   : > { %2223 = vmatmul.mubr.bf16.gmra.mrb[56].mxu1 %v5682_v34  ;;  %1586 = vmatprep.mubr.bf16.mxu0 %v6773_v2  ;;  %v5776_v34 = vpack.c.bf16 %v276_v32, %v273_v59  ;;  %v291_v32 = vld [vmem:[%s4887_s6 + $0x2b0] sm:$0xff] }
 0x1a0   : > { %2232 = vmatprep.mubr.bf16.mxu1 %v6773_v2  ;;  %3012 = vmatpush1.bf16.msra.mxu0 %v4695_v3  ;;  %v300_v3 = vld [vmem:[%s4887_s6 + $0x2f8] sm:$0xff] }
 0x1a1   : > { %3013 = vmatprep.subr.bf16.mxu0 %v6773_v2 }
 0x1a4   : > { %3014 = vmatpush1.bf16.msra.mxu0 %v4696_v53  ;;  %v5823_v53 = vshrl.u32 %v591_v52, 7  ;;  %v312_v52 = vld [vmem:[%s4887_s6 + $0x358] sm:$0xff] }
 0x1a6   : > { %1587 = vmatmul.mubr.bf16.gmra.mrb[44].mxu0 %v5776_v34  ;;  %6787 = vst [vmem:[#allocation11_spill] sm:$0xff] %v5823_v53 }
 0x1a7   : > { %2233 = vmatmul.mubr.bf16.gmra.mrb[60].mxu1 %v5694_v46  ;;  %1596 = vmatprep.mubr.bf16.mxu0 %v6773_v2  ;;  %v285_v46 = vld [vmem:[%s4887_s6 + $0x280] sm:$0xff] }
 0x1a8   : > { %2242 = vmatprep.mubr.bf16.mxu1 %v6773_v2  ;;  %v5800_v59 = vpack.c.bf16 %v288_v38, %v285_v46  ;;  %v306_v46 = vld [vmem:[%s4887_s6 + $0x328] sm:$0xff] }
 0x1ae   : > { %1597 = vmatmul.mubr.bf16.gmra.mrb[48].mxu0 %v5792_v23 }
 0x1af   : > { %2243 = vmatmul.mubr.bf16.gmra.mrb[64].mxu1 %v5703_v20  ;;  %1606 = vmatprep.mubr.bf16.mxu0 %v6773_v2  ;;  %v294_v20 = vld [vmem:[%s4887_s6 + $0x2c8] sm:$0xff] }
 0x1b0   : > { %2252 = vmatprep.mubr.bf16.mxu1 %v6773_v2  ;;  %v5808_v5 = vpack.c.bf16 %v294_v20, %v291_v32  ;;  %v593_v32 = vsub.s32 0, %v5823_v53  ;;  %v5835_v20 = vld [vmem:[%s6761_s2] sm:$0xf] }
 0x1b1   : > { %6788 = vst [vmem:[#allocation12_spill] sm:$0xff] %v5835_v20 }
 0x1b2   : > { %v5841_v13 = vrot.slane %v5835_v20, %v593_v32 }
 0x1b6   : > { %1607 = vmatmul.mubr.bf16.gmra.mrb[52].mxu0 %v5800_v59 }
 0x1b7   : > { %2253 = vmatmul.mubr.bf16.gmra.mrb[68].mxu1 %v5718_v7  ;;  %1616 = vmatprep.mubr.bf16.mxu0 %v6773_v2  ;;  %v297_v7 = vld [vmem:[%s4887_s6 + $0x2e0] sm:$0xff] }
 0x1b8   : > { %2262 = vmatprep.mubr.bf16.mxu1 %v6773_v2  ;;  %v5819_v18 = vpack.c.bf16 %v300_v3, %v297_v7  ;;  %v309_v3 = vld [vmem:[%s4887_s6 + $0x340] sm:$0xff] }
 0x1b9   : > { %v5851_v42 = vpack.c.bf16 %v312_v52, %v309_v3  ;;  %v6789_v52 = vmov 0  }
 0x1be   : > { %1617 = vmatmul.mubr.bf16.gmra.mrb[56].mxu0 %v5808_v5 }
 0x1bf   : > { %2263 = vmatmul.mubr.bf16.gmra.mrb[72].mxu1 %v5729_v61  ;;  %1626 = vmatprep.mubr.bf16.mxu0 %v6773_v2  ;;  %v303_v61 = vld [vmem:[%s4887_s6 + $0x310] sm:$0xff] }
 0x1c0   : > { %2272 = vmatprep.mubr.bf16.mxu1 %v6773_v2  ;;  %v5829_v38 = vpack.c.bf16 %v306_v46, %v303_v61 }
 0x1c6   : > { %1627 = vmatmul.mubr.bf16.gmra.mrb[60].mxu0 %v5819_v18 }
 0x1c7   : > { %2273 = vmatmul.mubr.bf16.gmra.mrb[76].mxu1 %v5741_v15  ;;  %1636 = vmatprep.mubr.bf16.mxu0 %v6773_v2  ;;  %v597_v15 = vsub.s32 1, %v5823_v53 }
 0x1c8   : > { %2282 = vmatprep.mubr.bf16.mxu1 %v6773_v2 }
 0x1c9   : > { %v5844_v7 = vrot.slane %v5835_v20, %v597_v15 }
 0x1ce   : > { %1637 = vmatmul.mubr.bf16.gmra.mrb[64].mxu0 %v5829_v38 }
 0x1cf   : > { %2283 = vmatmul.mubr.bf16.gmra.mrb[80].mxu1 %v5757_v28  ;;  %1646 = vmatprep.mubr.bf16.mxu0 %v6773_v2 }
 0x1d0   : > { %2292 = vmatprep.mubr.bf16.mxu1 %v6773_v2 }
 0x1d1   : > { %v1345_v61 = vpop.f32.mrb[88].mxu0 }
 0x1d2   : > { %v1346_v46 = vadd.f32 %v1345_v61, %v5841_v13  ;;  %v1347_v55 = vpop.f32.mrb[89].mxu0 }
 0x1d3   : > { %v1348_v28 = vadd.f32 %v1347_v55, %v5844_v7  ;;  %v1349_v32 = vpop.f32.mrb[90].mxu0  ;;  %v315_v55 = vld [vmem:[%s4887_s6 + $0x370] sm:$0xff] }
 0x1d4   : > { %v1699_v15 = vadd.f32 %v5442_v10, %v1346_v46  ;;  %v1350_v20 = vadd.f32 %v1349_v32, %v5841_v13  ;;  %v1351_v53 = vpop.f32.mrb[91].mxu0  ;;  %v318_v10 = vld [vmem:[%s4887_s6 + $0x388] sm:$0xff] }
 0x1d5   : > { %v1701_v2 = vadd.f32 %v5444_v12, %v1348_v28  ;;  %v1352_v19 = vadd.f32 %v1351_v53, %v5844_v7 }
 0x1d6   : > { %v1703_v62 = vadd.f32 %v5448_v14, %v1350_v20  ;;  %1647 = vmatmul.mubr.bf16.gmra.mrb[68].mxu0 %v5851_v42  ;;  %v2635_v61 = vmax.f32 %v1699_v15, 0.0  ;;  %v5867_v20 = vpack.c.bf16 %v318_v10, %v315_v55  ;;  %v4698_v55 = vld [vmem:[%s6762_s3 + $0xa0] sm:$0xff]  }
 0x1d7   : > { %2293 = vmatmul.mubr.bf16.gmra.mrb[84].mxu1 %v5776_v34  ;;  %v1705_v3 = vadd.f32 %v5452_v11, %v1352_v19  ;;  %1656 = vmatprep.mubr.bf16.mxu0 %v6789_v52  ;;  %v2636_v32 = vmax.f32 %v1701_v2, 0.0 }
 0x1d8   : > { %2302 = vmatprep.mubr.bf16.mxu1 %v6789_v52  ;;  %v2638_v46 = vmax.f32 %v1703_v62, 0.0  ;;  %3924 = vmatprep.subr.bf16.mxu1 %v4698_v55 }
 0x1d9   : > { %v2639_v12 = vmax.f32 %v1705_v3, 0.0  ;;  %v1355_v28 = vpop.f32.mrb[92].mxu0  ;;  %3925 = vmatpush3.bf16.msra.mxu1 %v4698_v55 }
 0x1da   : > { %v1356_v53 = vadd.f32 %v1355_v28, %v5841_v13  ;;  %v1357_v14 = vpop.f32.mrb[93].mxu0  ;;  %v5869_v48 = vpack.c.bf16 %v2638_v46, %v2635_v61 }
 0x1db   : > { %v1358_v19 = vadd.f32 %v1357_v14, %v5844_v7  ;;  %v1359_v11 = vpop.f32.mrb[94].mxu0  ;;  %v5872_v34 = vpack.c.bf16 %v2639_v12, %v2636_v32 }
 0x1dc   : > { %v1709_v15 = vadd.f32 %v5462_v56, %v1356_v53  ;;  %v1360_v2 = vadd.f32 %v1359_v11, %v5841_v13  ;;  %v1361_v62 = vpop.f32.mrb[95].mxu0  ;;  %v321_v56 = vld [vmem:[%s4887_s6 + $0x3a0] sm:$0xff] }
 0x1dd   : > { %v1711_v3 = vadd.f32 %v5464_v17, %v1358_v19  ;;  %v1362_v28 = vadd.f32 %v1361_v62, %v5844_v7  ;;  %v324_v17 = vld [vmem:[%s4887_s6 + $0x3b8] sm:$0xff] }
 0x1de   : > { %v1713_v10 = vadd.f32 %v5468_v21, %v1360_v2  ;;  %1657 = vmatmul.mubr.bf16.gmra.mrb[72].mxu0 %v5867_v20  ;;  %v2641_v46 = vmax.f32 %v1709_v15, 0.0  ;;  %v5890_v11 = vpack.c.bf16 %v324_v17, %v321_v56  ;;  %v330_v17 = vld [vmem:[%s4887_s6 + $0x3e8] sm:$0xff] }
 0x1df   : > { %2303 = vmatmul.mubr.bf16.gmra.mrb[88].mxu1 %v5792_v23  ;;  %v1715_v61 = vadd.f32 %v5472_v29, %v1362_v28  ;;  %1666 = vmatprep.mubr.bf16.mxu0 %v6789_v52  ;;  %v2642_v12 = vmax.f32 %v1711_v3, 0.0 }
 0x1e0   : > { %2312 = vmatprep.mubr.bf16.mxu1 %v6789_v52  ;;  %v2644_v32 = vmax.f32 %v1713_v10, 0.0 }
 0x1e1   : > { %v2645_v53 = vmax.f32 %v1715_v61, 0.0  ;;  %v1365_v14 = vpop.f32.mrb[96].mxu0 }
 0x1e2   : > { %v1366_v21 = vadd.f32 %v1365_v14, %v5841_v13  ;;  %v1367_v19 = vpop.f32.mrb[97].mxu0  ;;  %v5892_v29 = vpack.c.bf16 %v2644_v32, %v2641_v46 }
 0x1e3   : > { %v1368_v23 = vadd.f32 %v1367_v19, %v5844_v7  ;;  %v1369_v2 = vpop.f32.mrb[98].mxu0  ;;  %v5895_v62 = vpack.c.bf16 %v2645_v53, %v2642_v12 }
 0x1e4   : > { %v1719_v15 = vadd.f32 %v5482_v33, %v1366_v21  ;;  %v1370_v3 = vadd.f32 %v1369_v2, %v5841_v13  ;;  %v1371_v28 = vpop.f32.mrb[99].mxu0  ;;  %v327_v33 = vld [vmem:[%s4887_s6 + $0x3d0] sm:$0xff] }
 0x1e5   : > { %v1721_v55 = vadd.f32 %v5484_v35, %v1368_v23  ;;  %v1372_v10 = vadd.f32 %v1371_v28, %v5844_v7  ;;  %v5910_v21 = vpack.c.bf16 %v330_v17, %v327_v33 }
 0x1e6   : > { %v1723_v61 = vadd.f32 %v5488_v27, %v1370_v3  ;;  %1667 = vmatmul.mubr.bf16.gmra.mrb[76].mxu0 %v5890_v11  ;;  %v2647_v46 = vmax.f32 %v1719_v15, 0.0 }
 0x1e7   : > { %2313 = vmatmul.mubr.bf16.gmra.mrb[92].mxu1 %v5800_v59  ;;  %v1725_v56 = vadd.f32 %v5492_v36, %v1372_v10  ;;  %1676 = vmatprep.mubr.bf16.mxu0 %v6789_v52  ;;  %v2648_v12 = vmax.f32 %v1721_v55, 0.0 }
 0x1e8   : > { %2322 = vmatprep.mubr.bf16.mxu1 %v6789_v52  ;;  %v2650_v32 = vmax.f32 %v1723_v61, 0.0 }
 0x1e9   : > { %v2651_v35 = vmax.f32 %v1725_v56, 0.0  ;;  %v1375_v53 = vpop.f32.mrb[100].mxu0  ;;  %v336_v56 = vld [vmem:[%s4887_s6 + $0x418] sm:$0xff] }
 0x1ea   : > { %v1376_v14 = vadd.f32 %v1375_v53, %v5841_v13  ;;  %v1377_v27 = vpop.f32.mrb[101].mxu0  ;;  %v5912_v59 = vpack.c.bf16 %v2650_v32, %v2647_v46 }
 0x1eb   : > { %v1378_v36 = vadd.f32 %v1377_v27, %v5844_v7  ;;  %v1379_v19 = vpop.f32.mrb[102].mxu0  ;;  %v5915_v23 = vpack.c.bf16 %v2651_v35, %v2648_v12 }
 0x1ec   : > { %v1729_v2 = vadd.f32 %v5502_v40, %v1376_v14  ;;  %v1380_v15 = vadd.f32 %v1379_v19, %v5841_v13  ;;  %v1381_v3 = vpop.f32.mrb[103].mxu0  ;;  %v333_v40 = vld [vmem:[%s4887_s6 + $0x400] sm:$0xff] }
 0x1ed   : > { %v1731_v28 = vadd.f32 %v5504_v30, %v1378_v36  ;;  %v1382_v55 = vadd.f32 %v1381_v3, %v5844_v7  ;;  %v4699_v30 = vld [vmem:[%s6762_s3 + $0xa8] sm:$0xff]   ;;  %v5933_v35 = vpack.c.bf16 %v336_v56, %v333_v40 }
 0x1ee   : > { %v1733_v10 = vadd.f32 %v5508_v51, %v1380_v15  ;;  %1677 = vmatmul.mubr.bf16.gmra.mrb[80].mxu0 %v5910_v21  ;;  %v2653_v33 = vmax.f32 %v1729_v2, 0.0  ;;  %3926 = vmatprep.subr.bf16.mxu1 %v4699_v30  ;;  %v4700_v15 = vld [vmem:[%s6762_s3 + $0xb0] sm:$0xff]  }
 0x1ef   : > { %2323 = vmatmul.mubr.bf16.gmra.mrb[96].mxu1 %v5808_v5  ;;  %v1735_v61 = vadd.f32 %v5512_v47, %v1382_v55  ;;  %1686 = vmatprep.mubr.bf16.mxu0 %v6789_v52  ;;  %v2654_v46 = vmax.f32 %v1731_v28, 0.0 }
 0x1f0   : > { %2332 = vmatprep.mubr.bf16.mxu1 %v6789_v52  ;;  %v2656_v17 = vmax.f32 %v1733_v10, 0.0  ;;  %3927 = vmatpush3.bf16.msra.mxu1 %v4699_v30 }
 0x1f1   : > { %v2657_v51 = vmax.f32 %v1735_v61, 0.0  ;;  %v1385_v32 = vpop.f32.mrb[104].mxu0  ;;  %3928 = vmatprep.subr.bf16.mxu1 %v4700_v15 }
 0x1f2   : > { %v1386_v12 = vadd.f32 %v1385_v32, %v5841_v13  ;;  %v1387_v5 = vpop.f32.mrb[105].mxu0  ;;  %v5935_v47 = vpack.c.bf16 %v2656_v17, %v2653_v33 }
 0x1f3   : > { %v1388_v53 = vadd.f32 %v1387_v5, %v5844_v7  ;;  %v1389_v14 = vpop.f32.mrb[106].mxu0  ;;  %v5938_v27 = vpack.c.bf16 %v2657_v51, %v2654_v46 }
 0x1f4   : > { %v1739_v36 = vadd.f32 %v5522_v6, %v1386_v12  ;;  %v1390_v19 = vadd.f32 %v1389_v14, %v5841_v13  ;;  %v1391_v2 = vpop.f32.mrb[107].mxu0  ;;  %3929 = vmatpush3.bf16.msra.mxu1 %v4700_v15 }
 0x1f5   : > { %v1741_v3 = vadd.f32 %v5524_v58, %v1388_v53  ;;  %v1392_v28 = vadd.f32 %v1391_v2, %v5844_v7  ;;  %v4701_v58 = vld [vmem:[%s6762_s3 + $0xb8] sm:$0xff]  }
 0x1f6   : > { %v1743_v55 = vadd.f32 %v5528_v8, %v1390_v19  ;;  %1687 = vmatmul.mubr.bf16.gmra.mrb[84].mxu0 %v5933_v35  ;;  %v2659_v6 = vmax.f32 %v1739_v36, 0.0  ;;  %3930 = vmatprep.subr.bf16.mxu1 %v4701_v58 }
 0x1f7   : > { %2333 = vmatmul.mubr.bf16.gmra.mrb[100].mxu1 %v5819_v18  ;;  %v1745_v10 = vadd.f32 %v5532_v63, %v1392_v28  ;;  %v2660_v40 = vmax.f32 %v1741_v3, 0.0 }
 0x1f8   : > { %2342 = vmatprep.mubr.bf16.mxu1 %v6789_v52  ;;  %v2662_v61 = vmax.f32 %v1743_v55, 0.0  ;;  %3931 = vmatpush3.bf16.msra.mxu1 %v4701_v58 }
 0x1f9   : > { %v2663_v56 = vmax.f32 %v1745_v10, 0.0  ;;  %v1395_v33 = vpop.f32.mrb[108].mxu0 }
 0x1fa   : > { %v1396_v8 = vadd.f32 %v1395_v33, %v5841_v13  ;;  %v1397_v17 = vpop.f32.mrb[109].mxu0  ;;  %v5956_v18 = vpack.c.bf16 %v2662_v61, %v2659_v6 }
 0x1fb   : > { %v1398_v63 = vadd.f32 %v1397_v17, %v5844_v7  ;;  %v1399_v30 = vpop.f32.mrb[110].mxu0  ;;  %v5959_v46 = vpack.c.bf16 %v2663_v56, %v2660_v40 }
 0x1fc   : > { %v1749_v51 = vadd.f32 %v5542_v16, %v1396_v8  ;;  %v1400_v32 = vadd.f32 %v1399_v30, %v5841_v13  ;;  %v1401_v12 = vpop.f32.mrb[111].mxu0 }
 0x1fd   : > { %v1751_v5 = vadd.f32 %v5544_v54, %v1398_v63  ;;  %v1402_v53 = vadd.f32 %v1401_v12, %v5844_v7 }
 0x1fe   : > { %v1753_v14 = vadd.f32 %v5548_v22, %v1400_v32  ;;  %v2665_v19 = vmax.f32 %v1749_v51, 0.0 }
 0x1ff   : > { %2343 = vmatmul.mubr.bf16.gmra.mrb[104].mxu1 %v5829_v38  ;;  %v1755_v36 = vadd.f32 %v5552_v31, %v1402_v53  ;;  %v2666_v15 = vmax.f32 %v1751_v5, 0.0 }
 0x200   : > { %2352 = vmatprep.mubr.bf16.mxu1 %v6789_v52  ;;  %v2668_v2 = vmax.f32 %v1753_v14, 0.0 }
 0x201   : > { %v2669_v16 = vmax.f32 %v1755_v36, 0.0  ;;  %v1405_v3 = vpop.f32.mrb[112].mxu0 }
 0x202   : > { %v1406_v28 = vadd.f32 %v1405_v3, %v5841_v13  ;;  %v1407_v55 = vpop.f32.mrb[113].mxu0  ;;  %v5970_v10 = vpack.c.bf16 %v2668_v2, %v2665_v19 }
 0x203   : > { %v1408_v54 = vadd.f32 %v1407_v55, %v5844_v7  ;;  %v1409_v6 = vpop.f32.mrb[114].mxu0  ;;  %v5973_v22 = vpack.c.bf16 %v2669_v16, %v2666_v15 }
 0x204   : > { %v1759_v38 = vadd.f32 %v5562_v26, %v1406_v28  ;;  %v1410_v31 = vadd.f32 %v1409_v6, %v5841_v13  ;;  %v1411_v61 = vpop.f32.mrb[115].mxu0 }
 0x205   : > { %v1761_v58 = vadd.f32 %v5564_v44, %v1408_v54  ;;  %v1412_v40 = vadd.f32 %v1411_v61, %v5844_v7 }
 0x206   : > { %v1763_v56 = vadd.f32 %v5568_v45, %v1410_v31  ;;  %v2671_v8 = vmax.f32 %v1759_v38, 0.0 }
 0x207   : > { %2353 = vmatmul.mubr.bf16.gmra.mrb[108].mxu1 %v5851_v42  ;;  %v1765_v33 = vadd.f32 %v5572_v50, %v1412_v40  ;;  %v2672_v63 = vmax.f32 %v1761_v58, 0.0 }
 0x208   : > { %2362 = vmatprep.mubr.bf16.mxu1 %v6789_v52  ;;  %v2674_v17 = vmax.f32 %v1763_v56, 0.0 }
 0x209   : > { %v2675_v30 = vmax.f32 %v1765_v33, 0.0  ;;  %v1415_v26 = vpop.f32.mrb[116].mxu0 }
 0x20a   : > { %v1416_v51 = vadd.f32 %v1415_v26, %v5841_v13  ;;  %v1417_v32 = vpop.f32.mrb[117].mxu0  ;;  %v5984_v12 = vpack.c.bf16 %v2674_v17, %v2671_v8 }
 0x20b   : > { %v1418_v44 = vadd.f32 %v1417_v32, %v5844_v7  ;;  %v1419_v5 = vpop.f32.mrb[118].mxu0  ;;  %v5987_v45 = vpack.c.bf16 %v2675_v30, %v2672_v63 }
 0x20c   : > { %v1769_v42 = vadd.f32 %v5582_v41, %v1416_v51  ;;  %v1420_v50 = vadd.f32 %v1419_v5, %v5841_v13  ;;  %v1421_v53 = vpop.f32.mrb[119].mxu0 }
 0x20d   : > { %v1771_v14 = vadd.f32 %v5584_v0, %v1418_v44  ;;  %v1422_v36 = vadd.f32 %v1421_v53, %v5844_v7 }
 0x20e   : > { %v1773_v19 = vadd.f32 %v5588_v4, %v1420_v50  ;;  %v2677_v15 = vmax.f32 %v1769_v42, 0.0 }
 0x20f   : > { %2363 = vmatmul.mubr.bf16.gmra.mrb[112].mxu1 %v5867_v20  ;;  %v1775_v2 = vadd.f32 %v5592_v43, %v1422_v36  ;;  %v2678_v3 = vmax.f32 %v1771_v14, 0.0 }
 0x210   : > { %2372 = vmatprep.mubr.bf16.mxu1 %v6789_v52  ;;  %v2680_v16 = vmax.f32 %v1773_v19, 0.0 }
 0x211   : > { %v2681_v28 = vmax.f32 %v1775_v2, 0.0  ;;  %v1425_v41 = vpop.f32.mrb[120].mxu0 }
 0x212   : > { %v1426_v55 = vadd.f32 %v1425_v41, %v5841_v13  ;;  %v1427_v54 = vpop.f32.mrb[121].mxu0  ;;  %v5998_v6 = vpack.c.bf16 %v2680_v16, %v2677_v15 }
 0x213   : > { %v1428_v0 = vadd.f32 %v1427_v54, %v5844_v7  ;;  %v1429_v38 = vpop.f32.mrb[122].mxu0  ;;  %v6001_v4 = vpack.c.bf16 %v2681_v28, %v2678_v3 }
 0x214   : > { %v1779_v20 = vadd.f32 %v5600_v24, %v1426_v55  ;;  %v1430_v43 = vadd.f32 %v1429_v38, %v5841_v13  ;;  %v1431_v31 = vpop.f32.mrb[123].mxu0 }
 0x215   : > { %v1781_v61 = vadd.f32 %v5602_v60, %v1428_v0  ;;  %v1432_v58 = vadd.f32 %v1431_v31, %v5844_v7 }
 0x216   : > { %v1783_v40 = vadd.f32 %v5606_v57, %v1430_v43  ;;  %v2683_v33 = vmax.f32 %v1779_v20, 0.0 }
 0x217   : > { %2373 = vmatmul.mubr.bf16.gmra.mrb[116].mxu1 %v5890_v11  ;;  %v1785_v56 = vadd.f32 %v5608_v1, %v1432_v58  ;;  %v2684_v17 = vmax.f32 %v1781_v61, 0.0 }
 0x218   : > { %2382 = vmatprep.mubr.bf16.mxu1 %v6789_v52  ;;  %v2686_v8 = vmax.f32 %v1783_v40, 0.0 }
 0x219   : > { %v2687_v63 = vmax.f32 %v1785_v56, 0.0  ;;  %v1435_v24 = vpop.f32.mrb[124].mxu0 }
 0x21a   : > { %v1436_v30 = vadd.f32 %v1435_v24, %v5841_v13  ;;  %v1437_v26 = vpop.f32.mrb[125].mxu0  ;;  %v6012_v51 = vpack.c.bf16 %v2686_v8, %v2683_v33 }
 0x21b   : > { %v1438_v60 = vadd.f32 %v1437_v26, %v5844_v7  ;;  %v1439_v32 = vpop.f32.mrb[126].mxu0  ;;  %v6015_v57 = vpack.c.bf16 %v2687_v63, %v2684_v17 }
 0x21c   : > { %v1789_v11 = vadd.f32 %v5616_v49, %v1436_v30  ;;  %v1440_v1 = vadd.f32 %v1439_v32, %v5841_v13  ;;  %v1441_v44 = vpop.f32.mrb[127].mxu0 }
 0x21d   : > { %v1791_v5 = vadd.f32 %v5618_v9, %v1438_v60  ;;  %v1442_v42 = vadd.f32 %v1441_v44, %v5844_v7 }
 0x21e   : > { %v1793_v50 = vadd.f32 %v5622_v39, %v1440_v1  ;;  %v2689_v14 = vmax.f32 %v1789_v11, 0.0 }
 0x21f   : > { %2383 = vmatmul.mubr.bf16.gmra.mrb[120].mxu1 %v5910_v21  ;;  %v1795_v53 = vadd.f32 %v5624_v25, %v1442_v42  ;;  %v2690_v19 = vmax.f32 %v1791_v5, 0.0 }
 0x220   : > { %2392 = vmatprep.mubr.bf16.mxu1 %v6789_v52  ;;  %v2692_v36 = vmax.f32 %v1793_v50, 0.0 }
 0x221   : > { %v2693_v2 = vmax.f32 %v1795_v53, 0.0  ;;  %v1478_v49 = vpop.f32.mrb[0].mxu0 }
 0x222   : > { %v4012_v15 = vadd.f32 %v1478_v49, %v5841_v13  ;;  %v1480_v16 = vpop.f32.mrb[1].mxu0  ;;  %v6026_v3 = vpack.c.bf16 %v2692_v36, %v2689_v14  ;;  %v6790_v36 = vld [vmem:[#allocation2_spill] sm:$0xff] }
 0x223   : > { %v4013_v9 = vadd.f32 %v1480_v16, %v5844_v7  ;;  %v1482_v28 = vpop.f32.mrb[2].mxu0  ;;  %v6029_v39 = vpack.c.bf16 %v2693_v2, %v2690_v19 }
 0x224   : > { %v4014_v21 = vadd.f32 %v1482_v28, %v5841_v13  ;;  %v1484_v25 = vpop.f32.mrb[3].mxu0  ;;  %v2503_v55 = vmax.f32 %v4012_v15, 0.0 }
 0x225   : > { %v4015_v41 = vadd.f32 %v1484_v25, %v5844_v7  ;;  %v2504_v0 = vmax.f32 %v4013_v9, 0.0 }
 0x226   : > { %v2506_v54 = vmax.f32 %v4014_v21, 0.0 }
 0x227   : > { %2393 = vmatmul.mubr.bf16.gmra.mrb[124].mxu1 %v5933_v35  ;;  %v2507_v38 = vmax.f32 %v4015_v41, 0.0 }
 0x228   : > { %2402 = vmatprep.mubr.bf16.mxu1 %v6789_v52  ;;  %v2695_v20 = vpack.c.bf16 %v2506_v54, %v2503_v55 }
 0x229   : > { %v2696_v43 = vpack.c.bf16 %v2507_v38, %v2504_v0  ;;  %v1488_v31 = vpop.f32.mrb[4].mxu0 }
 0x22a   : > { %v4016_v61 = vadd.f32 %v1488_v31, %v5841_v13  ;;  %v1490_v58 = vpop.f32.mrb[5].mxu0 }
 0x22b   : > { %v4017_v40 = vadd.f32 %v1490_v58, %v5844_v7  ;;  %v1492_v56 = vpop.f32.mrb[6].mxu0  ;;  %3015 = vmatprep.mubr.bf16.mxu0 %v2696_v43 }
 0x22c   : > { %v4018_v33 = vadd.f32 %v1492_v56, %v5841_v13  ;;  %v1494_v8 = vpop.f32.mrb[7].mxu0  ;;  %3016 = vmatmul.mubr.bf16.vlgmr.msra.gmra.mrb[128].mxu0 %v2695_v20  ;;  %v2509_v17 = vmax.f32 %v4016_v61, 0.0  ;;  %v6791_v20 = vld [vmem:[#allocation3_spill] sm:$0xff] }
 0x22d   : > { %v4019_v35 = vadd.f32 %v1494_v8, %v5844_v7  ;;  %v2510_v24 = vmax.f32 %v4017_v40, 0.0 }
 0x22e   : > { %v2512_v63 = vmax.f32 %v4018_v33, 0.0 }
 0x22f   : > { %2403 = vmatmul.mubr.bf16.gmra.mrb[128].mxu1 %v4907_v37  ;;  %v2513_v30 = vmax.f32 %v4019_v35, 0.0 }
 0x230   : > { %2412 = vmatprep.mubr.bf16.mxu1 %v6789_v52  ;;  %v2698_v26 = vpack.c.bf16 %v2512_v63, %v2509_v17 }
 0x231   : > { %v2699_v60 = vpack.c.bf16 %v2513_v30, %v2510_v24  ;;  %v1498_v32 = vpop.f32.mrb[8].mxu0 }
 0x232   : > { %v4020_v11 = vadd.f32 %v1498_v32, %v5841_v13  ;;  %v1500_v1 = vpop.f32.mrb[9].mxu0 }
 0x233   : > { %v4021_v44 = vadd.f32 %v1500_v1, %v5844_v7  ;;  %v1502_v5 = vpop.f32.mrb[10].mxu0  ;;  %3023 = vmatprep.mubr.bf16.mxu0 %v2699_v60  ;;  %v6792_v60 = vld [vmem:[#allocation4_spill] sm:$0xff] }
 0x234   : > { %v4022_v42 = vadd.f32 %v1502_v5, %v5841_v13  ;;  %v1504_v50 = vpop.f32.mrb[11].mxu0  ;;  %3024 = vmatmul.mubr.bf16.gmra.mrb[132].mxu0 %v2698_v26  ;;  %v2515_v53 = vmax.f32 %v4020_v11, 0.0 }
 0x235   : > { %v4023_v37 = vadd.f32 %v1504_v50, %v5844_v7  ;;  %v2516_v19 = vmax.f32 %v4021_v44, 0.0 }
 0x236   : > { %v2518_v14 = vmax.f32 %v4022_v42, 0.0 }
 0x237   : > { %2413 = vmatmul.mubr.bf16.gmra.mrb[132].mxu1 %v6790_v36  ;;  %v2519_v2 = vmax.f32 %v4023_v37, 0.0  ;;  %v6793_v37 = vld [vmem:[#allocation11_spill] sm:$0xff] }
 0x238   : > { %2422 = vmatprep.mubr.bf16.mxu1 %v6789_v52  ;;  %v2701_v49 = vpack.c.bf16 %v2518_v14, %v2515_v53  ;;  %v601_v53 = vsub.s32 2, %v6793_v37 }
 0x239   : > { %v2702_v15 = vpack.c.bf16 %v2519_v2, %v2516_v19  ;;  %v1508_v16 = vpop.f32.mrb[12].mxu0 }
 0x23a   : > { %v4024_v9 = vadd.f32 %v1508_v16, %v5841_v13  ;;  %v1510_v28 = vpop.f32.mrb[13].mxu0 }
 0x23b   : > { %v4025_v21 = vadd.f32 %v1510_v28, %v5844_v7  ;;  %v1512_v25 = vpop.f32.mrb[14].mxu0  ;;  %3031 = vmatprep.mubr.bf16.mxu0 %v2702_v15  ;;  %v6795_v28 = vld [vmem:[#allocation12_spill] sm:$0xff] }
 0x23c   : > { %v4026_v41 = vadd.f32 %v1512_v25, %v5841_v13  ;;  %v1514_v55 = vpop.f32.mrb[15].mxu0  ;;  %3032 = vmatmul.mubr.bf16.gmra.mrb[136].mxu0 %v2701_v49  ;;  %v2521_v0 = vmax.f32 %v4024_v9, 0.0  ;;  %v6794_v9 = vld [vmem:[#allocation5_spill] sm:$0xff] }
 0x23d   : > { %v4027_v54 = vadd.f32 %v1514_v55, %v5844_v7  ;;  %v2522_v43 = vmax.f32 %v4025_v21, 0.0  ;;  %v6066_v21 = vrot.slane %v6795_v28, %v601_v53 }
 0x23e   : > { %v2524_v38 = vmax.f32 %v4026_v41, 0.0 }
 0x23f   : > { %2423 = vmatmul.mubr.bf16.gmra.mrb[136].mxu1 %v6791_v20  ;;  %v2525_v31 = vmax.f32 %v4027_v54, 0.0 }
 0x240   : > { %2432 = vmatprep.mubr.bf16.mxu1 %v6789_v52  ;;  %v2704_v61 = vpack.c.bf16 %v2524_v38, %v2521_v0 }
 0x241   : > { %v2705_v58 = vpack.c.bf16 %v2525_v31, %v2522_v43  ;;  %v1518_v40 = vpop.f32.mrb[16].mxu0 }
 0x242   : > { %v4028_v56 = vadd.f32 %v1518_v40, %v5841_v13  ;;  %v1520_v33 = vpop.f32.mrb[17].mxu0 }
 0x243   : > { %v4029_v8 = vadd.f32 %v1520_v33, %v5844_v7  ;;  %v1522_v35 = vpop.f32.mrb[18].mxu0  ;;  %3039 = vmatprep.mubr.bf16.mxu0 %v2705_v58 }
 0x244   : > { %v4030_v17 = vadd.f32 %v1522_v35, %v5841_v13  ;;  %v1524_v63 = vpop.f32.mrb[19].mxu0  ;;  %3040 = vmatmul.mubr.bf16.gmra.mrb[140].mxu0 %v2704_v61  ;;  %v2527_v30 = vmax.f32 %v4028_v56, 0.0 }
 0x245   : > { %v4031_v24 = vadd.f32 %v1524_v63, %v5844_v7  ;;  %v2528_v32 = vmax.f32 %v4029_v8, 0.0 }
 0x246   : > { %v2530_v26 = vmax.f32 %v4030_v17, 0.0 }
 0x247   : > { %2433 = vmatmul.mubr.bf16.gmra.mrb[140].mxu1 %v6792_v60  ;;  %v2531_v11 = vmax.f32 %v4031_v24, 0.0 }
 0x248   : > { %2442 = vmatprep.mubr.bf16.mxu1 %v6789_v52  ;;  %v2707_v1 = vpack.c.bf16 %v2530_v26, %v2527_v30 }
 0x249   : > { %v2708_v44 = vpack.c.bf16 %v2531_v11, %v2528_v32  ;;  %v1528_v5 = vpop.f32.mrb[20].mxu0  ;;  %v6796_v32 = vld [vmem:[#allocation6_spill] sm:$0xff] }
 0x24a   : > { %v4032_v42 = vadd.f32 %v1528_v5, %v5841_v13  ;;  %v1530_v50 = vpop.f32.mrb[21].mxu0 }
 0x24b   : > { %v4033_v14 = vadd.f32 %v1530_v50, %v5844_v7  ;;  %v1532_v36 = vpop.f32.mrb[22].mxu0  ;;  %3047 = vmatprep.mubr.bf16.mxu0 %v2708_v44 }
 0x24c   : > { %v4034_v19 = vadd.f32 %v1532_v36, %v5841_v13  ;;  %v1534_v2 = vpop.f32.mrb[23].mxu0  ;;  %3048 = vmatmul.mubr.bf16.gmra.mrb[144].mxu0 %v2707_v1  ;;  %v2533_v15 = vmax.f32 %v4032_v42, 0.0 }
 0x24d   : > { %v4035_v49 = vadd.f32 %v1534_v2, %v5844_v7  ;;  %v2534_v25 = vmax.f32 %v4033_v14, 0.0 }
 0x24e   : > { %v2536_v16 = vmax.f32 %v4034_v19, 0.0 }
 0x24f   : > { %2443 = vmatmul.mubr.bf16.gmra.mrb[144].mxu1 %v6794_v9  ;;  %v2537_v41 = vmax.f32 %v4035_v49, 0.0 }
 0x250   : > { %2452 = vmatprep.mubr.bf16.mxu1 %v6789_v52  ;;  %v2710_v55 = vpack.c.bf16 %v2536_v16, %v2533_v15 }
 0x251   : > { %v2711_v54 = vpack.c.bf16 %v2537_v41, %v2534_v25  ;;  %v1538_v0 = vpop.f32.mrb[24].mxu0 }
 0x252   : > { %v2184_v38 = vpop.f32.mrb[40].mxu1  ;;  %v4036_v20 = vadd.f32 %v1538_v0, %v5841_v13  ;;  %v1540_v31 = vpop.f32.mrb[25].mxu0 }
 0x253   : > { %v4180_v43 = vadd.f32 %v2184_v38, %v6066_v21  ;;  %v6071_v61 = vpop.f32.mrb[41].mxu1  ;;  %v4037_v58 = vadd.f32 %v1540_v31, %v5844_v7  ;;  %v1542_v40 = vpop.f32.mrb[26].mxu0  ;;  %3055 = vmatprep.mubr.bf16.mxu0 %v2711_v54 }
 0x254   : > { %v2188_v56 = vpop.f32.mrb[42].mxu1  ;;  %v4038_v33 = vadd.f32 %v1542_v40, %v5841_v13  ;;  %v1544_v35 = vpop.f32.mrb[27].mxu0  ;;  %3056 = vmatmul.mubr.bf16.gmra.mrb[148].mxu0 %v2710_v55  ;;  %v2539_v24 = vmax.f32 %v4036_v20, 0.0 }
 0x255   : > { %v4182_v8 = vadd.f32 %v2188_v56, %v6066_v21  ;;  %v6076_v17 = vpop.f32.mrb[43].mxu1  ;;  %v4039_v63 = vadd.f32 %v1544_v35, %v5844_v7  ;;  %v2505_v30 = vmax.f32 %v4180_v43, 0.0  ;;  %v2540_v11 = vmax.f32 %v4037_v58, 0.0  ;;  %v6797_v43 = vld [vmem:[#allocation7_spill] sm:$0xff] }
 0x256   : > { %v2542_v26 = vmax.f32 %v4038_v33, 0.0 }
 0x257   : > { %v2508_v60 = vmax.f32 %v4182_v8, 0.0  ;;  %2453 = vmatmul.mubr.bf16.gmra.mrb[148].mxu1 %v6796_v32  ;;  %v2543_v1 = vmax.f32 %v4039_v63, 0.0 }
 0x258   : > { %2462 = vmatprep.mubr.bf16.mxu1 %v6789_v52  ;;  %v2713_v44 = vpack.c.bf16 %v2542_v26, %v2539_v24 }
 0x259   : > { %v6081_v5 = vpack.c.bf16 %v2508_v60, %v2505_v30  ;;  %v2714_v42 = vpack.c.bf16 %v2543_v1, %v2540_v11  ;;  %v1548_v50 = vpop.f32.mrb[28].mxu0 }
 0x25a   : > { %v2194_v53 = vpop.f32.mrb[44].mxu1  ;;  %v4040_v14 = vadd.f32 %v1548_v50, %v5841_v13  ;;  %v1550_v19 = vpop.f32.mrb[29].mxu0 }
 0x25b   : > { %v4184_v36 = vadd.f32 %v2194_v53, %v6066_v21  ;;  %v6085_v2 = vpop.f32.mrb[45].mxu1  ;;  %v4041_v49 = vadd.f32 %v1550_v19, %v5844_v7  ;;  %v1552_v15 = vpop.f32.mrb[30].mxu0  ;;  %3063 = vmatprep.mubr.bf16.mxu0 %v2714_v42 }
 0x25c   : > { %v2198_v16 = vpop.f32.mrb[46].mxu1  ;;  %v4042_v9 = vadd.f32 %v1552_v15, %v5841_v13  ;;  %v1554_v25 = vpop.f32.mrb[31].mxu0  ;;  %3064 = vmatmul.mubr.bf16.gmra.mrb[152].mxu0 %v2713_v44  ;;  %v2545_v54 = vmax.f32 %v4040_v14, 0.0  ;;  %v6798_v15 = vld [vmem:[#allocation8_spill] sm:$0xff] }
 0x25d   : > { %v4186_v28 = vadd.f32 %v2198_v16, %v6066_v21  ;;  %v6090_v41 = vpop.f32.mrb[47].mxu1  ;;  %v4043_v55 = vadd.f32 %v1554_v25, %v5844_v7  ;;  %v2511_v0 = vmax.f32 %v4184_v36, 0.0  ;;  %v2546_v31 = vmax.f32 %v4041_v49, 0.0 }
 0x25e   : > { %v2548_v38 = vmax.f32 %v4042_v9, 0.0 }
 0x25f   : > { %v2514_v20 = vmax.f32 %v4186_v28, 0.0  ;;  %2463 = vmatmul.mubr.bf16.gmra.mrb[152].mxu1 %v6797_v43  ;;  %v2549_v58 = vmax.f32 %v4043_v55, 0.0 }
 0x260   : > { %2472 = vmatprep.mubr.bf16.mxu1 %v6789_v52  ;;  %v2716_v40 = vpack.c.bf16 %v2548_v38, %v2545_v54 }
 0x261   : > { %v6095_v56 = vpack.c.bf16 %v2514_v20, %v2511_v0  ;;  %v2717_v33 = vpack.c.bf16 %v2549_v58, %v2546_v31  ;;  %v1558_v8 = vpop.f32.mrb[32].mxu0 }
 0x262   : > { %v2204_v35 = vpop.f32.mrb[48].mxu1  ;;  %v4044_v63 = vadd.f32 %v1558_v8, %v5841_v13  ;;  %v1560_v30 = vpop.f32.mrb[33].mxu0 }
 0x263   : > { %v4188_v24 = vadd.f32 %v2204_v35, %v6066_v21  ;;  %v6099_v26 = vpop.f32.mrb[49].mxu1  ;;  %v4045_v60 = vadd.f32 %v1560_v30, %v5844_v7  ;;  %v1562_v32 = vpop.f32.mrb[34].mxu0  ;;  %3071 = vmatprep.mubr.bf16.mxu0 %v2717_v33 }
 0x264   : > { %v2208_v11 = vpop.f32.mrb[50].mxu1  ;;  %v4046_v1 = vadd.f32 %v1562_v32, %v5841_v13  ;;  %v1564_v42 = vpop.f32.mrb[35].mxu0  ;;  %3072 = vmatmul.mubr.bf16.gmra.mrb[156].mxu0 %v2716_v40  ;;  %v2551_v14 = vmax.f32 %v4044_v63, 0.0 }
 0x265   : > { %v4190_v44 = vadd.f32 %v2208_v11, %v6066_v21  ;;  %v6104_v50 = vpop.f32.mrb[51].mxu1  ;;  %v4047_v53 = vadd.f32 %v1564_v42, %v5844_v7  ;;  %v2517_v36 = vmax.f32 %v4188_v24, 0.0  ;;  %v2552_v16 = vmax.f32 %v4045_v60, 0.0 }
 0x266   : > { %v2554_v19 = vmax.f32 %v4046_v1, 0.0 }
 0x267   : > { %v2520_v49 = vmax.f32 %v4190_v44, 0.0  ;;  %2473 = vmatmul.mubr.bf16.gmra.mrb[156].mxu1 %v6798_v15  ;;  %v2555_v9 = vmax.f32 %v4047_v53, 0.0  ;;  %v6799_v44 = vld [vmem:[#allocation9_spill] sm:$0xff] }
 0x268   : > { %2482 = vmatprep.mubr.bf16.mxu1 %v6789_v52  ;;  %v2719_v28 = vpack.c.bf16 %v2554_v19, %v2551_v14 }
 0x269   : > { %v6109_v25 = vpack.c.bf16 %v2520_v49, %v2517_v36  ;;  %v2720_v55 = vpack.c.bf16 %v2555_v9, %v2552_v16  ;;  %v1568_v54 = vpop.f32.mrb[36].mxu0 }
 0x26a   : > { %v2214_v0 = vpop.f32.mrb[52].mxu1  ;;  %v4048_v38 = vadd.f32 %v1568_v54, %v5841_v13  ;;  %v1570_v43 = vpop.f32.mrb[37].mxu0 }
 0x26b   : > { %v4192_v20 = vadd.f32 %v2214_v0, %v6066_v21  ;;  %v6113_v31 = vpop.f32.mrb[53].mxu1  ;;  %v4049_v58 = vadd.f32 %v1570_v43, %v5844_v7  ;;  %v1572_v40 = vpop.f32.mrb[38].mxu0  ;;  %3079 = vmatprep.mubr.bf16.mxu0 %v2720_v55 }
 0x26c   : > { %v2218_v33 = vpop.f32.mrb[54].mxu1  ;;  %v4050_v8 = vadd.f32 %v1572_v40, %v5841_v13  ;;  %v1574_v63 = vpop.f32.mrb[39].mxu0  ;;  %3080 = vmatmul.mubr.bf16.gmra.mrb[160].mxu0 %v2719_v28  ;;  %v2557_v60 = vmax.f32 %v4048_v38, 0.0 }
 0x26d   : > { %v4194_v35 = vadd.f32 %v2218_v33, %v6066_v21  ;;  %v6118_v24 = vpop.f32.mrb[55].mxu1  ;;  %v4051_v30 = vadd.f32 %v1574_v63, %v5844_v7  ;;  %v2523_v32 = vmax.f32 %v4192_v20, 0.0  ;;  %v2558_v42 = vmax.f32 %v4049_v58, 0.0 }
 0x26e   : > { %v2560_v11 = vmax.f32 %v4050_v8, 0.0 }
 0x26f   : > { %v2526_v1 = vmax.f32 %v4194_v35, 0.0  ;;  %2483 = vmatmul.mubr.bf16.gmra.mrb[160].mxu1 %v6799_v44  ;;  %v2561_v53 = vmax.f32 %v4051_v30, 0.0  ;;  %v6800_v30 = vld [vmem:[#allocation10_spill] sm:$0xff] }
 0x270   : > { %2492 = vmatprep.mubr.bf16.mxu1 %v6789_v52  ;;  %v2722_v14 = vpack.c.bf16 %v2560_v11, %v2557_v60 }
 0x271   : > { %v6123_v36 = vpack.c.bf16 %v2526_v1, %v2523_v32  ;;  %v2723_v19 = vpack.c.bf16 %v2561_v53, %v2558_v42  ;;  %v1578_v49 = vpop.f32.mrb[40].mxu0 }
 0x272   : > { %v2224_v15 = vpop.f32.mrb[56].mxu1  ;;  %v4052_v16 = vadd.f32 %v1578_v49, %v5841_v13  ;;  %v1580_v28 = vpop.f32.mrb[41].mxu0 }
 0x273   : > { %v4196_v9 = vadd.f32 %v2224_v15, %v6066_v21  ;;  %v6127_v55 = vpop.f32.mrb[57].mxu1  ;;  %v4053_v54 = vadd.f32 %v1580_v28, %v5844_v7  ;;  %v1582_v0 = vpop.f32.mrb[42].mxu0  ;;  %3087 = vmatprep.mubr.bf16.mxu0 %v2723_v19 }
 0x274   : > { %v2228_v38 = vpop.f32.mrb[58].mxu1  ;;  %v4054_v52 = vadd.f32 %v1582_v0, %v5841_v13  ;;  %v1584_v43 = vpop.f32.mrb[43].mxu0  ;;  %3088 = vmatmul.mubr.bf16.gmra.mrb[164].mxu0 %v2722_v14  ;;  %v2563_v33 = vmax.f32 %v4052_v16, 0.0 }
 0x275   : > { %v4198_v20 = vadd.f32 %v2228_v38, %v6066_v21  ;;  %v6132_v58 = vpop.f32.mrb[59].mxu1  ;;  %v4055_v40 = vadd.f32 %v1584_v43, %v5844_v7  ;;  %v2529_v8 = vmax.f32 %v4196_v9, 0.0  ;;  %v2564_v60 = vmax.f32 %v4053_v54, 0.0 }
 0x276   : > { %v2566_v35 = vmax.f32 %v4054_v52, 0.0 }
 0x277   : > { %v2532_v63 = vmax.f32 %v4198_v20, 0.0  ;;  %2493 = vmatmul.mubr.bf16.gmra.mrb[164].mxu1 %v6800_v30  ;;  %v2567_v32 = vmax.f32 %v4055_v40, 0.0 }
 0x278   : > { %3932 = vmatprep.mubr.bf16.mxu1 %v6081_v5  ;;  %v2725_v11 = vpack.c.bf16 %v2566_v35, %v2563_v33 }
 0x279   : > { %v2709_v1 = vpack.c.bf16 %v2532_v63, %v2529_v8  ;;  %v2726_v44 = vpack.c.bf16 %v2567_v32, %v2564_v60  ;;  %v1588_v42 = vpop.f32.mrb[44].mxu0 }
 0x27a   : > { %v2234_v53 = vpop.f32.mrb[60].mxu1  ;;  %v4056_v19 = vadd.f32 %v1588_v42, %v5841_v13  ;;  %v1590_v49 = vpop.f32.mrb[45].mxu0 }
 0x27b   : > { %v4200_v14 = vadd.f32 %v2234_v53, %v6066_v21  ;;  %v6139_v15 = vpop.f32.mrb[61].mxu1  ;;  %v4057_v16 = vadd.f32 %v1590_v49, %v5844_v7  ;;  %v1592_v9 = vpop.f32.mrb[46].mxu0  ;;  %3095 = vmatprep.mubr.bf16.mxu0 %v2726_v44 }
 0x27c   : > { %v2238_v28 = vpop.f32.mrb[62].mxu1  ;;  %v4058_v54 = vadd.f32 %v1592_v9, %v5841_v13  ;;  %v1594_v0 = vpop.f32.mrb[47].mxu0  ;;  %3096 = vmatmul.mubr.bf16.gmra.mrb[168].mxu0 %v2725_v11  ;;  %v2569_v20 = vmax.f32 %v4056_v19, 0.0 }
 0x27d   : > { %v4202_v5 = vadd.f32 %v2238_v28, %v6066_v21  ;;  %v6144_v38 = vpop.f32.mrb[63].mxu1  ;;  %v4059_v52 = vadd.f32 %v1594_v0, %v5844_v7  ;;  %v2535_v43 = vmax.f32 %v4200_v14, 0.0  ;;  %v2570_v8 = vmax.f32 %v4057_v16, 0.0 }
 0x27e   : > { %v2572_v40 = vmax.f32 %v4058_v54, 0.0 }
 0x27f   : > { %v2538_v33 = vmax.f32 %v4202_v5, 0.0  ;;  %3933 = vmatmul.mubr.bf16.vlgmr.msra.gmra.mrb[168].mxu1 %v6095_v56  ;;  %v2573_v35 = vmax.f32 %v4059_v52, 0.0 }
 0x280   : > { %3936 = vmatprep.mubr.bf16.mxu1 %v6109_v25  ;;  %v2728_v63 = vpack.c.bf16 %v2572_v40, %v2569_v20 }
 0x281   : > { %v2712_v30 = vpack.c.bf16 %v2538_v33, %v2535_v43  ;;  %v2729_v60 = vpack.c.bf16 %v2573_v35, %v2570_v8  ;;  %v1598_v32 = vpop.f32.mrb[48].mxu0 }
 0x282   : > { %v2244_v44 = vpop.f32.mrb[64].mxu1  ;;  %v4060_v42 = vadd.f32 %v1598_v32, %v5841_v13  ;;  %v1600_v53 = vpop.f32.mrb[49].mxu0 }
 0x283   : > { %v4204_v11 = vadd.f32 %v2244_v44, %v6066_v21  ;;  %v6151_v19 = vpop.f32.mrb[65].mxu1  ;;  %v4061_v14 = vadd.f32 %v1600_v53, %v5844_v7  ;;  %v1602_v49 = vpop.f32.mrb[50].mxu0  ;;  %3103 = vmatprep.mubr.bf16.mxu0 %v2729_v60 }
 0x284   : > { %v2248_v56 = vpop.f32.mrb[66].mxu1  ;;  %v4062_v16 = vadd.f32 %v1602_v49, %v5841_v13  ;;  %v1604_v9 = vpop.f32.mrb[51].mxu0  ;;  %3104 = vmatmul.mubr.bf16.gmra.mrb[172].mxu0 %v2728_v63  ;;  %v2575_v5 = vmax.f32 %v4060_v42, 0.0 }
 0x285   : > { %v4206_v25 = vadd.f32 %v2248_v56, %v6066_v21  ;;  %v6156_v28 = vpop.f32.mrb[67].mxu1  ;;  %v4063_v54 = vadd.f32 %v1604_v9, %v5844_v7  ;;  %v2541_v0 = vmax.f32 %v4204_v11, 0.0  ;;  %v2576_v43 = vmax.f32 %v4061_v14, 0.0 }
 0x286   : > { %v2578_v52 = vmax.f32 %v4062_v16, 0.0 }
 0x287   : > { %v2544_v20 = vmax.f32 %v4206_v25, 0.0  ;;  %3937 = vmatmul.mubr.bf16.gmra.mrb[172].mxu1 %v6123_v36  ;;  %v2579_v40 = vmax.f32 %v4063_v54, 0.0 }
 0x288   : > { %3940 = vmatprep.mubr.bf16.mxu1 %v2709_v1  ;;  %v2731_v33 = vpack.c.bf16 %v2578_v52, %v2575_v5 }
 0x289   : > { %v2715_v8 = vpack.c.bf16 %v2544_v20, %v2541_v0  ;;  %v2732_v35 = vpack.c.bf16 %v2579_v40, %v2576_v43  ;;  %v1608_v60 = vpop.f32.mrb[52].mxu0 }
 0x28a   : > { %v2254_v32 = vpop.f32.mrb[68].mxu1  ;;  %v4064_v44 = vadd.f32 %v1608_v60, %v5841_v13  ;;  %v1610_v53 = vpop.f32.mrb[53].mxu0 }
 0x28b   : > { %v4208_v63 = vadd.f32 %v2254_v32, %v6066_v21  ;;  %v6162_v49 = vpop.f32.mrb[69].mxu1  ;;  %v4065_v42 = vadd.f32 %v1610_v53, %v5844_v7  ;;  %v1612_v11 = vpop.f32.mrb[54].mxu0  ;;  %3111 = vmatprep.mubr.bf16.mxu0 %v2732_v35 }
 0x28c   : > { %v2258_v56 = vpop.f32.mrb[70].mxu1  ;;  %v4066_v36 = vadd.f32 %v1612_v11, %v5841_v13  ;;  %v1614_v14 = vpop.f32.mrb[55].mxu0  ;;  %3112 = vmatmul.mubr.bf16.gmra.mrb[176].mxu0 %v2731_v33  ;;  %v2581_v9 = vmax.f32 %v4064_v44, 0.0 }
 0x28d   : > { %v4210_v1 = vadd.f32 %v2258_v56, %v6066_v21  ;;  %v6167_v16 = vpop.f32.mrb[71].mxu1  ;;  %v4067_v25 = vadd.f32 %v1614_v14, %v5844_v7  ;;  %v2547_v54 = vmax.f32 %v4208_v63, 0.0  ;;  %v2582_v52 = vmax.f32 %v4065_v42, 0.0 }
 0x28e   : > { %v2584_v5 = vmax.f32 %v4066_v36, 0.0 }
 0x28f   : > { %v2550_v0 = vmax.f32 %v4210_v1, 0.0  ;;  %3941 = vmatmul.mubr.bf16.gmra.mrb[176].mxu1 %v2712_v30  ;;  %v2585_v20 = vmax.f32 %v4067_v25, 0.0 }
 0x290   : > { %3944 = vmatprep.mubr.bf16.mxu1 %v2715_v8  ;;  %v2734_v43 = vpack.c.bf16 %v2584_v5, %v2581_v9 }
 0x291   : > { %v2718_v40 = vpack.c.bf16 %v2550_v0, %v2547_v54  ;;  %v2735_v35 = vpack.c.bf16 %v2585_v20, %v2582_v52  ;;  %v1618_v60 = vpop.f32.mrb[56].mxu0 }
 0x292   : > { %v2264_v32 = vpop.f32.mrb[72].mxu1  ;;  %v4068_v53 = vadd.f32 %v1618_v60, %v5841_v13  ;;  %v1620_v33 = vpop.f32.mrb[57].mxu0 }
 0x293   : > { %v4212_v11 = vadd.f32 %v2264_v32, %v6066_v21  ;;  %v6172_v56 = vpop.f32.mrb[73].mxu1  ;;  %v4069_v44 = vadd.f32 %v1620_v33, %v5844_v7  ;;  %v1622_v63 = vpop.f32.mrb[58].mxu0  ;;  %3119 = vmatprep.mubr.bf16.mxu0 %v2735_v35 }
 0x294   : > { %6801 = vst [vmem:[#allocation2_spill] sm:$0xff] %v6172_v56  ;;  %v2268_v36 = vpop.f32.mrb[74].mxu1  ;;  %v4070_v30 = vadd.f32 %v1622_v63, %v5841_v13  ;;  %v1624_v42 = vpop.f32.mrb[59].mxu0  ;;  %3120 = vmatmul.mubr.bf16.gmra.mrb[180].mxu0 %v2734_v43  ;;  %v2587_v25 = vmax.f32 %v4068_v53, 0.0 }
 0x295   : > { %v4214_v8 = vadd.f32 %v2268_v36, %v6066_v21  ;;  %v6177_v1 = vpop.f32.mrb[75].mxu1  ;;  %v4071_v14 = vadd.f32 %v1624_v42, %v5844_v7  ;;  %v2553_v9 = vmax.f32 %v4212_v11, 0.0  ;;  %v2588_v0 = vmax.f32 %v4069_v44, 0.0 }
 0x296   : > { %6802 = vst [vmem:[#allocation3_spill] sm:$0xff] %v6177_v1  ;;  %v2590_v54 = vmax.f32 %v4070_v30, 0.0 }
 0x297   : > { %v2556_v5 = vmax.f32 %v4214_v8, 0.0  ;;  %3945 = vmatmul.mubr.bf16.gmra.mrb[180].mxu1 %v2718_v40  ;;  %v2591_v52 = vmax.f32 %v4071_v14, 0.0 }
 0x298   : > { %v2737_v20 = vpack.c.bf16 %v2590_v54, %v2587_v25 }
 0x299   : > { %v2721_v60 = vpack.c.bf16 %v2556_v5, %v2553_v9  ;;  %v2738_v35 = vpack.c.bf16 %v2591_v52, %v2588_v0  ;;  %v1628_v32 = vpop.f32.mrb[60].mxu0 }
 0x29a   : > { %v2274_v33 = vpop.f32.mrb[76].mxu1  ;;  %v4072_v63 = vadd.f32 %v1628_v32, %v5841_v13  ;;  %v1630_v1 = vpop.f32.mrb[61].mxu0 }
 0x29b   : > { %v4216_v36 = vadd.f32 %v2274_v33, %v6066_v21  ;;  %v6182_v43 = vpop.f32.mrb[77].mxu1  ;;  %3948 = vmatprep.mubr.bf16.mxu1 %v2721_v60  ;;  %v4073_v53 = vadd.f32 %v1630_v1, %v5844_v7  ;;  %v1632_v11 = vpop.f32.mrb[62].mxu0  ;;  %3127 = vmatprep.mubr.bf16.mxu0 %v2738_v35 }
 0x29c   : > { %v2278_v30 = vpop.f32.mrb[78].mxu1  ;;  %v4074_v40 = vadd.f32 %v1632_v11, %v5841_v13  ;;  %v1634_v8 = vpop.f32.mrb[63].mxu0  ;;  %3128 = vmatmul.mubr.bf16.gmra.mrb[184].mxu0 %v2737_v20  ;;  %v2593_v25 = vmax.f32 %v4072_v63, 0.0 }
 0x29d   : > { %v4218_v44 = vadd.f32 %v2278_v30, %v6066_v21  ;;  %v6187_v42 = vpop.f32.mrb[79].mxu1  ;;  %v4075_v14 = vadd.f32 %v1634_v8, %v5844_v7  ;;  %v2559_v9 = vmax.f32 %v4216_v36, 0.0  ;;  %v2594_v0 = vmax.f32 %v4073_v53, 0.0 }
 0x29e   : > { %6803 = vst [vmem:[#allocation4_spill] sm:$0xff] %v6187_v42  ;;  %v2596_v54 = vmax.f32 %v4074_v40, 0.0 }
 0x29f   : > { %v2562_v5 = vmax.f32 %v4218_v44, 0.0  ;;  %v2597_v52 = vmax.f32 %v4075_v14, 0.0 }
 0x2a0   : > { %v2740_v1 = vpack.c.bf16 %v2596_v54, %v2593_v25 }
 0x2a1   : > { %v2724_v60 = vpack.c.bf16 %v2562_v5, %v2559_v9  ;;  %v2741_v32 = vpack.c.bf16 %v2597_v52, %v2594_v0  ;;  %v1638_v35 = vpop.f32.mrb[64].mxu0 }
 0x2a2   : > { %v2284_v33 = vpop.f32.mrb[80].mxu1  ;;  %v4076_v11 = vadd.f32 %v1638_v35, %v5841_v13  ;;  %v1640_v56 = vpop.f32.mrb[65].mxu0 }
 0x2a3   : > { %v4220_v30 = vadd.f32 %v2284_v33, %v6066_v21  ;;  %v6192_v42 = vpop.f32.mrb[81].mxu1  ;;  %3949 = vmatmul.mubr.bf16.gmra.mrb[184].mxu1 %v2724_v60  ;;  %v4077_v20 = vadd.f32 %v1640_v56, %v5844_v7  ;;  %v1642_v63 = vpop.f32.mrb[66].mxu0  ;;  %3135 = vmatprep.mubr.bf16.mxu0 %v2741_v32 }
 0x2a4   : > { %6804 = vst [vmem:[#allocation11_spill] sm:$0xff] %v6192_v42  ;;  %v2288_v36 = vpop.f32.mrb[82].mxu1  ;;  %v4078_v53 = vadd.f32 %v1642_v63, %v5841_v13  ;;  %v1644_v44 = vpop.f32.mrb[67].mxu0  ;;  %3136 = vmatmul.mubr.bf16.gmra.mrb[188].mxu0 %v2740_v1  ;;  %v2599_v25 = vmax.f32 %v4076_v11, 0.0 }
 0x2a5   : > { %v4222_v40 = vadd.f32 %v2288_v36, %v6066_v21  ;;  %v6197_v8 = vpop.f32.mrb[83].mxu1  ;;  %v4079_v14 = vadd.f32 %v1644_v44, %v5844_v7  ;;  %v2565_v9 = vmax.f32 %v4220_v30, 0.0  ;;  %v2600_v0 = vmax.f32 %v4077_v20, 0.0 }
 0x2a6   : > { %6805 = vst [vmem:[#allocation5_spill] sm:$0xff] %v6197_v8  ;;  %v2602_v54 = vmax.f32 %v4078_v53, 0.0 }
 0x2a7   : > { %v2568_v5 = vmax.f32 %v4222_v40, 0.0  ;;  %v2603_v52 = vmax.f32 %v4079_v14, 0.0 }
 0x2a8   : > { %v2743_v56 = vpack.c.bf16 %v2602_v54, %v2599_v25 }
 0x2a9   : > { %v2727_v60 = vpack.c.bf16 %v2568_v5, %v2565_v9  ;;  %v2744_v35 = vpack.c.bf16 %v2603_v52, %v2600_v0  ;;  %v1648_v32 = vpop.f32.mrb[68].mxu0 }
 0x2aa   : > { %v2294_v33 = vpop.f32.mrb[84].mxu1  ;;  %v4080_v63 = vadd.f32 %v1648_v32, %v5841_v13  ;;  %v1650_v42 = vpop.f32.mrb[69].mxu0 }
 0x2ab   : > { %v4224_v36 = vadd.f32 %v2294_v33, %v6066_v21  ;;  %v6202_v8 = vpop.f32.mrb[85].mxu1  ;;  %3952 = vmatprep.mubr.bf16.mxu1 %v2727_v60  ;;  %v4081_v1 = vadd.f32 %v1650_v42, %v5844_v7  ;;  %v1652_v11 = vpop.f32.mrb[70].mxu0  ;;  %3143 = vmatprep.mubr.bf16.mxu0 %v2744_v35 }
 0x2ac   : > { %6806 = vst [vmem:[#allocation12_spill] sm:$0xff] %v6202_v8  ;;  %v2298_v30 = vpop.f32.mrb[86].mxu1  ;;  %v4082_v20 = vadd.f32 %v1652_v11, %v5841_v13  ;;  %v1654_v40 = vpop.f32.mrb[71].mxu0  ;;  %3144 = vmatmul.mubr.bf16.gmra.mrb[192].mxu0 %v2743_v56  ;;  %v2605_v25 = vmax.f32 %v4080_v63, 0.0 }
 0x2ad   : > { %v4226_v53 = vadd.f32 %v2298_v30, %v6066_v21  ;;  %v6207_v44 = vpop.f32.mrb[87].mxu1  ;;  %v4083_v14 = vadd.f32 %v1654_v40, %v5844_v7  ;;  %v2571_v9 = vmax.f32 %v4224_v36, 0.0  ;;  %v2606_v0 = vmax.f32 %v4081_v1, 0.0 }
 0x2ae   : > { %6807 = vst [vmem:[#allocation6_spill] sm:$0xff] %v6207_v44  ;;  %v2608_v54 = vmax.f32 %v4082_v20, 0.0 }
 0x2af   : > { %v2574_v5 = vmax.f32 %v4226_v53, 0.0  ;;  %v2609_v52 = vmax.f32 %v4083_v14, 0.0 }
 0x2b0   : > { %v2746_v42 = vpack.c.bf16 %v2608_v54, %v2605_v25 }
 0x2b1   : > { %v2730_v60 = vpack.c.bf16 %v2574_v5, %v2571_v9  ;;  %v2747_v32 = vpack.c.bf16 %v2609_v52, %v2606_v0  ;;  %v1658_v35 = vpop.f32.mrb[72].mxu0 }
 0x2b2   : > { %v2304_v33 = vpop.f32.mrb[88].mxu1  ;;  %v4084_v11 = vadd.f32 %v1658_v35, %v5841_v13  ;;  %v1660_v8 = vpop.f32.mrb[73].mxu0 }
 0x2b3   : > { %v4228_v30 = vadd.f32 %v2304_v33, %v6066_v21  ;;  %v6212_v44 = vpop.f32.mrb[89].mxu1  ;;  %3953 = vmatmul.mubr.bf16.gmra.mrb[188].mxu1 %v2730_v60  ;;  %v4085_v56 = vadd.f32 %v1660_v8, %v5844_v7  ;;  %v1662_v63 = vpop.f32.mrb[74].mxu0  ;;  %3151 = vmatprep.mubr.bf16.mxu0 %v2747_v32 }
 0x2b4   : > { %6808 = vst [vmem:[#allocation7_spill] sm:$0xff] %v6212_v44  ;;  %v2308_v36 = vpop.f32.mrb[90].mxu1  ;;  %v4086_v1 = vadd.f32 %v1662_v63, %v5841_v13  ;;  %v1664_v53 = vpop.f32.mrb[75].mxu0  ;;  %3152 = vmatmul.mubr.bf16.gmra.mrb[196].mxu0 %v2746_v42  ;;  %v2611_v25 = vmax.f32 %v4084_v11, 0.0 }
 0x2b5   : > { %v4230_v20 = vadd.f32 %v2308_v36, %v6066_v21  ;;  %v6217_v40 = vpop.f32.mrb[91].mxu1  ;;  %v4087_v14 = vadd.f32 %v1664_v53, %v5844_v7  ;;  %v2577_v9 = vmax.f32 %v4228_v30, 0.0  ;;  %v2612_v0 = vmax.f32 %v4085_v56, 0.0 }
 0x2b6   : > { %6809 = vst [vmem:[#allocation8_spill] sm:$0xff] %v6217_v40  ;;  %v2614_v54 = vmax.f32 %v4086_v1, 0.0 }
 0x2b7   : > { %v2580_v5 = vmax.f32 %v4230_v20, 0.0  ;;  %v2615_v52 = vmax.f32 %v4087_v14, 0.0 }
 0x2b8   : > { %v2749_v8 = vpack.c.bf16 %v2614_v54, %v2611_v25 }
 0x2b9   : > { %v2733_v60 = vpack.c.bf16 %v2580_v5, %v2577_v9  ;;  %v2750_v35 = vpack.c.bf16 %v2615_v52, %v2612_v0  ;;  %v1668_v32 = vpop.f32.mrb[76].mxu0 }
 0x2ba   : > { %v2314_v33 = vpop.f32.mrb[92].mxu1  ;;  %v4088_v63 = vadd.f32 %v1668_v32, %v5841_v13  ;;  %v1670_v44 = vpop.f32.mrb[77].mxu0 }
 0x2bb   : > { %v4232_v36 = vadd.f32 %v2314_v33, %v6066_v21  ;;  %v6222_v40 = vpop.f32.mrb[93].mxu1  ;;  %3956 = vmatprep.mubr.bf16.mxu1 %v2733_v60  ;;  %v4089_v42 = vadd.f32 %v1670_v44, %v5844_v7  ;;  %v1672_v11 = vpop.f32.mrb[78].mxu0  ;;  %3159 = vmatprep.mubr.bf16.mxu0 %v2750_v35 }
 0x2bc   : > { %6810 = vst [vmem:[#allocation9_spill] sm:$0xff] %v6222_v40  ;;  %v2318_v30 = vpop.f32.mrb[94].mxu1  ;;  %v4090_v56 = vadd.f32 %v1672_v11, %v5841_v13  ;;  %v1674_v20 = vpop.f32.mrb[79].mxu0  ;;  %3160 = vmatmul.mubr.bf16.gmra.mrb[200].mxu0 %v2749_v8  ;;  %v2617_v25 = vmax.f32 %v4088_v63, 0.0 }
 0x2bd   : > { %v4234_v1 = vadd.f32 %v2318_v30, %v6066_v21  ;;  %v6227_v53 = vpop.f32.mrb[95].mxu1  ;;  %v4091_v14 = vadd.f32 %v1674_v20, %v5844_v7  ;;  %v2583_v9 = vmax.f32 %v4232_v36, 0.0  ;;  %v2618_v0 = vmax.f32 %v4089_v42, 0.0 }
 0x2be   : > { %6811 = vst [vmem:[#allocation10_spill] sm:$0xff] %v6227_v53  ;;  %v2620_v54 = vmax.f32 %v4090_v56, 0.0 }
 0x2bf   : > { %v2586_v5 = vmax.f32 %v4234_v1, 0.0  ;;  %v2621_v52 = vmax.f32 %v4091_v14, 0.0 }
 0x2c0   : > { %v2752_v44 = vpack.c.bf16 %v2620_v54, %v2617_v25 }
 0x2c1   : > { %v2736_v60 = vpack.c.bf16 %v2586_v5, %v2583_v9  ;;  %v2753_v32 = vpack.c.bf16 %v2621_v52, %v2618_v0  ;;  %v1678_v35 = vpop.f32.mrb[80].mxu0 }
 0x2c2   : > { %v2324_v33 = vpop.f32.mrb[96].mxu1  ;;  %v4092_v11 = vadd.f32 %v1678_v35, %v5841_v13  ;;  %v1680_v40 = vpop.f32.mrb[81].mxu0 }
 0x2c3   : > { %v4236_v30 = vadd.f32 %v2324_v33, %v6066_v21  ;;  %v6232_v53 = vpop.f32.mrb[97].mxu1  ;;  %3957 = vmatmul.mubr.bf16.gmra.mrb[192].mxu1 %v2736_v60  ;;  %v4093_v8 = vadd.f32 %v1680_v40, %v5844_v7  ;;  %v1682_v63 = vpop.f32.mrb[82].mxu0  ;;  %3167 = vmatprep.mubr.bf16.mxu0 %v2753_v32 }
 0x2c4   : > { %6812 = vst [vmem:[#allocation13_spill] sm:$0xff] %v6232_v53  ;;  %v2328_v36 = vpop.f32.mrb[98].mxu1  ;;  %v4094_v42 = vadd.f32 %v1682_v63, %v5841_v13  ;;  %v1684_v1 = vpop.f32.mrb[83].mxu0  ;;  %3168 = vmatmul.mubr.bf16.gmra.mrb[204].mxu0 %v2752_v44  ;;  %v2623_v25 = vmax.f32 %v4092_v11, 0.0 }
 0x2c5   : > { %v4238_v56 = vadd.f32 %v2328_v36, %v6066_v21  ;;  %v6237_v20 = vpop.f32.mrb[99].mxu1  ;;  %v4095_v14 = vadd.f32 %v1684_v1, %v5844_v7  ;;  %v2589_v9 = vmax.f32 %v4236_v30, 0.0  ;;  %v2624_v0 = vmax.f32 %v4093_v8, 0.0 }
 0x2c6   : > { %6813 = vst [vmem:[#allocation14_spill] sm:$0xff] %v6237_v20  ;;  %v2626_v54 = vmax.f32 %v4094_v42, 0.0 }
 0x2c7   : > { %v2592_v5 = vmax.f32 %v4238_v56, 0.0  ;;  %v2627_v52 = vmax.f32 %v4095_v14, 0.0 }
 0x2c8   : > { %v2755_v40 = vpack.c.bf16 %v2626_v54, %v2623_v25 }
 0x2c9   : > { %v2739_v60 = vpack.c.bf16 %v2592_v5, %v2589_v9  ;;  %v2756_v35 = vpack.c.bf16 %v2627_v52, %v2624_v0  ;;  %v1688_v32 = vpop.f32.mrb[84].mxu0 }
 0x2ca   : > { %v2334_v33 = vpop.f32.mrb[100].mxu1  ;;  %v4096_v63 = vadd.f32 %v1688_v32, %v5841_v13  ;;  %v1690_v53 = vpop.f32.mrb[85].mxu0 }
 0x2cb   : > { %v4240_v36 = vadd.f32 %v2334_v33, %v6066_v21  ;;  %v6242_v20 = vpop.f32.mrb[101].mxu1  ;;  %3960 = vmatprep.mubr.bf16.mxu1 %v2739_v60  ;;  %v4097_v44 = vadd.f32 %v1690_v53, %v5844_v7  ;;  %v1692_v11 = vpop.f32.mrb[86].mxu0  ;;  %3175 = vmatprep.mubr.bf16.mxu0 %v2756_v35 }
 0x2cc   : > { %v2338_v30 = vpop.f32.mrb[102].mxu1  ;;  %v4098_v8 = vadd.f32 %v1692_v11, %v5841_v13  ;;  %v1694_v56 = vpop.f32.mrb[87].mxu0  ;;  %3176 = vmatmul.mubr.bf16.gmra.mrb[208].mxu0 %v2755_v40  ;;  %v2629_v25 = vmax.f32 %v4096_v63, 0.0 }
 0x2cd   : > { %v4242_v42 = vadd.f32 %v2338_v30, %v6066_v21  ;;  %v6247_v1 = vpop.f32.mrb[103].mxu1  ;;  %v4099_v14 = vadd.f32 %v1694_v56, %v5844_v7  ;;  %v2595_v9 = vmax.f32 %v4240_v36, 0.0  ;;  %v2630_v0 = vmax.f32 %v4097_v44, 0.0 }
 0x2ce   : > { %v2632_v54 = vmax.f32 %v4098_v8, 0.0 }
 0x2cf   : > { %v2598_v5 = vmax.f32 %v4242_v42, 0.0  ;;  %v2633_v52 = vmax.f32 %v4099_v14, 0.0 }
 0x2d0   : > { %v2758_v53 = vpack.c.bf16 %v2632_v54, %v2629_v25 }
 0x2d1   : > { %v2742_v60 = vpack.c.bf16 %v2598_v5, %v2595_v9  ;;  %v2759_v32 = vpack.c.bf16 %v2633_v52, %v2630_v0 }
 0x2d2   : > { %v2344_v35 = vpop.f32.mrb[104].mxu1 }
 0x2d3   : > { %v4244_v13 = vadd.f32 %v2344_v35, %v6066_v21  ;;  %v6251_v33 = vpop.f32.mrb[105].mxu1  ;;  %3961 = vmatmul.mubr.bf16.gmra.mrb[196].mxu1 %v2742_v60  ;;  %3183 = vmatprep.mubr.bf16.mxu0 %v2759_v32 }
 0x2d4   : > { %v2348_v11 = vpop.f32.mrb[106].mxu1  ;;  %3184 = vmatmul.mubr.bf16.gmra.mrb[212].mxu0 %v2758_v53 }
 0x2d5   : > { %v4246_v40 = vadd.f32 %v2348_v11, %v6066_v21  ;;  %v6254_v7 = vpop.f32.mrb[107].mxu1  ;;  %3191 = vmatprep.mubr.bf16.mxu0 %v5872_v34  ;;  %v2601_v63 = vmax.f32 %v4244_v13, 0.0 }
 0x2d7   : > { %v2604_v36 = vmax.f32 %v4246_v40, 0.0 }
 0x2d9   : > { %v2745_v44 = vpack.c.bf16 %v2604_v36, %v2601_v63 }
 0x2da   : > { %v2354_v30 = vpop.f32.mrb[108].mxu1 }
 0x2db   : > { %v4248_v8 = vadd.f32 %v2354_v30, %v6066_v21  ;;  %v6258_v42 = vpop.f32.mrb[109].mxu1  ;;  %3964 = vmatprep.mubr.bf16.mxu1 %v2745_v44 }
 0x2dc   : > { %v2358_v56 = vpop.f32.mrb[110].mxu1  ;;  %3192 = vmatmul.mubr.bf16.gmra.mrb[216].mxu0 %v5869_v48 }
 0x2dd   : > { %v4250_v14 = vadd.f32 %v2358_v56, %v6066_v21  ;;  %v6261_v25 = vpop.f32.mrb[111].mxu1  ;;  %3199 = vmatprep.mubr.bf16.mxu0 %v5895_v62  ;;  %v2607_v9 = vmax.f32 %v4248_v8, 0.0 }
 0x2df   : > { %v2610_v34 = vmax.f32 %v4250_v14, 0.0 }
 0x2e1   : > { %v2748_v54 = vpack.c.bf16 %v2610_v34, %v2607_v9 }
 0x2e2   : > { %v2364_v5 = vpop.f32.mrb[112].mxu1 }
 0x2e3   : > { %v4252_v0 = vadd.f32 %v2364_v5, %v6066_v21  ;;  %v6266_v52 = vpop.f32.mrb[113].mxu1  ;;  %3965 = vmatmul.mubr.bf16.gmra.mrb[200].mxu1 %v2748_v54 }
 0x2e4   : > { %v2368_v53 = vpop.f32.mrb[114].mxu1  ;;  %3200 = vmatmul.mubr.bf16.gmra.mrb[220].mxu0 %v5892_v29 }
 0x2e5   : > { %v4254_v60 = vadd.f32 %v2368_v53, %v6066_v21  ;;  %v6269_v32 = vpop.f32.mrb[115].mxu1  ;;  %3207 = vmatprep.mubr.bf16.mxu0 %v5915_v23  ;;  %v2613_v48 = vmax.f32 %v4252_v0, 0.0 }
 0x2e7   : > { %v2616_v62 = vmax.f32 %v4254_v60, 0.0 }
 0x2e9   : > { %v2751_v35 = vpack.c.bf16 %v2616_v62, %v2613_v48 }
 0x2ea   : > { %v2374_v13 = vpop.f32.mrb[116].mxu1 }
 0x2eb   : > { %v4256_v11 = vadd.f32 %v2374_v13, %v6066_v21  ;;  %v6274_v40 = vpop.f32.mrb[117].mxu1  ;;  %3968 = vmatprep.mubr.bf16.mxu1 %v2751_v35 }
 0x2ec   : > { %v2378_v63 = vpop.f32.mrb[118].mxu1  ;;  %3208 = vmatmul.mubr.bf16.gmra.mrb[224].mxu0 %v5912_v59 }
 0x2ed   : > { %v4258_v36 = vadd.f32 %v2378_v63, %v6066_v21  ;;  %v6277_v44 = vpop.f32.mrb[119].mxu1  ;;  %3215 = vmatprep.mubr.bf16.mxu0 %v5938_v27  ;;  %v2619_v29 = vmax.f32 %v4256_v11, 0.0 }
 0x2ef   : > { %v2622_v23 = vmax.f32 %v4258_v36, 0.0 }
 0x2f1   : > { %v2754_v30 = vpack.c.bf16 %v2622_v23, %v2619_v29 }
 0x2f2   : > { %v2384_v8 = vpop.f32.mrb[120].mxu1 }
 0x2f3   : > { %v4260_v56 = vadd.f32 %v2384_v8, %v6066_v21  ;;  %v6282_v14 = vpop.f32.mrb[121].mxu1  ;;  %3969 = vmatmul.mubr.bf16.gmra.mrb[204].mxu1 %v2754_v30 }
 0x2f4   : > { %v2388_v9 = vpop.f32.mrb[122].mxu1  ;;  %3216 = vmatmul.mubr.bf16.gmra.mrb[228].mxu0 %v5935_v47 }
 0x2f5   : > { %v4262_v34 = vadd.f32 %v2388_v9, %v6066_v21  ;;  %v6285_v54 = vpop.f32.mrb[123].mxu1  ;;  %3223 = vmatprep.mubr.bf16.mxu0 %v5959_v46  ;;  %v2625_v59 = vmax.f32 %v4260_v56, 0.0 }
 0x2f6   : > { %6814 = vst [vmem:[#allocation15_spill] sm:$0xff] %v6285_v54 }
 0x2f7   : > { %v2628_v27 = vmax.f32 %v4262_v34, 0.0 }
 0x2f9   : > { %v2757_v5 = vpack.c.bf16 %v2628_v27, %v2625_v59 }
 0x2fa   : > { %v2394_v0 = vpop.f32.mrb[124].mxu1 }
 0x2fb   : > { %v4264_v53 = vadd.f32 %v2394_v0, %v6066_v21  ;;  %v6290_v60 = vpop.f32.mrb[125].mxu1  ;;  %3972 = vmatprep.mubr.bf16.mxu1 %v2757_v5 }
 0x2fc   : > { %v2398_v48 = vpop.f32.mrb[126].mxu1  ;;  %3224 = vmatmul.mubr.bf16.gmra.mrb[232].mxu0 %v5956_v18 }
 0x2fd   : > { %v4266_v62 = vadd.f32 %v2398_v48, %v6066_v21  ;;  %v6293_v35 = vpop.f32.mrb[127].mxu1  ;;  %3231 = vmatprep.mubr.bf16.mxu0 %v5973_v22  ;;  %v2631_v47 = vmax.f32 %v4264_v53, 0.0 }
 0x2fe   : > { %6815 = vst [vmem:[#allocation16_spill] sm:$0xff] %v6293_v35 }
 0x2ff   : > { %v2634_v46 = vmax.f32 %v4266_v62, 0.0  ;;  %v6297_v13 = vpop.f32.mrb[128].mxu0 }
 0x300   : > { %v3019_v63 = vpop.f32.mrb[129].mxu0 }
 0x301   : > { %v2760_v11 = vpack.c.bf16 %v2634_v46, %v2631_v47  ;;  %v6299_v29 = vpop.f32.mrb[130].mxu0 }
 0x302   : > { %v2404_v36 = vpop.f32.mrb[128].mxu1  ;;  %v3022_v8 = vpop.f32.mrb[131].mxu0 }
 0x303   : > { %v4268_v23 = vadd.f32 %v2404_v36, %v6066_v21  ;;  %v6302_v30 = vpop.f32.mrb[129].mxu1  ;;  %3973 = vmatmul.mubr.bf16.gmra.mrb[208].mxu1 %v2760_v11 }
 0x304   : > { %6816 = vst [vmem:[#allocation17_spill] sm:$0xff] %v6302_v30  ;;  %v2408_v56 = vpop.f32.mrb[130].mxu1  ;;  %3232 = vmatmul.mubr.bf16.gmra.mrb[236].mxu0 %v5970_v10 }
 0x305   : > { %v4270_v18 = vadd.f32 %v2408_v56, %v6066_v21  ;;  %v6305_v9 = vpop.f32.mrb[131].mxu1  ;;  %3239 = vmatprep.mubr.bf16.mxu0 %v5987_v45  ;;  %v2637_v22 = vmax.f32 %v4268_v23, 0.0 }
 0x306   : > { %6817 = vst [vmem:[#allocation18_spill] sm:$0xff] %v6305_v9 }
 0x307   : > { %v2640_v34 = vmax.f32 %v4270_v18, 0.0  ;;  %v6309_v59 = vpop.f32.mrb[132].mxu0 }
 0x308   : > { %v3027_v5 = vpop.f32.mrb[133].mxu0 }
 0x309   : > { %v2763_v27 = vpack.c.bf16 %v2640_v34, %v2637_v22  ;;  %v6311_v53 = vpop.f32.mrb[134].mxu0 }
 0x30a   : > { %v2414_v0 = vpop.f32.mrb[132].mxu1  ;;  %v3030_v47 = vpop.f32.mrb[135].mxu0 }
 0x30b   : > { %v4272_v48 = vadd.f32 %v2414_v0, %v6066_v21  ;;  %v6314_v62 = vpop.f32.mrb[133].mxu1  ;;  %3976 = vmatprep.mubr.bf16.mxu1 %v2763_v27 }
 0x30c   : > { %6818 = vst [vmem:[#allocation19_spill] sm:$0xff] %v6314_v62  ;;  %v2418_v46 = vpop.f32.mrb[134].mxu1  ;;  %3240 = vmatmul.mubr.bf16.gmra.mrb[240].mxu0 %v5984_v12 }
 0x30d   : > { %v4274_v10 = vadd.f32 %v2418_v46, %v6066_v21  ;;  %v6317_v11 = vpop.f32.mrb[135].mxu1  ;;  %3247 = vmatprep.mubr.bf16.mxu0 %v6001_v4  ;;  %v2643_v45 = vmax.f32 %v4272_v48, 0.0 }
 0x30e   : > { %6819 = vst [vmem:[#allocation20_spill] sm:$0xff] %v6317_v11 }
 0x30f   : > { %v2646_v63 = vmax.f32 %v4274_v10, 0.0  ;;  %v6321_v36 = vpop.f32.mrb[136].mxu0 }
 0x310   : > { %v3035_v8 = vpop.f32.mrb[137].mxu0 }
 0x311   : > { %v2766_v23 = vpack.c.bf16 %v2646_v63, %v2643_v45  ;;  %v6323_v18 = vpop.f32.mrb[138].mxu0 }
 0x312   : > { %v2424_v56 = vpop.f32.mrb[136].mxu1  ;;  %v3038_v27 = vpop.f32.mrb[139].mxu0 }
 0x313   : > { %v4276_v22 = vadd.f32 %v2424_v56, %v6066_v21  ;;  %v6326_v34 = vpop.f32.mrb[137].mxu1  ;;  %3977 = vmatmul.mubr.bf16.gmra.mrb[212].mxu1 %v2766_v23 }
 0x314   : > { %6820 = vst [vmem:[#allocation21_spill] sm:$0xff] %v6326_v34  ;;  %v2428_v5 = vpop.f32.mrb[138].mxu1  ;;  %3248 = vmatmul.mubr.bf16.gmra.mrb[244].mxu0 %v5998_v6 }
 0x315   : > { %v4278_v12 = vadd.f32 %v2428_v5, %v6066_v21  ;;  %v6329_v0 = vpop.f32.mrb[139].mxu1  ;;  %3255 = vmatprep.mubr.bf16.mxu0 %v6015_v57  ;;  %v2649_v4 = vmax.f32 %v4276_v22, 0.0 }
 0x316   : > { %6821 = vst [vmem:[#allocation22_spill] sm:$0xff] %v6329_v0 }
 0x317   : > { %v2652_v48 = vmax.f32 %v4278_v12, 0.0  ;;  %v6333_v47 = vpop.f32.mrb[140].mxu0 }
 0x318   : > { %v3043_v10 = vpop.f32.mrb[141].mxu0 }
 0x319   : > { %v2769_v46 = vpack.c.bf16 %v2652_v48, %v2649_v4  ;;  %v6335_v63 = vpop.f32.mrb[142].mxu0 }
 0x31a   : > { %v2434_v45 = vpop.f32.mrb[140].mxu1  ;;  %v3046_v56 = vpop.f32.mrb[143].mxu0 }
 0x31b   : > { %v4280_v23 = vadd.f32 %v2434_v45, %v6066_v21  ;;  %v6338_v8 = vpop.f32.mrb[141].mxu1  ;;  %3980 = vmatprep.mubr.bf16.mxu1 %v2769_v46 }
 0x31c   : > { %6822 = vst [vmem:[#allocation23_spill] sm:$0xff] %v6338_v8  ;;  %v2438_v27 = vpop.f32.mrb[142].mxu1  ;;  %3256 = vmatmul.mubr.bf16.gmra.mrb[248].mxu0 %v6012_v51 }
 0x31d   : > { %v4282_v6 = vadd.f32 %v2438_v27, %v6066_v21  ;;  %v6341_v5 = vpop.f32.mrb[143].mxu1  ;;  %3263 = vmatprep.mubr.bf16.mxu0 %v6029_v39  ;;  %v2655_v57 = vmax.f32 %v4280_v23, 0.0 }
 0x31e   : > { %6823 = vst [vmem:[#allocation24_spill] sm:$0xff] %v6341_v5 }
 0x31f   : > { %v2658_v22 = vmax.f32 %v4282_v6, 0.0  ;;  %v6345_v12 = vpop.f32.mrb[144].mxu0 }
 0x320   : > { %v3051_v48 = vpop.f32.mrb[145].mxu0 }
 0x321   : > { %v2772_v4 = vpack.c.bf16 %v2658_v22, %v2655_v57  ;;  %v6347_v45 = vpop.f32.mrb[146].mxu0 }
 0x322   : > { %v2444_v10 = vpop.f32.mrb[144].mxu1  ;;  %v3054_v27 = vpop.f32.mrb[147].mxu0 }
 0x323   : > { %v4284_v46 = vadd.f32 %v2444_v10, %v6066_v21  ;;  %v6350_v56 = vpop.f32.mrb[145].mxu1  ;;  %3981 = vmatmul.mubr.bf16.gmra.mrb[216].mxu1 %v2772_v4 }
 0x324   : > { %6824 = vst [vmem:[#allocation25_spill] sm:$0xff] %v6350_v56  ;;  %v2448_v0 = vpop.f32.mrb[146].mxu1  ;;  %3264 = vmatmul.mubr.bf16.gmra.mrb[252].mxu0 %v6026_v3 }
 0x325   : > { %v4286_v51 = vadd.f32 %v2448_v0, %v6066_v21  ;;  %v6353_v5 = vpop.f32.mrb[147].mxu1  ;;  %v2661_v39 = vmax.f32 %v4284_v46, 0.0 }
 0x326   : > { %6825 = vst [vmem:[#allocation26_spill] sm:$0xff] %v6353_v5 }
 0x327   : > { %v2664_v23 = vmax.f32 %v4286_v51, 0.0  ;;  %v6356_v6 = vpop.f32.mrb[148].mxu0 }
 0x328   : > { %v3059_v22 = vpop.f32.mrb[149].mxu0 }
 0x329   : > { %v2775_v57 = vpack.c.bf16 %v2664_v23, %v2661_v39  ;;  %v6358_v34 = vpop.f32.mrb[150].mxu0 }
 0x32a   : > { %v2454_v48 = vpop.f32.mrb[148].mxu1  ;;  %v3062_v4 = vpop.f32.mrb[151].mxu0 }
 0x32b   : > { %v4288_v10 = vadd.f32 %v2454_v48, %v6066_v21  ;;  %v6361_v27 = vpop.f32.mrb[149].mxu1  ;;  %3984 = vmatprep.mubr.bf16.mxu1 %v2775_v57 }
 0x32c   : > { %6826 = vst [vmem:[#allocation27_spill] sm:$0xff] %v6361_v27  ;;  %v2458_v0 = vpop.f32.mrb[150].mxu1 }
 0x32d   : > { %v4290_v5 = vadd.f32 %v2458_v0, %v6066_v21  ;;  %v6364_v56 = vpop.f32.mrb[151].mxu1  ;;  %v2667_v3 = vmax.f32 %v4288_v10, 0.0 }
 0x32e   : > { %6827 = vst [vmem:[#allocation28_spill] sm:$0xff] %v6364_v56 }
 0x32f   : > { %v2670_v46 = vmax.f32 %v4290_v5, 0.0  ;;  %v6366_v51 = vpop.f32.mrb[152].mxu0 }
 0x330   : > { %v3067_v23 = vpop.f32.mrb[153].mxu0 }
 0x331   : > { %v2778_v39 = vpack.c.bf16 %v2670_v46, %v2667_v3  ;;  %v6368_v8 = vpop.f32.mrb[154].mxu0 }
 0x332   : > { %v2464_v22 = vpop.f32.mrb[152].mxu1  ;;  %v3070_v4 = vpop.f32.mrb[155].mxu0 }
 0x333   : > { %v4292_v48 = vadd.f32 %v2464_v22, %v6066_v21  ;;  %v6371_v9 = vpop.f32.mrb[153].mxu1  ;;  %3985 = vmatmul.mubr.bf16.gmra.mrb[220].mxu1 %v2778_v39 }
 0x334   : > { %6828 = vst [vmem:[#allocation29_spill] sm:$0xff] %v6371_v9  ;;  %v2468_v57 = vpop.f32.mrb[154].mxu1 }
 0x335   : > { %v4294_v0 = vadd.f32 %v2468_v57, %v6066_v21  ;;  %v6374_v27 = vpop.f32.mrb[155].mxu1  ;;  %v2673_v10 = vmax.f32 %v4292_v48, 0.0 }
 0x336   : > { %6829 = vst [vmem:[#allocation30_spill] sm:$0xff] %v6374_v27 }
 0x337   : > { %v2676_v5 = vmax.f32 %v4294_v0, 0.0  ;;  %v6376_v56 = vpop.f32.mrb[156].mxu0 }
 0x338   : > { %v3075_v46 = vpop.f32.mrb[157].mxu0 }
 0x339   : > { %v2781_v3 = vpack.c.bf16 %v2676_v5, %v2673_v10  ;;  %v6378_v11 = vpop.f32.mrb[158].mxu0 }
 0x33a   : > { %v2474_v23 = vpop.f32.mrb[156].mxu1  ;;  %v3078_v4 = vpop.f32.mrb[159].mxu0 }
 0x33b   : > { %v4296_v22 = vadd.f32 %v2474_v23, %v6066_v21  ;;  %v6381_v30 = vpop.f32.mrb[157].mxu1  ;;  %3988 = vmatprep.mubr.bf16.mxu1 %v2781_v3 }
 0x33c   : > { %6830 = vst [vmem:[#allocation31_spill] sm:$0xff] %v6381_v30  ;;  %v2478_v39 = vpop.f32.mrb[158].mxu1 }
 0x33d   : > { %v4298_v57 = vadd.f32 %v2478_v39, %v6066_v21  ;;  %v6384_v9 = vpop.f32.mrb[159].mxu1  ;;  %v2679_v48 = vmax.f32 %v4296_v22, 0.0 }
 0x33e   : > { %6831 = vst [vmem:[#allocation32_spill] sm:$0xff] %v6384_v9 }
 0x33f   : > { %v2682_v0 = vmax.f32 %v4298_v57, 0.0  ;;  %v6386_v27 = vpop.f32.mrb[160].mxu0 }
 0x340   : > { %v3083_v5 = vpop.f32.mrb[161].mxu0 }
 0x341   : > { %v2784_v10 = vpack.c.bf16 %v2682_v0, %v2679_v48  ;;  %v6388_v62 = vpop.f32.mrb[162].mxu0 }
 0x342   : > { %v2484_v46 = vpop.f32.mrb[160].mxu1  ;;  %v3086_v4 = vpop.f32.mrb[163].mxu0 }
 0x343   : > { %v4300_v23 = vadd.f32 %v2484_v46, %v6066_v21  ;;  %v6391_v54 = vpop.f32.mrb[161].mxu1  ;;  %3989 = vmatmul.mubr.bf16.gmra.mrb[224].mxu1 %v2784_v10  ;;  %v605_v4 = vsub.s32 3, %v6793_v37 }
 0x344   : > { %6832 = vst [vmem:[#allocation33_spill] sm:$0xff] %v6391_v54  ;;  %v2488_v3 = vpop.f32.mrb[162].mxu1 }
 0x345   : > { %v4302_v39 = vadd.f32 %v2488_v3, %v6066_v21  ;;  %v6394_v30 = vpop.f32.mrb[163].mxu1  ;;  %v2685_v22 = vmax.f32 %v4300_v23, 0.0 }
 0x346   : > { %6833 = vst [vmem:[#allocation34_spill] sm:$0xff] %v6394_v30 }
 0x347   : > { %v2688_v57 = vmax.f32 %v4302_v39, 0.0  ;;  %v6396_v9 = vpop.f32.mrb[164].mxu0 }
 0x348   : > { %v3091_v0 = vpop.f32.mrb[165].mxu0 }
 0x349   : > { %v2787_v48 = vpack.c.bf16 %v2688_v57, %v2685_v22  ;;  %v6398_v35 = vpop.f32.mrb[166].mxu0  ;;  %v4702_v57 = vld [vmem:[%s6761_s2] sm:$0xf] }
 0x34a   : > { %v2494_v5 = vpop.f32.mrb[164].mxu1  ;;  %v3094_v10 = vpop.f32.mrb[167].mxu0  ;;  %v6410_v0 = vrot.slane %v4702_v57, %v605_v4 }
 0x34b   : > { %v4304_v46 = vadd.f32 %v2494_v5, %v6066_v21  ;;  %v6401_v54 = vpop.f32.mrb[165].mxu1  ;;  %3992 = vmatprep.mubr.bf16.mxu1 %v2787_v48 }
 0x34c   : > { %6834 = vst [vmem:[#allocation35_spill] sm:$0xff] %v6401_v54  ;;  %v2498_v3 = vpop.f32.mrb[166].mxu1  ;;  %v4181_v4 = vadd.f32 %v6071_v61, %v6410_v0  ;;  %v4183_v61 = vadd.f32 %v6076_v17, %v6410_v0 }
 0x34d   : > { %v4306_v23 = vadd.f32 %v2498_v3, %v6066_v21  ;;  %v6405_v39 = vpop.f32.mrb[167].mxu1  ;;  %v2691_v30 = vmax.f32 %v4304_v46, 0.0  ;;  %v4185_v21 = vadd.f32 %v6085_v2, %v6410_v0 }
 0x34e   : > { %6835 = vst [vmem:[#allocation36_spill] sm:$0xff] %v6405_v39 }
 0x34f   : > { %v2694_v22 = vmax.f32 %v4306_v23, 0.0  ;;  %v6412_v5 = vpop.f32.mrb[168].mxu0 }
 0x350   : > { %v3099_v10 = vpop.f32.mrb[169].mxu0 }
 0x351   : > { %v2790_v54 = vpack.c.bf16 %v2694_v22, %v2691_v30  ;;  %v6415_v48 = vpop.f32.mrb[170].mxu0 }
 0x352   : > { %v3934_v37 = vpop.f32.mrb[168].mxu1  ;;  %v3102_v3 = vpop.f32.mrb[171].mxu0 }
 0x353   : > { %v3315_v46 = vadd.f32 %v3934_v37, %v6309_v59  ;;  %v3306_v23 = vpop.f32.mrb[169].mxu1  ;;  %3993 = vmatmul.mubr.bf16.gmra.mrb[228].mxu1 %v2790_v54  ;;  %v4187_v59 = vadd.f32 %v6090_v41, %v6410_v0 }
 0x354   : > { %v3307_v30 = vadd.f32 %v3306_v23, %v6297_v13  ;;  %v3935_v2 = vpop.f32.mrb[170].mxu1 }
 0x355   : > { %v3563_v22 = vadd.f32 %v4185_v21, %v3315_v46  ;;  %v3318_v54 = vadd.f32 %v3935_v2, %v6311_v53  ;;  %v3309_v57 = vpop.f32.mrb[171].mxu1  ;;  %v4193_v21 = vadd.f32 %v6113_v31, %v6410_v0  ;;  %v4195_v2 = vadd.f32 %v6118_v24, %v6410_v0 }
 0x356   : > { %v3561_v10 = vadd.f32 %v4181_v4, %v3307_v30  ;;  %v3310_v37 = vadd.f32 %v3309_v57, %v6299_v29  ;;  %v4189_v4 = vadd.f32 %v6099_v26, %v6410_v0 }
 0x357   : > { %3627 = vst [vmem:[%s6425_s9 + $0x10] sm:$0xff] %v3563_v22  ;;  %v3564_v3 = vadd.f32 %v4187_v59, %v3318_v54  ;;  %v6436_v13 = vpop.f32.mrb[172].mxu0 }
 0x358   : > { %3625 = vst [vmem:[%s6425_s9] sm:$0xff] %v3561_v10  ;;  %v3562_v39 = vadd.f32 %v4183_v61, %v3310_v37  ;;  %v3107_v23 = vpop.f32.mrb[173].mxu0  ;;  %v4201_v37 = vadd.f32 %v6139_v15, %v6410_v0 }
 0x359   : > { %3628 = vst [vmem:[%s6425_s9 + $0x18] sm:$0xff] %v3564_v3  ;;  %v6440_v41 = vpop.f32.mrb[174].mxu0  ;;  %v4197_v23 = vadd.f32 %v6127_v55, %v6410_v0 }
 0x35a   : > { %3626 = vst [vmem:[%s6425_s9 + $0x8] sm:$0xff] %v3562_v39  ;;  %v3938_v53 = vpop.f32.mrb[172].mxu1  ;;  %v3110_v29 = vpop.f32.mrb[175].mxu0 }
 0x35b   : > { %v3331_v17 = vadd.f32 %v3938_v53, %v6333_v47  ;;  %v3322_v46 = vpop.f32.mrb[173].mxu1  ;;  %v4191_v47 = vadd.f32 %v6104_v50, %v6410_v0 }
 0x35c   : > { %v3323_v30 = vadd.f32 %v3322_v46, %v6321_v36  ;;  %v3939_v39 = vpop.f32.mrb[174].mxu1 }
 0x35d   : > { %v3567_v59 = vadd.f32 %v4193_v21, %v3331_v17  ;;  %v3334_v22 = vadd.f32 %v3939_v39, %v6335_v63  ;;  %v3325_v31 = vpop.f32.mrb[175].mxu1  ;;  %v4203_v17 = vadd.f32 %v6144_v38, %v6410_v0 }
 0x35e   : > { %v3565_v54 = vadd.f32 %v4189_v4, %v3323_v30  ;;  %v3326_v57 = vadd.f32 %v3325_v31, %v6323_v18  ;;  %v4205_v31 = vadd.f32 %v6151_v19, %v6410_v0 }
 0x35f   : > { %3631 = vst [vmem:[%s6425_s9 + $0x30] sm:$0xff] %v3567_v59  ;;  %v3568_v61 = vadd.f32 %v4195_v2, %v3334_v22  ;;  %v6456_v36 = vpop.f32.mrb[176].mxu0  ;;  %v4209_v59 = vadd.f32 %v6162_v49, %v6410_v0 }
 0x360   : > { %3629 = vst [vmem:[%s6425_s9 + $0x20] sm:$0xff] %v3565_v54  ;;  %v3566_v26 = vadd.f32 %v4191_v47, %v3326_v57  ;;  %v3115_v10 = vpop.f32.mrb[177].mxu0  ;;  %v4211_v57 = vadd.f32 %v6167_v16, %v6410_v0 }
 0x361   : > { %3632 = vst [vmem:[%s6425_s9 + $0x38] sm:$0xff] %v3568_v61  ;;  %v6460_v24 = vpop.f32.mrb[178].mxu0 }
 0x362   : > { %3630 = vst [vmem:[%s6425_s9 + $0x28] sm:$0xff] %v3566_v26  ;;  %v3942_v63 = vpop.f32.mrb[176].mxu1  ;;  %v3118_v18 = vpop.f32.mrb[179].mxu0 }
 0x363   : > { %v3347_v50 = vadd.f32 %v3942_v63, %v6356_v6  ;;  %v3338_v3 = vpop.f32.mrb[177].mxu1  ;;  %v4199_v6 = vadd.f32 %v6132_v58, %v6410_v0 }
 0x364   : > { %v3339_v53 = vadd.f32 %v3338_v3, %v6345_v12  ;;  %v3943_v21 = vpop.f32.mrb[178].mxu1  ;;  %v4217_v3 = vadd.f32 %v6182_v43, %v6410_v0 }
 0x365   : > { %v3571_v29 = vadd.f32 %v4201_v37, %v3347_v50  ;;  %v3350_v46 = vadd.f32 %v3943_v21, %v6358_v34  ;;  %v3341_v15 = vpop.f32.mrb[179].mxu1 }
 0x366   : > { %v3569_v4 = vadd.f32 %v4197_v23, %v3339_v53  ;;  %v3342_v30 = vadd.f32 %v3341_v15, %v6347_v45  ;;  %v6836_v23 = vld [vmem:[#allocation2_spill] sm:$0xff] }
 0x367   : > { %3635 = vst [vmem:[%s6425_s9 + $0x50] sm:$0xff] %v3571_v29  ;;  %v3572_v39 = vadd.f32 %v4203_v17, %v3350_v46  ;;  %v6476_v12 = vpop.f32.mrb[180].mxu0  ;;  %v4213_v53 = vadd.f32 %v6836_v23, %v6410_v0  ;;  %v6837_v46 = vld [vmem:[#allocation4_spill] sm:$0xff] }
 0x368   : > { %3633 = vst [vmem:[%s6425_s9 + $0x40] sm:$0xff] %v3569_v4  ;;  %v3570_v55 = vadd.f32 %v4199_v6, %v3342_v30  ;;  %v3123_v2 = vpop.f32.mrb[181].mxu0  ;;  %v4219_v15 = vadd.f32 %v6837_v46, %v6410_v0  ;;  %v6838_v30 = vld [vmem:[#allocation3_spill] sm:$0xff] }
 0x369   : > { %3636 = vst [vmem:[%s6425_s9 + $0x58] sm:$0xff] %v3572_v39  ;;  %v6480_v38 = vpop.f32.mrb[182].mxu0  ;;  %v4215_v39 = vadd.f32 %v6838_v30, %v6410_v0 }
 0x36a   : > { %3634 = vst [vmem:[%s6425_s9 + $0x48] sm:$0xff] %v3570_v55  ;;  %v3946_v34 = vpop.f32.mrb[180].mxu1  ;;  %v3126_v45 = vpop.f32.mrb[183].mxu0 }
 0x36b   : > { %v3363_v58 = vadd.f32 %v3946_v34, %v6376_v56  ;;  %v3354_v22 = vpop.f32.mrb[181].mxu1  ;;  %v4207_v56 = vadd.f32 %v6156_v28, %v6410_v0 }
 0x36c   : > { %v3355_v47 = vadd.f32 %v3354_v22, %v6366_v51  ;;  %v3947_v54 = vpop.f32.mrb[182].mxu1 }
 0x36d   : > { %v3575_v61 = vadd.f32 %v4209_v59, %v3363_v58  ;;  %v3366_v26 = vadd.f32 %v3947_v54, %v6378_v11  ;;  %v3357_v49 = vpop.f32.mrb[183].mxu1  ;;  %v6839_v54 = vld [vmem:[#allocation12_spill] sm:$0xff] }
 0x36e   : > { %v3573_v10 = vadd.f32 %v4205_v31, %v3355_v47  ;;  %v3358_v63 = vadd.f32 %v3357_v49, %v6368_v8 }
 0x36f   : > { %3639 = vst [vmem:[%s6425_s9 + $0x70] sm:$0xff] %v3575_v61  ;;  %v3576_v37 = vadd.f32 %v4211_v57, %v3366_v26  ;;  %v6496_v51 = vpop.f32.mrb[184].mxu0  ;;  %v4225_v57 = vadd.f32 %v6839_v54, %v6410_v0  ;;  %v6840_v26 = vld [vmem:[#allocation11_spill] sm:$0xff] }
 0x370   : > { %3637 = vst [vmem:[%s6425_s9 + $0x60] sm:$0xff] %v3573_v10  ;;  %v3574_v19 = vadd.f32 %v4207_v56, %v3358_v63  ;;  %v3131_v50 = vpop.f32.mrb[185].mxu0  ;;  %v4221_v49 = vadd.f32 %v6840_v26, %v6410_v0 }
 0x371   : > { %3640 = vst [vmem:[%s6425_s9 + $0x78] sm:$0xff] %v3576_v37  ;;  %v6500_v16 = vpop.f32.mrb[186].mxu0  ;;  %v6841_v37 = vld [vmem:[#allocation6_spill] sm:$0xff] }
 0x372   : > { %3638 = vst [vmem:[%s6425_s9 + $0x68] sm:$0xff] %v3574_v19  ;;  %v3134_v18 = vpop.f32.mrb[187].mxu0  ;;  %v4227_v19 = vadd.f32 %v6841_v37, %v6410_v0 }
 0x376   : > { %v3950_v11 = vpop.f32.mrb[184].mxu1 }
 0x377   : > { %v3379_v28 = vadd.f32 %v3950_v11, %v6396_v9  ;;  %v3370_v8 = vpop.f32.mrb[185].mxu1  ;;  %v6508_v17 = vpop.f32.mrb[188].mxu0 }
 0x378   : > { %v3371_v21 = vadd.f32 %v3370_v8, %v6386_v27  ;;  %v3951_v29 = vpop.f32.mrb[186].mxu1  ;;  %v3139_v4 = vpop.f32.mrb[189].mxu0 }
 0x379   : > { %v3579_v6 = vadd.f32 %v4217_v3, %v3379_v28  ;;  %v3382_v43 = vadd.f32 %v3951_v29, %v6398_v35  ;;  %v3373_v9 = vpop.f32.mrb[187].mxu1  ;;  %v6516_v27 = vpop.f32.mrb[190].mxu0  ;;  %v6842_v3 = vld [vmem:[#allocation5_spill] sm:$0xff] }
 0x37a   : > { %v3577_v55 = vadd.f32 %v4213_v53, %v3371_v21  ;;  %v3374_v2 = vadd.f32 %v3373_v9, %v6388_v62  ;;  %v3142_v59 = vpop.f32.mrb[191].mxu0  ;;  %v4223_v28 = vadd.f32 %v6842_v3, %v6410_v0  ;;  %v6843_v4 = vld [vmem:[#allocation9_spill] sm:$0xff] }
 0x37b   : > { %3643 = vst [vmem:[%s6425_s9 + $0x90] sm:$0xff] %v3579_v6  ;;  %v3580_v34 = vadd.f32 %v4219_v15, %v3382_v43  ;;  %v4233_v9 = vadd.f32 %v6843_v4, %v6410_v0  ;;  %v6847_v3 = vld [vmem:[#allocation13_spill] sm:$0xff] }
 0x37c   : > { %3641 = vst [vmem:[%s6425_s9 + $0x80] sm:$0xff] %v3577_v55  ;;  %v3578_v58 = vadd.f32 %v4215_v39, %v3374_v2  ;;  %v6844_v39 = vld [vmem:[#allocation7_spill] sm:$0xff] }
 0x37d   : > { %3644 = vst [vmem:[%s6425_s9 + $0x98] sm:$0xff] %v3580_v34  ;;  %v4229_v55 = vadd.f32 %v6844_v39, %v6410_v0 }
 0x37e   : > { %3642 = vst [vmem:[%s6425_s9 + $0x88] sm:$0xff] %v3578_v58  ;;  %v6845_v58 = vld [vmem:[#allocation10_spill] sm:$0xff] }
 0x37f   : > { %v6522_v45 = vpop.f32.mrb[192].mxu0 }
 0x380   : > { %v3147_v35 = vpop.f32.mrb[193].mxu0 }
 0x381   : > { %v6524_v22 = vpop.f32.mrb[194].mxu0  ;;  %v4235_v35 = vadd.f32 %v6845_v58, %v6410_v0  ;;  %v4249_v58 = vadd.f32 %v6258_v42, %v6410_v0 }
 0x382   : > { %v3150_v31 = vpop.f32.mrb[195].mxu0 }
 0x386   : > { %v3954_v47 = vpop.f32.mrb[188].mxu1 }
 0x387   : > { %v3395_v62 = vadd.f32 %v3954_v47, %v6436_v13  ;;  %v3386_v61 = vpop.f32.mrb[189].mxu1  ;;  %v6532_v10 = vpop.f32.mrb[196].mxu0 }
 0x388   : > { %v3387_v56 = vadd.f32 %v3386_v61, %v6412_v5  ;;  %v3955_v63 = vpop.f32.mrb[190].mxu1  ;;  %v3155_v11 = vpop.f32.mrb[197].mxu0 }
 0x389   : > { %v3583_v50 = vadd.f32 %v4225_v57, %v3395_v62  ;;  %v3398_v18 = vadd.f32 %v3955_v63, %v6440_v41  ;;  %v3389_v13 = vpop.f32.mrb[191].mxu1  ;;  %v6540_v5 = vpop.f32.mrb[198].mxu0  ;;  %v6846_v57 = vld [vmem:[#allocation8_spill] sm:$0xff]  ;;  %v4241_v11 = vadd.f32 %v6242_v20, %v6410_v0 }
 0x38a   : > { %v3581_v8 = vadd.f32 %v4221_v49, %v3387_v56  ;;  %v3390_v23 = vadd.f32 %v3389_v13, %v6415_v48  ;;  %v3158_v21 = vpop.f32.mrb[199].mxu0  ;;  %v4231_v62 = vadd.f32 %v6846_v57, %v6410_v0  ;;  %v4251_v57 = vadd.f32 %v6261_v25, %v6410_v0 }
 0x38b   : > { %3647 = vst [vmem:[%s6425_s9 + $0xb0] sm:$0xff] %v3583_v50  ;;  %v3584_v53 = vadd.f32 %v4227_v19, %v3398_v18  ;;  %v4243_v21 = vadd.f32 %v6247_v1, %v6410_v0 }
 0x38c   : > { %3645 = vst [vmem:[%s6425_s9 + $0xa0] sm:$0xff] %v3581_v8  ;;  %v3582_v29 = vadd.f32 %v4223_v28, %v3390_v23  ;;  %v4237_v28 = vadd.f32 %v6847_v3, %v6410_v0 }
 0x38d   : > { %3648 = vst [vmem:[%s6425_s9 + $0xb8] sm:$0xff] %v3584_v53 }
 0x38e   : > { %3646 = vst [vmem:[%s6425_s9 + $0xa8] sm:$0xff] %v3582_v29 }
 0x38f   : > { %v6546_v46 = vpop.f32.mrb[200].mxu0 }
 0x390   : > { %v3163_v41 = vpop.f32.mrb[201].mxu0 }
 0x391   : > { %v6548_v15 = vpop.f32.mrb[202].mxu0 }
 0x392   : > { %v3166_v6 = vpop.f32.mrb[203].mxu0 }
 0x393   : > { %v6848_v6 = vld [vmem:[#allocation14_spill] sm:$0xff] }
 0x396   : > { %v3958_v43 = vpop.f32.mrb[192].mxu1 }
 0x397   : > { %v3411_v48 = vadd.f32 %v3958_v43, %v6476_v12  ;;  %v3402_v30 = vpop.f32.mrb[193].mxu1  ;;  %v6556_v34 = vpop.f32.mrb[204].mxu0  ;;  %v4239_v43 = vadd.f32 %v6848_v6, %v6410_v0 }
 0x398   : > { %v3403_v2 = vadd.f32 %v3402_v30, %v6456_v36  ;;  %v3959_v59 = vpop.f32.mrb[194].mxu1  ;;  %v3171_v54 = vpop.f32.mrb[205].mxu0 }
 0x399   : > { %v3587_v31 = vadd.f32 %v4233_v9, %v3411_v48  ;;  %v3414_v47 = vadd.f32 %v3959_v59, %v6480_v38  ;;  %v3405_v12 = vpop.f32.mrb[195].mxu1  ;;  %v6564_v36 = vpop.f32.mrb[206].mxu0 }
 0x39a   : > { %v3585_v61 = vadd.f32 %v4229_v55, %v3403_v2  ;;  %v3406_v26 = vadd.f32 %v3405_v12, %v6460_v24  ;;  %v3174_v56 = vpop.f32.mrb[207].mxu0 }
 0x39b   : > { %3651 = vst [vmem:[%s6425_s9 + $0xd0] sm:$0xff] %v3587_v31  ;;  %v3588_v49 = vadd.f32 %v4235_v35, %v3414_v47  ;;  %v4245_v31 = vadd.f32 %v6251_v33, %v6410_v0 }
 0x39c   : > { %3649 = vst [vmem:[%s6425_s9 + $0xc0] sm:$0xff] %v3585_v61  ;;  %v3586_v63 = vadd.f32 %v4231_v62, %v3406_v26  ;;  %v4247_v26 = vadd.f32 %v6254_v7, %v6410_v0  ;;  %v4257_v7 = vadd.f32 %v6274_v40, %v6410_v0 }
 0x39d   : > { %3652 = vst [vmem:[%s6425_s9 + $0xd8] sm:$0xff] %v3588_v49 }
 0x39e   : > { %3650 = vst [vmem:[%s6425_s9 + $0xc8] sm:$0xff] %v3586_v63 }
 0x39f   : > { %v6570_v37 = vpop.f32.mrb[208].mxu0 }
 0x3a0   : > { %v3179_v38 = vpop.f32.mrb[209].mxu0 }
 0x3a1   : > { %v6572_v19 = vpop.f32.mrb[210].mxu0 }
 0x3a2   : > { %v3182_v50 = vpop.f32.mrb[211].mxu0 }
 0x3a6   : > { %v3962_v18 = vpop.f32.mrb[196].mxu1 }
 0x3a7   : > { %v3427_v24 = vadd.f32 %v3962_v18, %v6508_v17  ;;  %v3418_v13 = vpop.f32.mrb[197].mxu1  ;;  %v6580_v23 = vpop.f32.mrb[212].mxu0 }
 0x3a8   : > { %v3419_v8 = vadd.f32 %v3418_v13, %v6496_v51  ;;  %v3963_v53 = vpop.f32.mrb[198].mxu1  ;;  %v3187_v41 = vpop.f32.mrb[213].mxu0  ;;  %v4253_v13 = vadd.f32 %v6266_v52, %v6410_v0 }
 0x3a9   : > { %v3591_v29 = vadd.f32 %v4241_v11, %v3427_v24  ;;  %v3430_v20 = vadd.f32 %v3963_v53, %v6516_v27  ;;  %v3421_v17 = vpop.f32.mrb[199].mxu1  ;;  %v6588_v51 = vpop.f32.mrb[214].mxu0  ;;  %v4259_v53 = vadd.f32 %v6277_v44, %v6410_v0 }
 0x3aa   : > { %v3589_v4 = vadd.f32 %v4237_v28, %v3419_v8  ;;  %v3422_v9 = vadd.f32 %v3421_v17, %v6500_v16  ;;  %v3190_v30 = vpop.f32.mrb[215].mxu0 }
 0x3ab   : > { %3655 = vst [vmem:[%s6425_s9 + $0xf0] sm:$0xff] %v3591_v29  ;;  %v3592_v48 = vadd.f32 %v4243_v21, %v3430_v20  ;;  %v4255_v20 = vadd.f32 %v6269_v32, %v6410_v0  ;;  %v4265_v32 = vadd.f32 %v6290_v60, %v6410_v0 }
 0x3ac   : > { %3653 = vst [vmem:[%s6425_s9 + $0xe0] sm:$0xff] %v3589_v4  ;;  %v3590_v39 = vadd.f32 %v4239_v43, %v3422_v9 }
 0x3ad   : > { %3656 = vst [vmem:[%s6425_s9 + $0xf8] sm:$0xff] %v3592_v48 }
 0x3ae   : > { %3654 = vst [vmem:[%s6425_s9 + $0xe8] sm:$0xff] %v3590_v39  ;;  %v4261_v39 = vadd.f32 %v6282_v14, %v6410_v0 }
 0x3af   : > { %v6594_v1 = vpop.f32.mrb[216].mxu0 }
 0x3b0   : > { %v3195_v27 = vpop.f32.mrb[217].mxu0 }
 0x3b1   : > { %v6596_v55 = vpop.f32.mrb[218].mxu0 }
 0x3b2   : > { %v3198_v2 = vpop.f32.mrb[219].mxu0 }
 0x3b6   : > { %v3966_v59 = vpop.f32.mrb[200].mxu1 }
 0x3b7   : > { %v3443_v16 = vadd.f32 %v3966_v59, %v6532_v10  ;;  %v3434_v35 = vpop.f32.mrb[201].mxu1  ;;  %v6604_v54 = vpop.f32.mrb[220].mxu0 }
 0x3b8   : > { %v3435_v47 = vadd.f32 %v3434_v35, %v6522_v45  ;;  %v3967_v12 = vpop.f32.mrb[202].mxu1  ;;  %v3203_v61 = vpop.f32.mrb[221].mxu0 }
 0x3b9   : > { %v3595_v62 = vadd.f32 %v4249_v58, %v3443_v16  ;;  %v3446_v42 = vadd.f32 %v3967_v12, %v6540_v5  ;;  %v3437_v10 = vpop.f32.mrb[203].mxu1  ;;  %v6612_v45 = vpop.f32.mrb[222].mxu0  ;;  %v6849_v58 = vld [vmem:[#allocation16_spill] sm:$0xff] }
 0x3ba   : > { %v3593_v33 = vadd.f32 %v4245_v31, %v3435_v47  ;;  %v3438_v49 = vadd.f32 %v3437_v10, %v6524_v22  ;;  %v3206_v63 = vpop.f32.mrb[223].mxu0  ;;  %v4267_v16 = vadd.f32 %v6849_v58, %v6410_v0  ;;  %v6850_v47 = vld [vmem:[#allocation15_spill] sm:$0xff]  ;;  %v6857_v58 = vld [vmem:[#allocation24_spill] sm:$0xff] }
 0x3bb   : > { %3659 = vst [vmem:[%s6425_s9 + $0x110] sm:$0xff] %v3595_v62  ;;  %v3596_v56 = vadd.f32 %v4251_v57, %v3446_v42  ;;  %v4263_v12 = vadd.f32 %v6850_v47, %v6410_v0 }
 0x3bc   : > { %3657 = vst [vmem:[%s6425_s9 + $0x100] sm:$0xff] %v3593_v33  ;;  %v3594_v38 = vadd.f32 %v4247_v26, %v3438_v49 }
 0x3bd   : > { %3660 = vst [vmem:[%s6425_s9 + $0x118] sm:$0xff] %v3596_v56  ;;  %v6851_v56 = vld [vmem:[#allocation19_spill] sm:$0xff] }
 0x3be   : > { %3658 = vst [vmem:[%s6425_s9 + $0x108] sm:$0xff] %v3594_v38  ;;  %v4273_v63 = vadd.f32 %v6851_v56, %v6410_v0 }
 0x3bf   : > { %v6618_v25 = vpop.f32.mrb[224].mxu0 }
 0x3c0   : > { %v3211_v5 = vpop.f32.mrb[225].mxu0 }
 0x3c1   : > { %v6620_v50 = vpop.f32.mrb[226].mxu0  ;;  %v6852_v5 = vld [vmem:[#allocation17_spill] sm:$0xff] }
 0x3c2   : > { %v3214_v18 = vpop.f32.mrb[227].mxu0 }
 0x3c3   : > { %v4269_v18 = vadd.f32 %v6852_v5, %v6410_v0 }
 0x3c6   : > { %v3970_v11 = vpop.f32.mrb[204].mxu1 }
 0x3c7   : > { %v3459_v22 = vadd.f32 %v3970_v11, %v6556_v34  ;;  %v3450_v24 = vpop.f32.mrb[205].mxu1  ;;  %v6628_v28 = vpop.f32.mrb[228].mxu0 }
 0x3c8   : > { %v3451_v3 = vadd.f32 %v3450_v24, %v6546_v46  ;;  %v3971_v8 = vpop.f32.mrb[206].mxu1  ;;  %v3219_v29 = vpop.f32.mrb[229].mxu0  ;;  %v6853_v24 = vld [vmem:[#allocation20_spill] sm:$0xff] }
 0x3c9   : > { %v3599_v21 = vadd.f32 %v4257_v7, %v3459_v22  ;;  %v3462_v40 = vadd.f32 %v3971_v8, %v6564_v36  ;;  %v3453_v34 = vpop.f32.mrb[207].mxu1  ;;  %v6636_v46 = vpop.f32.mrb[230].mxu0 }
 0x3ca   : > { %v3597_v52 = vadd.f32 %v4253_v13, %v3451_v3  ;;  %v3454_v41 = vadd.f32 %v3453_v34, %v6548_v15  ;;  %v3222_v6 = vpop.f32.mrb[231].mxu0  ;;  %v4275_v13 = vadd.f32 %v6853_v24, %v6410_v0  ;;  %v6862_v24 = vld [vmem:[#allocation26_spill] sm:$0xff] }
 0x3cb   : > { %3663 = vst [vmem:[%s6425_s9 + $0x130] sm:$0xff] %v3599_v21  ;;  %v3600_v17 = vadd.f32 %v4259_v53, %v3462_v40  ;;  %v6854_v21 = vld [vmem:[#allocation18_spill] sm:$0xff] }
 0x3cc   : > { %3661 = vst [vmem:[%s6425_s9 + $0x120] sm:$0xff] %v3597_v52  ;;  %v3598_v43 = vadd.f32 %v4255_v20, %v3454_v41  ;;  %v4271_v40 = vadd.f32 %v6854_v21, %v6410_v0 }
 0x3cd   : > { %3664 = vst [vmem:[%s6425_s9 + $0x138] sm:$0xff] %v3600_v17 }
 0x3ce   : > { %3662 = vst [vmem:[%s6425_s9 + $0x128] sm:$0xff] %v3598_v43 }
 0x3cf   : > { %v6642_v44 = vpop.f32.mrb[232].mxu0 }
 0x3d0   : > { %v3227_v36 = vpop.f32.mrb[233].mxu0 }
 0x3d1   : > { %v6644_v4 = vpop.f32.mrb[234].mxu0 }
 0x3d2   : > { %v3230_v9 = vpop.f32.mrb[235].mxu0 }
 0x3d3   : > { %v6855_v9 = vld [vmem:[#allocation23_spill] sm:$0xff] }
 0x3d6   : > { %v3974_v48 = vpop.f32.mrb[208].mxu1 }
 0x3d7   : > { %v3475_v15 = vadd.f32 %v3974_v48, %v6580_v23  ;;  %v3466_v30 = vpop.f32.mrb[209].mxu1  ;;  %v6652_v2 = vpop.f32.mrb[236].mxu0  ;;  %v4281_v48 = vadd.f32 %v6855_v9, %v6410_v0  ;;  %v6866_v9 = vld [vmem:[#allocation30_spill] sm:$0xff] }
 0x3d8   : > { %v3467_v27 = vadd.f32 %v3466_v30, %v6570_v37  ;;  %v3975_v59 = vpop.f32.mrb[210].mxu1  ;;  %v3235_v31 = vpop.f32.mrb[237].mxu0 }
 0x3d9   : > { %v3603_v35 = vadd.f32 %v4265_v32, %v3475_v15  ;;  %v3478_v60 = vadd.f32 %v3975_v59, %v6588_v51  ;;  %v3469_v23 = vpop.f32.mrb[211].mxu1  ;;  %v6660_v37 = vpop.f32.mrb[238].mxu0  ;;  %v6856_v15 = vld [vmem:[#allocation21_spill] sm:$0xff] }
 0x3da   : > { %v3601_v14 = vadd.f32 %v4261_v39, %v3467_v27  ;;  %v3470_v57 = vadd.f32 %v3469_v23, %v6572_v19  ;;  %v3238_v42 = vpop.f32.mrb[239].mxu0  ;;  %v4277_v30 = vadd.f32 %v6856_v15, %v6410_v0 }
 0x3db   : > { %3667 = vst [vmem:[%s6425_s9 + $0x150] sm:$0xff] %v3603_v35  ;;  %v3604_v62 = vadd.f32 %v4267_v16, %v3478_v60  ;;  %v4283_v16 = vadd.f32 %v6857_v58, %v6410_v0  ;;  %v6868_v58 = vld [vmem:[#allocation33_spill] sm:$0xff] }
 0x3dc   : > { %3665 = vst [vmem:[%s6425_s9 + $0x140] sm:$0xff] %v3601_v14  ;;  %v3602_v61 = vadd.f32 %v4263_v12, %v3470_v57 }
 0x3dd   : > { %3668 = vst [vmem:[%s6425_s9 + $0x158] sm:$0xff] %v3604_v62 }
 0x3de   : > { %3666 = vst [vmem:[%s6425_s9 + $0x148] sm:$0xff] %v3602_v61 }
 0x3df   : > { %v6666_v10 = vpop.f32.mrb[240].mxu0 }
 0x3e0   : > { %v3243_v51 = vpop.f32.mrb[241].mxu0 }
 0x3e1   : > { %v6668_v26 = vpop.f32.mrb[242].mxu0 }
 0x3e2   : > { %v3246_v33 = vpop.f32.mrb[243].mxu0 }
 0x3e6   : > { %v3978_v49 = vpop.f32.mrb[212].mxu1 }
 0x3e7   : > { %v3491_v19 = vadd.f32 %v3978_v49, %v6604_v54  ;;  %v3482_v38 = vpop.f32.mrb[213].mxu1  ;;  %v6676_v7 = vpop.f32.mrb[244].mxu0 }
 0x3e8   : > { %v3483_v11 = vadd.f32 %v3482_v38, %v6594_v1  ;;  %v3979_v22 = vpop.f32.mrb[214].mxu1  ;;  %v3251_v53 = vpop.f32.mrb[245].mxu0  ;;  %v6861_v38 = vld [vmem:[#allocation28_spill] sm:$0xff] }
 0x3e9   : > { %v3607_v3 = vadd.f32 %v4273_v63, %v3491_v19  ;;  %v3494_v8 = vadd.f32 %v3979_v22, %v6612_v45  ;;  %v3485_v54 = vpop.f32.mrb[215].mxu1  ;;  %v6684_v1 = vpop.f32.mrb[246].mxu0  ;;  %v4291_v5 = vadd.f32 %v6861_v38, %v6410_v0 }
 0x3ea   : > { %v3605_v29 = vadd.f32 %v4269_v18, %v3483_v11  ;;  %v3486_v34 = vadd.f32 %v3485_v54, %v6596_v55  ;;  %v3254_v52 = vpop.f32.mrb[247].mxu0  ;;  %v6863_v54 = vld [vmem:[#allocation31_spill] sm:$0xff] }
 0x3eb   : > { %3671 = vst [vmem:[%s6425_s9 + $0x170] sm:$0xff] %v3607_v3  ;;  %v3608_v20 = vadd.f32 %v4275_v13, %v3494_v8  ;;  %v4287_v13 = vadd.f32 %v6862_v24, %v6410_v0  ;;  %v4297_v21 = vadd.f32 %v6863_v54, %v6410_v0  ;;  %v6865_v52 = vld [vmem:[#allocation32_spill] sm:$0xff] }
 0x3ec   : > { %3669 = vst [vmem:[%s6425_s9 + $0x160] sm:$0xff] %v3605_v29  ;;  %v3606_v41 = vadd.f32 %v4271_v40, %v3486_v34  ;;  %v6864_v29 = vld [vmem:[#allocation29_spill] sm:$0xff] }
 0x3ed   : > { %3672 = vst [vmem:[%s6425_s9 + $0x178] sm:$0xff] %v3608_v20 }
 0x3ee   : > { %3670 = vst [vmem:[%s6425_s9 + $0x168] sm:$0xff] %v3606_v41  ;;  %v4299_v41 = vadd.f32 %v6865_v52, %v6410_v0 }
 0x3ef   : > { %v6690_v17 = vpop.f32.mrb[248].mxu0 }
 0x3f0   : > { %v3259_v45 = vpop.f32.mrb[249].mxu0 }
 0x3f1   : > { %v6692_v6 = vpop.f32.mrb[250].mxu0 }
 0x3f2   : > { %v3262_v43 = vpop.f32.mrb[251].mxu0 }
 0x3f6   : > { %v3982_v36 = vpop.f32.mrb[216].mxu1 }
 0x3f7   : > { %v3507_v55 = vadd.f32 %v3982_v36, %v6628_v28  ;;  %v3498_v32 = vpop.f32.mrb[217].mxu1  ;;  %v3265_v27 = vpop.f32.mrb[252].mxu0  ;;  %v6858_v28 = vld [vmem:[#allocation22_spill] sm:$0xff] }
 0x3f8   : > { %v3499_v39 = vadd.f32 %v3498_v32, %v6618_v25  ;;  %v3983_v59 = vpop.f32.mrb[218].mxu1  ;;  %v3267_v31 = vpop.f32.mrb[253].mxu0  ;;  %v4279_v47 = vadd.f32 %v6858_v28, %v6410_v0 }
 0x3f9   : > { %v3611_v35 = vadd.f32 %v4281_v48, %v3507_v55  ;;  %v3510_v60 = vadd.f32 %v3983_v59, %v6636_v46  ;;  %v3501_v23 = vpop.f32.mrb[219].mxu1  ;;  %v3268_v57 = vpop.f32.mrb[254].mxu0  ;;  %v6859_v46 = vld [vmem:[#allocation27_spill] sm:$0xff]  ;;  %v4295_v48 = vadd.f32 %v6866_v9, %v6410_v0 }
 0x3fa   : > { %v3609_v12 = vadd.f32 %v4277_v30, %v3499_v39  ;;  %v3502_v14 = vadd.f32 %v3501_v23, %v6620_v50  ;;  %v3270_v62 = vpop.f32.mrb[255].mxu0  ;;  %v4289_v51 = vadd.f32 %v6859_v46, %v6410_v0  ;;  %v6860_v50 = vld [vmem:[#allocation25_spill] sm:$0xff]  ;;  %v6867_v30 = vld [vmem:[#allocation35_spill] sm:$0xff] }
 0x3fb   : > { %3675 = vst [vmem:[%s6425_s9 + $0x190] sm:$0xff] %v3611_v35  ;;  %v3612_v25 = vadd.f32 %v4283_v16, %v3510_v60  ;;  %v4285_v56 = vadd.f32 %v6860_v50, %v6410_v0  ;;  %v4305_v39 = vadd.f32 %v6867_v30, %v6410_v0  ;;  %v4301_v16 = vadd.f32 %v6868_v58, %v6410_v0  ;;  %v6869_v60 = vld [vmem:[#allocation36_spill] sm:$0xff] }
 0x3fc   : > { %3673 = vst [vmem:[%s6425_s9 + $0x180] sm:$0xff] %v3609_v12  ;;  %v3610_v42 = vadd.f32 %v4279_v47, %v3502_v14  ;;  %v4307_v31 = vadd.f32 %v6869_v60, %v6410_v0  ;;  %v6870_v12 = vld [vmem:[#allocation34_spill] sm:$0xff] }
 0x3fd   : > { %3676 = vst [vmem:[%s6425_s9 + $0x198] sm:$0xff] %v3612_v25  ;;  %v4303_v14 = vadd.f32 %v6870_v12, %v6410_v0 }
 0x3fe   : > { %3674 = vst [vmem:[%s6425_s9 + $0x188] sm:$0xff] %v3610_v42 }
 0x406   : > { %v3986_v61 = vpop.f32.mrb[220].mxu1 }
 0x407   : > { %v3523_v33 = vadd.f32 %v3986_v61, %v6652_v2  ;;  %v3514_v49 = vpop.f32.mrb[221].mxu1 }
 0x408   : > { %v3515_v63 = vadd.f32 %v3514_v49, %v6642_v44  ;;  %v3987_v19 = vpop.f32.mrb[222].mxu1 }
 0x409   : > { %v3615_v18 = vadd.f32 %v4289_v51, %v3523_v33  ;;  %v3526_v11 = vadd.f32 %v3987_v19, %v6660_v37  ;;  %v3517_v22 = vpop.f32.mrb[223].mxu1 }
 0x40a   : > { %v3613_v2 = vadd.f32 %v4285_v56, %v3515_v63  ;;  %v3518_v3 = vadd.f32 %v3517_v22, %v6644_v4  ;;  %v4293_v4 = vadd.f32 %v6864_v29, %v6410_v0 }
 0x40b   : > { %3679 = vst [vmem:[%s6425_s9 + $0x1b0] sm:$0xff] %v3615_v18  ;;  %v3616_v8 = vadd.f32 %v4291_v5, %v3526_v11 }
 0x40c   : > { %3677 = vst [vmem:[%s6425_s9 + $0x1a0] sm:$0xff] %v3613_v2  ;;  %v3614_v53 = vadd.f32 %v4287_v13, %v3518_v3 }
 0x40d   : > { %3680 = vst [vmem:[%s6425_s9 + $0x1b8] sm:$0xff] %v3616_v8 }
 0x40e   : > { %3678 = vst [vmem:[%s6425_s9 + $0x1a8] sm:$0xff] %v3614_v53 }
 0x416   : > { %v3990_v44 = vpop.f32.mrb[224].mxu1 }
 0x417   : > { %v3539_v37 = vadd.f32 %v3990_v44, %v6676_v7  ;;  %v3530_v40 = vpop.f32.mrb[225].mxu1 }
 0x418   : > { %v3531_v34 = vadd.f32 %v3530_v40, %v6666_v10  ;;  %v3991_v20 = vpop.f32.mrb[226].mxu1 }
 0x419   : > { %v3619_v45 = vadd.f32 %v4297_v21, %v3539_v37  ;;  %v3542_v43 = vadd.f32 %v3991_v20, %v6684_v1  ;;  %v3533_v36 = vpop.f32.mrb[227].mxu1 }
 0x41a   : > { %v3617_v7 = vadd.f32 %v4293_v4, %v3531_v34  ;;  %v3534_v55 = vadd.f32 %v3533_v36, %v6668_v26 }
 0x41b   : > { %3683 = vst [vmem:[%s6425_s9 + $0x1d0] sm:$0xff] %v3619_v45  ;;  %v3620_v32 = vadd.f32 %v4299_v41, %v3542_v43 }
 0x41c   : > { %3681 = vst [vmem:[%s6425_s9 + $0x1c0] sm:$0xff] %v3617_v7  ;;  %v3618_v15 = vadd.f32 %v4295_v48, %v3534_v55 }
 0x41d   : > { %3684 = vst [vmem:[%s6425_s9 + $0x1d8] sm:$0xff] %v3620_v32 }
 0x41e   : > { %3682 = vst [vmem:[%s6425_s9 + $0x1c8] sm:$0xff] %v3618_v15 }
 0x426   : > { %v3994_v10 = vpop.f32.mrb[228].mxu1 }
 0x427   : > { %v3555_v1 = vadd.f32 %v3994_v10, %v3265_v27  ;;  %v3546_v59 = vpop.f32.mrb[229].mxu1 }
 0x428   : > { %v3547_v26 = vadd.f32 %v3546_v59, %v6690_v17  ;;  %v3995_v35 = vpop.f32.mrb[230].mxu1 }
 0x429   : > { %v3623_v23 = vadd.f32 %v4305_v39, %v3555_v1  ;;  %v3558_v28 = vadd.f32 %v3995_v35, %v3268_v57  ;;  %v3549_v47 = vpop.f32.mrb[231].mxu1 }
 0x42a   : > { %v3621_v25 = vadd.f32 %v4301_v16, %v3547_v26  ;;  %v3550_v27 = vadd.f32 %v3549_v47, %v6692_v6 }
 0x42b   : > { %3687 = vst [vmem:[%s6425_s9 + $0x1f0] sm:$0xff] %v3623_v23  ;;  %v3624_v62 = vadd.f32 %v4307_v31, %v3558_v28 }
 0x42c   : > { %3685 = vst [vmem:[%s6425_s9 + $0x1e0] sm:$0xff] %v3621_v25  ;;  %v3622_v42 = vadd.f32 %v4303_v14, %v3550_v27 }
 0x42d   : > { %3688 = vst [vmem:[%s6425_s9 + $0x1f8] sm:$0xff] %v3624_v62 }
 0x42e   : > { %3686 = vst [vmem:[%s6425_s9 + $0x1e8] sm:$0xff] %v3622_v42 }
 0x42f PF: > { %s14_s15 = sadd.s32 1, %s4709_s15  }
 0x430   : > { %p11_p4 = scmp.ge.s32.totalorder %s14_s15, 4  }
 0x432   :  { %13 = sbr.rel (!%p11_p4) target bundleno = 1 (0x1), region = 66 }

</bundles_post_ra>
